<compile_context>
chip_gen: v6e
topology: v6e:2x2x1
jax: 0.10.0
libtpu: 0.0.40
codegen_flags: <defaults>
</compile_context>

<pallas_src>
import functools

import jax
import jax.numpy as jnp
import numpy as np
from jax.experimental import pallas as pl
from jax.experimental.pallas import tpu as pltpu

# ----------------------------- hyper-parameters (args) -----------------------
NUM_USERS = 8
NUM_ITEMS = 8
MAX_DOC_LEN = 32      # L
VOCAB_SIZE = 64
WORD_EMBED_DIM = 16   # D
H1 = 8                # aspect hidden dim
NUM_ASPECTS = 4       # A
WINDOWS = (1, 3, 5)   # multi-scale context window sizes
BATCH = 8             # 2*BATCH = 16 docs -> G=8 docs/step, grid=(2,)


# ----------------------------- ARL Pallas kernel ------------------------------
def _arl_kernel(G, L, shifts, doc_ref, w_ref, comb_ref, expand_ref, mask_ref,
                rep_ref):
    """Processes G documents per grid step (all aspects / scales at once).

    doc_ref    : (G, L, D)         word embeddings for G documents
    w_ref      : (D, A*H1)         packed aspect projection (aspect-major cols)
    comb_ref   : (n_d*A*H1, S*A)   window-offset x aspect-context "combine" mat
    expand_ref : (S*A, A*H1)       scale-average + per-aspect column broadcast
    mask_ref   : (G*L, n_d)        zero-padded-shift validity mask
    rep_ref    : (1, 1, G*A*H1)    lane-dense packed aspect representations
    """
    f32 = jnp.float32
    GL = G * L
    D = w_ref.shape[0]
    AH = w_ref.shape[1]

    # (G*L, A*H1): per-position aspect projections; the G docs of this step are
    # stacked on the matmul M axis (single MXU matmul, M = G*L).
    proj = jnp.dot(doc_ref[...].reshape(GL, D), w_ref[...],
                   preferred_element_type=f32)

    # Zero-padded window shifts along the per-document position axis:
    # XLU sublane rolls + precomputed validity mask (rows whose shifted
    # position falls outside their own document are zeroed).
    pieces = []
    for di, d in enumerate(shifts):
        if d == 0:
            pieces.append(proj)                       # mask column is all-ones
        else:
            rolled = pltpu.roll(proj, shift=(-d) % GL, axis=0)
            pieces.append(rolled * mask_ref[:, di:di + 1])
    shifted = jnp.concatenate(pieces, axis=-1)        # (G*L, n_d*A*H1)

    # One matmul folds window offsets, per-scale aspect context embeddings and
    # the block-diagonal aspect structure: raw attention scores, one column per
    # (scale s, aspect a).
    score = jnp.dot(shifted, comb_ref[...],
                    preferred_element_type=f32)       # (G*L, S*A)

    # Per-document softmax over positions (positions live on sublanes).
    attn_parts = []
    for g in range(G):
        s_g = score[g * L:(g + 1) * L, :]             # (L, S*A)
        m = jnp.max(s_g, axis=0, keepdims=True)
        ex = jnp.exp(s_g - m)
        den = jnp.sum(ex, axis=0, keepdims=True)
        attn_parts.append(ex * pl.reciprocal(den, approx=False))
    attn = jnp.concatenate(attn_parts, axis=0)        # (G*L, S*A)

    # Scale-average + broadcast each aspect's attention over its own H1 output
    # columns (constant expand matrix), then the attention-weighted sum over
    # document positions.
    attn_b = jnp.dot(attn, expand_ref[...],
                     preferred_element_type=f32)      # (G*L, A*H1)
    prod = attn_b * proj                              # (G*L, A*H1)

    # Lane-dense packed output row: doc g occupies lanes [g*A*H1, (g+1)*A*H1).
    rep_parts = [jnp.sum(prod[g * L:(g + 1) * L, :], axis=0, keepdims=True)
                 for g in range(G)]
    rep_ref[0] = jnp.concatenate(rep_parts, axis=-1)  # (1, G*A*H1)


def msanr_arl(doc_embed, asp_proj, asp_embs, windows=WINDOWS,
              docs_per_step=None):
    """doc_embed: (N, L, D) documents.  Returns aspect reps (N, A, H1)."""
    N, L, D = doc_embed.shape
    A, _, H = asp_proj.shape
    AH = A * H
    S = len(windows)
    max_pad = max(windows) // 2
    shifts = tuple(range(-max_pad, max_pad + 1))
    n_d = len(shifts)

    if docs_per_step is None:
        # >= 2 grid steps keep both v7x TensorCores busy; G=8 puts the
        # projection matmul at M = G*L = 256 (v6e/v7x MXU M target, >=128 v5e).
        docs_per_step = max(1, min(8, N // 2)) if N >= 2 else 1
    G = docs_per_step
    n_blocks = -(-N // G)
    Npad = n_blocks * G
    if Npad != N:  # pad with zero docs; their reps are dropped below.
        doc_embed = jnp.concatenate(
            [doc_embed, jnp.zeros((Npad - N, L, D), doc_embed.dtype)], axis=0)

    # ---------- constant operands (layout plumbing, all tiny) ----------
    # Packed aspect projection: column block a holds aspProj[a].
    w_mat = jnp.transpose(asp_proj, (1, 0, 2)).reshape(D, AH)      # (D, A*H1)

    # Combine matrix: row (shift d, aspect a, h) x column (scale s, aspect a')
    # = aspEmbed[s][a, j, h] with j = d + w_s//2 when that window position
    # exists and a == a', else 0.
    eye_a = jnp.eye(A, dtype=jnp.float32)
    comb_rows = []
    for d in shifts:
        per_scale = []
        for s, w in enumerate(windows):
            j = d + w // 2
            if 0 <= j < w:
                e_sj = asp_embs[s][:, j, :].astype(jnp.float32)    # (A, H)
                blk = e_sj[:, :, None] * eye_a[:, None, :]         # (A, H, A)
            else:
                blk = jnp.zeros((A, H, A), jnp.float32)
            per_scale.append(blk)
        comb_rows.append(jnp.concatenate(per_scale, axis=-1).reshape(AH, S * A))
    comb = jnp.concatenate(comb_rows, axis=0)                      # (n_d*AH, S*A)

    # Expand matrix: scale-average (1/S) + broadcast aspect a's attention over
    # its own H1 columns (replaces the former in-kernel iota/where mask).
    expand_np = np.zeros((S, A, A, H), np.float32)
    for a in range(A):
        expand_np[:, a, a, :] = 1.0 / S
    expand = jnp.asarray(expand_np.reshape(S * A, AH))             # (S*A, A*H1)

    # Validity of each zero-padded window shift per in-step document position.
    pos = np.arange(G * L) % L
    mask_np = np.stack([((pos + d >= 0) & (pos + d < L)).astype(np.float32)
                        for d in shifts], axis=1)                  # (G*L, n_d)
    shift_mask = jnp.asarray(mask_np)

    rep = pl.pallas_call(
        functools.partial(_arl_kernel, G, L, shifts),
        grid=(n_blocks,),                                          # G docs/step
        in_specs=[
            pl.BlockSpec((G, L, D), lambda i: (i, 0, 0)),          # documents
            pl.BlockSpec((D, AH), lambda i: (0, 0)),               # aspProj
            pl.BlockSpec((n_d * AH, S * A), lambda i: (0, 0)),     # combine
            pl.BlockSpec((S * A, AH), lambda i: (0, 0)),           # expand
            pl.BlockSpec((G * L, n_d), lambda i: (0, 0)),          # shift mask
        ],
        out_specs=pl.BlockSpec((1, 1, G * AH), lambda i: (i, 0, 0)),
        out_shape=jax.ShapeDtypeStruct((n_blocks, 1, G * AH), jnp.float32),
        compiler_params=pltpu.CompilerParams(
            dimension_semantics=("parallel",)),                    # 2-TC shard
    )(doc_embed, w_mat, comb, expand, shift_mask)

    return rep.reshape(Npad, A, H)[:N]                             # (N, A, H1)


# ------------------------------- full forward ---------------------------------
def msanr_forward(params, batch_uid, batch_iid):
    # Embedding lookups (gathers) stay in plain JAX (glue).
    user_ids = params["uid_userDoc"][batch_uid]                    # (B, L) int32
    item_ids = params["iid_itemDoc"][batch_iid]
    user_embed = params["wid_wEmbed"][user_ids]                    # (B, L, D)
    item_embed = params["wid_wEmbed"][item_ids]

    # One merged ARL pass over user + item documents (single pallas_call).
    doc_all = jnp.concatenate([user_embed, item_embed], axis=0)    # (2B, L, D)
    rep_all = msanr_arl(doc_all, params["aspProj"], params["aspEmbed"])
    B = batch_uid.shape[0]
    u_rep, i_rep = rep_all[:B], rep_all[B:]                        # (B, A, H1)

    # Rating predictor: two tiny (H1, H1) FCs + offsets; fused by XLA under jit.
    u = jax.nn.relu(jnp.einsum('bah,hk->bak', u_rep, params["userFC_w"])
                    + params["userFC_b"])
    v = jax.nn.relu(jnp.einsum('bah,hk->bak', i_rep, params["itemFC_w"])
                    + params["itemFC_b"])
    pred = jnp.sum(u * v, axis=(1, 2))[:, None]                    # (B, 1)
    pred = (pred + params["uid_userOffset"][batch_uid]
            + params["iid_itemOffset"][batch_iid]
            + params["globalOffset"].reshape(()))
    return pred                                                    # (B, 1)


# ------------------------------ pure-JAX reference ----------------------------
def _ref_arl(doc_embed, asp_proj, asp_embs):
    B, L, D = doc_embed.shape
    A = asp_proj.shape[0]
    reps = []
    for a in range(A):
        proj = jnp.einsum('bld,dh->blh', doc_embed, asp_proj[a])
        rep_acc = jnp.zeros((B, proj.shape[-1]), jnp.float32)
        for s, w in enumerate(WINDOWS):
            p = w // 2
            padded = jnp.pad(proj, ((0, 0), (p, p), (0, 0)))
            win = jnp.stack([padded[:, j:j + L, :] for j in range(w)], axis=2)
            score = jnp.einsum('blwh,wh->bl', win, asp_embs[s][a])
            attn = jax.nn.softmax(score, axis=1)
            rep_acc = rep_acc + jnp.einsum('bl,blh->bh', attn, proj)
        reps.append(rep_acc / len(WINDOWS))
    return jnp.stack(reps, axis=1)                                 # (B, A, H1)


def _ref_forward(params, batch_uid, batch_iid):
    user_ids = params["uid_userDoc"][batch_uid]
    item_ids = params["iid_itemDoc"][batch_iid]
    user_embed = params["wid_wEmbed"][user_ids]
    item_embed = params["wid_wEmbed"][item_ids]
    u_rep = _ref_arl(user_embed, params["aspProj"], params["aspEmbed"])
    i_rep = _ref_arl(item_embed, params["aspProj"], params["aspEmbed"])
    u = jax.nn.relu(jnp.einsum('bah,hk->bak', u_rep, params["userFC_w"])
                    + params["userFC_b"])
    v = jax.nn.relu(jnp.einsum('bah,hk->bak', i_rep, params["itemFC_w"])
                    + params["itemFC_b"])
    pred = jnp.sum(u * v, axis=(1, 2))[:, None]
    pred = (pred + params["uid_userOffset"][batch_uid]
            + params["iid_itemOffset"][batch_iid]
            + params["globalOffset"].reshape(()))
    return pred                                                    # (B, 1)


# ------------------------------ parameter init --------------------------------
def init_params(key):
    ks = jax.random.split(key, 10)
    p = {}
    # document id tables stored as int32 (frozen embeddings in the reference)
    p["uid_userDoc"] = jax.random.randint(
        ks[0], (NUM_USERS, MAX_DOC_LEN), 0, VOCAB_SIZE, dtype=jnp.int32)
    p["iid_itemDoc"] = jax.random.randint(
        ks[1], (NUM_ITEMS, MAX_DOC_LEN), 0, VOCAB_SIZE, dtype=jnp.int32)
    p["wid_wEmbed"] = 0.1 * jax.random.normal(
        ks[2], (VOCAB_SIZE, WORD_EMBED_DIM), jnp.float32)
    p["aspProj"] = 0.1 * jax.random.normal(
        ks[3], (NUM_ASPECTS, WORD_EMBED_DIM, H1), jnp.float32)
    p["aspEmbed"] = [0.1 * jax.random.normal(k, (NUM_ASPECTS, w, H1), jnp.float32)
                     for k, w in zip(jax.random.split(ks[4], len(WINDOWS)), WINDOWS)]
    p["userFC_w"] = 0.1 * jax.random.normal(ks[5], (H1, H1), jnp.float32)
    p["userFC_b"] = jnp.zeros((1, H1), jnp.float32)
    p["itemFC_w"] = 0.1 * jax.random.normal(ks[6], (H1, H1), jnp.float32)
    p["itemFC_b"] = jnp.zeros((1, H1), jnp.float32)
    p["uid_userOffset"] = 0.1 * jax.random.normal(ks[7], (NUM_USERS, 1), jnp.float32)
    p["iid_itemOffset"] = 0.1 * jax.random.normal(ks[8], (NUM_ITEMS, 1), jnp.float32)
    p["globalOffset"] = jnp.full((1, 1, 1), 3.0, jnp.float32)
    return p


# ------------------------------------ main -------------------------------------
if __name__ == "__main__":
    key = jax.random.PRNGKey(0)
    params = init_params(key)

    batch_uid = jnp.arange(BATCH, dtype=jnp.int32) % NUM_USERS
    batch_iid = (jnp.arange(BATCH, dtype=jnp.int32) * 3 + 1) % NUM_ITEMS

    fwd = jax.jit(msanr_forward)
    rating = jax.block_until_ready(fwd(params, batch_uid, batch_iid))

    ref = jax.block_until_ready(_ref_forward(params, batch_uid, batch_iid))
    assert rating.shape == (BATCH, 1)
    np.testing.assert_allclose(np.asarray(rating), np.asarray(ref),
                               rtol=5e-3, atol=5e-3)
    print("KERNEL_OK")
</pallas_src>

<mosaic_0001>
module attributes {stable_mosaic.version = 11 : i64} {
  func.func @_arl_kernel(%arg0: i32, %arg1: memref<8x32x16xf32, #tpu.memory_space<vmem>>, %arg2: memref<16x32xf32, #tpu.memory_space<vmem>>, %arg3: memref<160x12xf32, #tpu.memory_space<vmem>>, %arg4: memref<12x32xf32, #tpu.memory_space<vmem>>, %arg5: memref<256x5xf32, #tpu.memory_space<vmem>>, %arg6: memref<1x1x256xf32, #tpu.memory_space<vmem>>) attributes {dimension_semantics = [#tpu.dimension_semantics<parallel>], iteration_bounds = array<i64: 2>, scalar_prefetch = 0 : i64, scratch_operands = 0 : i64, tpu.core_type = #tpu.core_type<tc>, window_params = [{transform_indices = @transform_0, window_bounds = array<i64: 8, 32, 16>}, {pipeline_mode = #tpu.pipeline_mode<synchronous>, transform_indices = @transform_1, window_bounds = array<i64: 16, 32>}, {pipeline_mode = #tpu.pipeline_mode<synchronous>, transform_indices = @transform_2, window_bounds = array<i64: 160, 12>}, {pipeline_mode = #tpu.pipeline_mode<synchronous>, transform_indices = @transform_3, window_bounds = array<i64: 12, 32>}, {pipeline_mode = #tpu.pipeline_mode<synchronous>, transform_indices = @transform_4, window_bounds = array<i64: 256, 5>}, {transform_indices = @transform_5, window_bounds = array<i64: 1, 1, 256>}]} {
    %c0 = arith.constant 0 : index
    %c0_0 = arith.constant 0 : index
    %c0_1 = arith.constant 0 : index
    %0 = vector.load %arg1[%c0, %c0_0, %c0_1] : memref<8x32x16xf32, #tpu.memory_space<vmem>>, vector<8x32x16xf32>
    %1 = vector.shape_cast %0 : vector<8x32x16xf32> to vector<256x16xf32>
    %c0_2 = arith.constant 0 : index
    %c0_3 = arith.constant 0 : index
    %2 = vector.load %arg2[%c0_2, %c0_3] : memref<16x32xf32, #tpu.memory_space<vmem>>, vector<16x32xf32>
    %cst = arith.constant dense<0.000000e+00> : vector<256x32xf32>
    %3 = tpu.matmul %1, %2, %cst {dimension_numbers = #tpu.dot_dimension_numbers<[1], [0], [0], [1], [0, 0, 1, 1], [], []>} : vector<256x16xf32>, vector<16x32xf32>, vector<256x32xf32> -> vector<256x32xf32>
    %c2_i32 = arith.constant 2 : i32
    %4 = tpu.dynamic_rotate %3 by %c2_i32 dim 0 : vector<256x32xf32>, i32 -> vector<256x32xf32>
    %c0_4 = arith.constant 0 : index
    %c0_5 = arith.constant 0 : index
    %5 = vector.load %arg5[%c0_4, %c0_5] : memref<256x5xf32, #tpu.memory_space<vmem>>, vector<256x1xf32>
    %6 = vector.broadcast %5 : vector<256x1xf32> to vector<256x32xf32>
    %7 = arith.mulf %4, %6 : vector<256x32xf32>
    %c1_i32 = arith.constant 1 : i32
    %8 = tpu.dynamic_rotate %3 by %c1_i32 dim 0 : vector<256x32xf32>, i32 -> vector<256x32xf32>
    %c0_6 = arith.constant 0 : index
    %c1 = arith.constant 1 : index
    %9 = vector.load %arg5[%c0_6, %c1] : memref<256x5xf32, #tpu.memory_space<vmem>>, vector<256x1xf32>
    %10 = vector.broadcast %9 : vector<256x1xf32> to vector<256x32xf32>
    %11 = arith.mulf %8, %10 : vector<256x32xf32>
    %c255_i32 = arith.constant 255 : i32
    %12 = tpu.dynamic_rotate %3 by %c255_i32 dim 0 : vector<256x32xf32>, i32 -> vector<256x32xf32>
    %c0_7 = arith.constant 0 : index
    %c3 = arith.constant 3 : index
    %13 = vector.load %arg5[%c0_7, %c3] : memref<256x5xf32, #tpu.memory_space<vmem>>, vector<256x1xf32>
    %14 = vector.broadcast %13 : vector<256x1xf32> to vector<256x32xf32>
    %15 = arith.mulf %12, %14 : vector<256x32xf32>
    %c254_i32 = arith.constant 254 : i32
    %16 = tpu.dynamic_rotate %3 by %c254_i32 dim 0 : vector<256x32xf32>, i32 -> vector<256x32xf32>
    %c0_8 = arith.constant 0 : index
    %c4 = arith.constant 4 : index
    %17 = vector.load %arg5[%c0_8, %c4] : memref<256x5xf32, #tpu.memory_space<vmem>>, vector<256x1xf32>
    %18 = vector.broadcast %17 : vector<256x1xf32> to vector<256x32xf32>
    %19 = arith.mulf %16, %18 : vector<256x32xf32>
    %20 = tpu.concatenate %7, %11, %3, %15, %19 in 1 : vector<256x32xf32>, vector<256x32xf32>, vector<256x32xf32>, vector<256x32xf32>, vector<256x32xf32> -> vector<256x160xf32>
    %c0_9 = arith.constant 0 : index
    %c0_10 = arith.constant 0 : index
    %21 = vector.load %arg3[%c0_9, %c0_10] : memref<160x12xf32, #tpu.memory_space<vmem>>, vector<160x12xf32>
    %cst_11 = arith.constant dense<0.000000e+00> : vector<256x12xf32>
    %22 = tpu.matmul %20, %21, %cst_11 {dimension_numbers = #tpu.dot_dimension_numbers<[1], [0], [0], [1], [0, 0, 1, 1], [], []>} : vector<256x160xf32>, vector<160x12xf32>, vector<256x12xf32> -> vector<256x12xf32>
    %23 = vector.extract_strided_slice %22 {offsets = [0, 0], sizes = [32, 12], strides = [1, 1]} : vector<256x12xf32> to vector<32x12xf32>
    %cst_12 = arith.constant dense<0xFF800000> : vector<12xf32>
    %24 = vector.multi_reduction <maximumf>, %23, %cst_12 [0] : vector<32x12xf32> to vector<12xf32>
    %25 = vector.shape_cast %24 : vector<12xf32> to vector<1x12xf32>
    %26 = vector.broadcast %25 : vector<1x12xf32> to vector<32x12xf32>
    %27 = arith.subf %23, %26 : vector<32x12xf32>
    %28 = math.exp %27 : vector<32x12xf32>
    %cst_13 = arith.constant dense<0.000000e+00> : vector<12xf32>
    %29 = vector.multi_reduction <add>, %28, %cst_13 [0] : vector<32x12xf32> to vector<12xf32>
    %30 = vector.shape_cast %29 : vector<12xf32> to vector<1x12xf32>
    %31 = tpu.reciprocal %30 : vector<1x12xf32> -> vector<1x12xf32>
    %32 = vector.broadcast %31 : vector<1x12xf32> to vector<32x12xf32>
    %33 = arith.mulf %28, %32 : vector<32x12xf32>
    %34 = vector.extract_strided_slice %22 {offsets = [32, 0], sizes = [32, 12], strides = [1, 1]} : vector<256x12xf32> to vector<32x12xf32>
    %cst_14 = arith.constant dense<0xFF800000> : vector<12xf32>
    %35 = vector.multi_reduction <maximumf>, %34, %cst_14 [0] : vector<32x12xf32> to vector<12xf32>
    %36 = vector.shape_cast %35 : vector<12xf32> to vector<1x12xf32>
    %37 = vector.broadcast %36 : vector<1x12xf32> to vector<32x12xf32>
    %38 = arith.subf %34, %37 : vector<32x12xf32>
    %39 = math.exp %38 : vector<32x12xf32>
    %cst_15 = arith.constant dense<0.000000e+00> : vector<12xf32>
    %40 = vector.multi_reduction <add>, %39, %cst_15 [0] : vector<32x12xf32> to vector<12xf32>
    %41 = vector.shape_cast %40 : vector<12xf32> to vector<1x12xf32>
    %42 = tpu.reciprocal %41 : vector<1x12xf32> -> vector<1x12xf32>
    %43 = vector.broadcast %42 : vector<1x12xf32> to vector<32x12xf32>
    %44 = arith.mulf %39, %43 : vector<32x12xf32>
    %45 = vector.extract_strided_slice %22 {offsets = [64, 0], sizes = [32, 12], strides = [1, 1]} : vector<256x12xf32> to vector<32x12xf32>
    %cst_16 = arith.constant dense<0xFF800000> : vector<12xf32>
    %46 = vector.multi_reduction <maximumf>, %45, %cst_16 [0] : vector<32x12xf32> to vector<12xf32>
    %47 = vector.shape_cast %46 : vector<12xf32> to vector<1x12xf32>
    %48 = vector.broadcast %47 : vector<1x12xf32> to vector<32x12xf32>
    %49 = arith.subf %45, %48 : vector<32x12xf32>
    %50 = math.exp %49 : vector<32x12xf32>
    %cst_17 = arith.constant dense<0.000000e+00> : vector<12xf32>
    %51 = vector.multi_reduction <add>, %50, %cst_17 [0] : vector<32x12xf32> to vector<12xf32>
    %52 = vector.shape_cast %51 : vector<12xf32> to vector<1x12xf32>
    %53 = tpu.reciprocal %52 : vector<1x12xf32> -> vector<1x12xf32>
    %54 = vector.broadcast %53 : vector<1x12xf32> to vector<32x12xf32>
    %55 = arith.mulf %50, %54 : vector<32x12xf32>
    %56 = vector.extract_strided_slice %22 {offsets = [96, 0], sizes = [32, 12], strides = [1, 1]} : vector<256x12xf32> to vector<32x12xf32>
    %cst_18 = arith.constant dense<0xFF800000> : vector<12xf32>
    %57 = vector.multi_reduction <maximumf>, %56, %cst_18 [0] : vector<32x12xf32> to vector<12xf32>
    %58 = vector.shape_cast %57 : vector<12xf32> to vector<1x12xf32>
    %59 = vector.broadcast %58 : vector<1x12xf32> to vector<32x12xf32>
    %60 = arith.subf %56, %59 : vector<32x12xf32>
    %61 = math.exp %60 : vector<32x12xf32>
    %cst_19 = arith.constant dense<0.000000e+00> : vector<12xf32>
    %62 = vector.multi_reduction <add>, %61, %cst_19 [0] : vector<32x12xf32> to vector<12xf32>
    %63 = vector.shape_cast %62 : vector<12xf32> to vector<1x12xf32>
    %64 = tpu.reciprocal %63 : vector<1x12xf32> -> vector<1x12xf32>
    %65 = vector.broadcast %64 : vector<1x12xf32> to vector<32x12xf32>
    %66 = arith.mulf %61, %65 : vector<32x12xf32>
    %67 = vector.extract_strided_slice %22 {offsets = [128, 0], sizes = [32, 12], strides = [1, 1]} : vector<256x12xf32> to vector<32x12xf32>
    %cst_20 = arith.constant dense<0xFF800000> : vector<12xf32>
    %68 = vector.multi_reduction <maximumf>, %67, %cst_20 [0] : vector<32x12xf32> to vector<12xf32>
    %69 = vector.shape_cast %68 : vector<12xf32> to vector<1x12xf32>
    %70 = vector.broadcast %69 : vector<1x12xf32> to vector<32x12xf32>
    %71 = arith.subf %67, %70 : vector<32x12xf32>
    %72 = math.exp %71 : vector<32x12xf32>
    %cst_21 = arith.constant dense<0.000000e+00> : vector<12xf32>
    %73 = vector.multi_reduction <add>, %72, %cst_21 [0] : vector<32x12xf32> to vector<12xf32>
    %74 = vector.shape_cast %73 : vector<12xf32> to vector<1x12xf32>
    %75 = tpu.reciprocal %74 : vector<1x12xf32> -> vector<1x12xf32>
    %76 = vector.broadcast %75 : vector<1x12xf32> to vector<32x12xf32>
    %77 = arith.mulf %72, %76 : vector<32x12xf32>
    %78 = vector.extract_strided_slice %22 {offsets = [160, 0], sizes = [32, 12], strides = [1, 1]} : vector<256x12xf32> to vector<32x12xf32>
    %cst_22 = arith.constant dense<0xFF800000> : vector<12xf32>
    %79 = vector.multi_reduction <maximumf>, %78, %cst_22 [0] : vector<32x12xf32> to vector<12xf32>
    %80 = vector.shape_cast %79 : vector<12xf32> to vector<1x12xf32>
    %81 = vector.broadcast %80 : vector<1x12xf32> to vector<32x12xf32>
    %82 = arith.subf %78, %81 : vector<32x12xf32>
    %83 = math.exp %82 : vector<32x12xf32>
    %cst_23 = arith.constant dense<0.000000e+00> : vector<12xf32>
    %84 = vector.multi_reduction <add>, %83, %cst_23 [0] : vector<32x12xf32> to vector<12xf32>
    %85 = vector.shape_cast %84 : vector<12xf32> to vector<1x12xf32>
    %86 = tpu.reciprocal %85 : vector<1x12xf32> -> vector<1x12xf32>
    %87 = vector.broadcast %86 : vector<1x12xf32> to vector<32x12xf32>
    %88 = arith.mulf %83, %87 : vector<32x12xf32>
    %89 = vector.extract_strided_slice %22 {offsets = [192, 0], sizes = [32, 12], strides = [1, 1]} : vector<256x12xf32> to vector<32x12xf32>
    %cst_24 = arith.constant dense<0xFF800000> : vector<12xf32>
    %90 = vector.multi_reduction <maximumf>, %89, %cst_24 [0] : vector<32x12xf32> to vector<12xf32>
    %91 = vector.shape_cast %90 : vector<12xf32> to vector<1x12xf32>
    %92 = vector.broadcast %91 : vector<1x12xf32> to vector<32x12xf32>
    %93 = arith.subf %89, %92 : vector<32x12xf32>
    %94 = math.exp %93 : vector<32x12xf32>
    %cst_25 = arith.constant dense<0.000000e+00> : vector<12xf32>
    %95 = vector.multi_reduction <add>, %94, %cst_25 [0] : vector<32x12xf32> to vector<12xf32>
    %96 = vector.shape_cast %95 : vector<12xf32> to vector<1x12xf32>
    %97 = tpu.reciprocal %96 : vector<1x12xf32> -> vector<1x12xf32>
    %98 = vector.broadcast %97 : vector<1x12xf32> to vector<32x12xf32>
    %99 = arith.mulf %94, %98 : vector<32x12xf32>
    %100 = vector.extract_strided_slice %22 {offsets = [224, 0], sizes = [32, 12], strides = [1, 1]} : vector<256x12xf32> to vector<32x12xf32>
    %cst_26 = arith.constant dense<0xFF800000> : vector<12xf32>
    %101 = vector.multi_reduction <maximumf>, %100, %cst_26 [0] : vector<32x12xf32> to vector<12xf32>
    %102 = vector.shape_cast %101 : vector<12xf32> to vector<1x12xf32>
    %103 = vector.broadcast %102 : vector<1x12xf32> to vector<32x12xf32>
    %104 = arith.subf %100, %103 : vector<32x12xf32>
    %105 = math.exp %104 : vector<32x12xf32>
    %cst_27 = arith.constant dense<0.000000e+00> : vector<12xf32>
    %106 = vector.multi_reduction <add>, %105, %cst_27 [0] : vector<32x12xf32> to vector<12xf32>
    %107 = vector.shape_cast %106 : vector<12xf32> to vector<1x12xf32>
    %108 = tpu.reciprocal %107 : vector<1x12xf32> -> vector<1x12xf32>
    %109 = vector.broadcast %108 : vector<1x12xf32> to vector<32x12xf32>
    %110 = arith.mulf %105, %109 : vector<32x12xf32>
    %111 = tpu.concatenate %33, %44, %55, %66, %77, %88, %99, %110 in 0 : vector<32x12xf32>, vector<32x12xf32>, vector<32x12xf32>, vector<32x12xf32>, vector<32x12xf32>, vector<32x12xf32>, vector<32x12xf32>, vector<32x12xf32> -> vector<256x12xf32>
    %c0_28 = arith.constant 0 : index
    %c0_29 = arith.constant 0 : index
    %112 = vector.load %arg4[%c0_28, %c0_29] : memref<12x32xf32, #tpu.memory_space<vmem>>, vector<12x32xf32>
    %cst_30 = arith.constant dense<0.000000e+00> : vector<256x32xf32>
    %113 = tpu.matmul %111, %112, %cst_30 {dimension_numbers = #tpu.dot_dimension_numbers<[1], [0], [0], [1], [0, 0, 1, 1], [], []>} : vector<256x12xf32>, vector<12x32xf32>, vector<256x32xf32> -> vector<256x32xf32>
    %114 = arith.mulf %113, %3 : vector<256x32xf32>
    %115 = vector.extract_strided_slice %114 {offsets = [0, 0], sizes = [32, 32], strides = [1, 1]} : vector<256x32xf32> to vector<32x32xf32>
    %cst_31 = arith.constant dense<0.000000e+00> : vector<32xf32>
    %116 = vector.multi_reduction <add>, %115, %cst_31 [0] : vector<32x32xf32> to vector<32xf32>
    %117 = vector.shape_cast %116 : vector<32xf32> to vector<1x32xf32>
    %118 = vector.extract_strided_slice %114 {offsets = [32, 0], sizes = [32, 32], strides = [1, 1]} : vector<256x32xf32> to vector<32x32xf32>
    %cst_32 = arith.constant dense<0.000000e+00> : vector<32xf32>
    %119 = vector.multi_reduction <add>, %118, %cst_32 [0] : vector<32x32xf32> to vector<32xf32>
    %120 = vector.shape_cast %119 : vector<32xf32> to vector<1x32xf32>
    %121 = vector.extract_strided_slice %114 {offsets = [64, 0], sizes = [32, 32], strides = [1, 1]} : vector<256x32xf32> to vector<32x32xf32>
    %cst_33 = arith.constant dense<0.000000e+00> : vector<32xf32>
    %122 = vector.multi_reduction <add>, %121, %cst_33 [0] : vector<32x32xf32> to vector<32xf32>
    %123 = vector.shape_cast %122 : vector<32xf32> to vector<1x32xf32>
    %124 = vector.extract_strided_slice %114 {offsets = [96, 0], sizes = [32, 32], strides = [1, 1]} : vector<256x32xf32> to vector<32x32xf32>
    %cst_34 = arith.constant dense<0.000000e+00> : vector<32xf32>
    %125 = vector.multi_reduction <add>, %124, %cst_34 [0] : vector<32x32xf32> to vector<32xf32>
    %126 = vector.shape_cast %125 : vector<32xf32> to vector<1x32xf32>
    %127 = vector.extract_strided_slice %114 {offsets = [128, 0], sizes = [32, 32], strides = [1, 1]} : vector<256x32xf32> to vector<32x32xf32>
    %cst_35 = arith.constant dense<0.000000e+00> : vector<32xf32>
    %128 = vector.multi_reduction <add>, %127, %cst_35 [0] : vector<32x32xf32> to vector<32xf32>
    %129 = vector.shape_cast %128 : vector<32xf32> to vector<1x32xf32>
    %130 = vector.extract_strided_slice %114 {offsets = [160, 0], sizes = [32, 32], strides = [1, 1]} : vector<256x32xf32> to vector<32x32xf32>
    %cst_36 = arith.constant dense<0.000000e+00> : vector<32xf32>
    %131 = vector.multi_reduction <add>, %130, %cst_36 [0] : vector<32x32xf32> to vector<32xf32>
    %132 = vector.shape_cast %131 : vector<32xf32> to vector<1x32xf32>
    %133 = vector.extract_strided_slice %114 {offsets = [192, 0], sizes = [32, 32], strides = [1, 1]} : vector<256x32xf32> to vector<32x32xf32>
    %cst_37 = arith.constant dense<0.000000e+00> : vector<32xf32>
    %134 = vector.multi_reduction <add>, %133, %cst_37 [0] : vector<32x32xf32> to vector<32xf32>
    %135 = vector.shape_cast %134 : vector<32xf32> to vector<1x32xf32>
    %136 = vector.extract_strided_slice %114 {offsets = [224, 0], sizes = [32, 32], strides = [1, 1]} : vector<256x32xf32> to vector<32x32xf32>
    %cst_38 = arith.constant dense<0.000000e+00> : vector<32xf32>
    %137 = vector.multi_reduction <add>, %136, %cst_38 [0] : vector<32x32xf32> to vector<32xf32>
    %138 = vector.shape_cast %137 : vector<32xf32> to vector<1x32xf32>
    %139 = tpu.concatenate %117, %120, %123, %126, %129, %132, %135, %138 in 1 : vector<1x32xf32>, vector<1x32xf32>, vector<1x32xf32>, vector<1x32xf32>, vector<1x32xf32>, vector<1x32xf32>, vector<1x32xf32>, vector<1x32xf32> -> vector<1x256xf32>
    %c0_39 = arith.constant 0 : index
    %c0_40 = arith.constant 0 : index
    %c0_41 = arith.constant 0 : index
    %140 = vector.load %arg6[%c0_39, %c0_40, %c0_41] : memref<1x1x256xf32, #tpu.memory_space<vmem>>, vector<1x1x256xf32>
    %141 = vector.shape_cast %140 : vector<1x1x256xf32> to vector<1x256xf32>
    %142 = vector.shape_cast %139 : vector<1x256xf32> to vector<1x1x256xf32>
    tpu.vector_store %arg6[%c0_39, %c0_40, %c0_41], %142 {strides = array<i32>} : memref<1x1x256xf32, #tpu.memory_space<vmem>>, vector<1x1x256xf32>,
    return
  }
  func.func @transform_0(%arg0: i32) -> (i32, i32, i32) {
    %c0_i32 = arith.constant 0 : i32
    %c0_i32_0 = arith.constant 0 : i32
    %c0_i32_1 = arith.constant 0 : i32
    return %arg0, %c0_i32, %c0_i32_0 : i32, i32, i32
  }
  func.func @transform_1(%arg0: i32) -> (i32, i32) {
    %c0_i32 = arith.constant 0 : i32
    %c0_i32_0 = arith.constant 0 : i32
    %c0_i32_1 = arith.constant 0 : i32
    return %c0_i32, %c0_i32_0 : i32, i32
  }
  func.func @transform_2(%arg0: i32) -> (i32, i32) {
    %c0_i32 = arith.constant 0 : i32
    %c0_i32_0 = arith.constant 0 : i32
    %c0_i32_1 = arith.constant 0 : i32
    return %c0_i32, %c0_i32_0 : i32, i32
  }
  func.func @transform_3(%arg0: i32) -> (i32, i32) {
    %c0_i32 = arith.constant 0 : i32
    %c0_i32_0 = arith.constant 0 : i32
    %c0_i32_1 = arith.constant 0 : i32
    return %c0_i32, %c0_i32_0 : i32, i32
  }
  func.func @transform_4(%arg0: i32) -> (i32, i32) {
    %c0_i32 = arith.constant 0 : i32
    %c0_i32_0 = arith.constant 0 : i32
    %c0_i32_1 = arith.constant 0 : i32
    return %c0_i32, %c0_i32_0 : i32, i32
  }
  func.func @transform_5(%arg0: i32) -> (i32, i32, i32) {
    %c0_i32 = arith.constant 0 : i32
    %c0_i32_0 = arith.constant 0 : i32
    %c0_i32_1 = arith.constant 0 : i32
    return %arg0, %c0_i32, %c0_i32_0 : i32, i32, i32
  }
}

</mosaic_0001>

<bundles_post_ra>
// kernel: msanr_forward.1
= control target key start
LH: loop header
LB: loop body
LE: loop exit
PB: predicated region body
PF: predicated region fallthrough
CT: control target
= control target key end

     0   :  { %s4053_s18 = smov 0   ;;  %s6208_s0 = inlined_call_operand.vmem [shape: f32[16,32,16], index: 0, kind: input, shape index: {}]   ;;  %s6209_s1 = inlined_call_operand.vmem [shape: f32[16,32], index: 1, kind: input, shape index: {}]   ;;  %s6210_s2 = inlined_call_operand.vmem [shape: f32[160,12], index: 2, kind: input, shape index: {}]   ;;  %s6211_s3 = inlined_call_operand.vmem [shape: f32[12,32], index: 3, kind: input, shape index: {}]   ;;  %s6212_s4 = inlined_call_operand.vmem [shape: f32[256,5], index: 4, kind: input, shape index: {}]   ;;  %s6213_s5 = inlined_call_operand.vmem [shape: f32[2,1,256], index: 5, kind: output, shape index: {}]  }
   0x1 LB: > { %s4059_s19 = sadd.s32 4294967295, %s4012_s18   ;;  %p3292_p0 = scmp.ge.s32.totalorder %s4012_s18, 1  ;;  %s4012_s18 = sphi %s4053_s18, %s15_s18  }
   0x2   : > { %p189_p1 = scmp.lt.s32.totalorder %s4012_s18, 3 }
   0x4   : > { %p190_p2 = pnand %p3292_p0, %p189_p1 }
   0x6   : > { %193 = sbr.rel (%p190_p2) target bundleno = 1219 (0x4c3), region = 40 }
   0xb   : > { %v4066_v0 = vld [vmem:[%s6212_s4 + $0x28] sm:$0xff]  ;;  %v260_v2 = vld [vmem:[%s6209_s1] sm:$0xff]  ;;  %s3293_s26 = sshll.u32 %s4059_s19, 3  ;;  %v6214_v3 = vmov 1   ;;  %v6217_v5 = vmov 3   ;;  %vm262_vm0 = vcmask 130048  }
   0xc   : > { %v261_v1 = vld [vmem:[%s6209_s1 + $0x8] sm:$0xff]  ;;  %3627 = vset.pattern.permute.xlu1 %v6214_v3  ;;  %p218_p3 = scmp.lt.s32.totalorder %s3293_s26, 15  ;;  %v4079_v4 = vld [vmem:[%s6212_s4 + $0x20] sm:$0xff]  ;;  %3626 = vset.pattern.permute.xlu0 %v6217_v5  ;;  %v4093_v6 = vld [vmem:[%s6212_s4 + $0x30] sm:$0xff]  ;;  %v6215_v40 = vmov 4   ;;  %v6219_v62 = vmov 0  }
   0xd   : > { %3465 = vmatprep.subr.mxu0 %v261_v1  ;;  %961 = vperm.xlu1 %3627, %v4066_v0   ;;  %v4108_v11 = vld [vmem:[%s6212_s4 + $0x38] sm:$0xff]  ;;  %v4119_v14 = vld [vmem:[%s6212_s4 + $0x40] sm:$0xff]  ;;  %v4130_v17 = vld [vmem:[%s6212_s4 + $0x48] sm:$0xff]  ;;  %vm1934_vm2 = vcmask 261120   ;;  %s4019_s30 = smov 96   ;;  %s4020_s13 = smov 64  }
   0xe   : > { %3466 = vmatpush3.msra.mxu0 %v261_v1  ;;  %s6521_s26 = smov (!%p218_p3, %s3293_s26), 15  ;;  %1182 = vperm.xlu0 %3626, %v4079_v4   ;;  %v4141_v20 = vld [vmem:[%s6212_s4 + $0x50] sm:$0xff]  ;;  %v4152_v23 = vld [vmem:[%s6212_s4 + $0x58] sm:$0xff]  ;;  %v4163_v26 = vld [vmem:[%s6212_s4 + $0x60] sm:$0xff]  ;;  %s4021_s10 = smov 32   ;;  %vm1967_vm6 = vcmask 523264  }
   0xf   : > { %3467 = vmatprep.subr.mxu0 %v260_v2  ;;  %s3396_s29 = sshll.u32 %s6521_s26, 5  ;;  %v4174_v29 = vld [vmem:[%s6212_s4 + $0x68] sm:$0xff]  ;;  %v4194_v34 = vld [vmem:[%s6212_s4] sm:$0xff]  ;;  %v4199_v35 = vld [vmem:[%s6212_s4 + $0x18] sm:$0xff]  ;;  %vm2000_vm7 = vcmask 785408   ;;  %vm2374_vm8 = vcmask 97280  }
  0x10   : > { %3468 = vmatpush3.msra.mxu0 %v260_v2  ;;  %s4088_s7 = scalar_lea.vmem %s6208_s0, %s3396_s29  ;;  %v4183_v31 = vld [vmem:[%s6212_s4 + $0x8] sm:$0xff]  ;;  %6310 = vst [vmem:[#allocation2_spill] sm:$0xff] %v4199_v35  ;;  %v4218_v41 = vld [vmem:[%s6212_s4 + $0x70] sm:$0xff]  ;;  %v4231_v45 = vld [vmem:[%s6212_s4 + $0x78] sm:$0xff]  ;;  %vm2817_vm9 = vcmask 1043456   ;;  %p224_p4 = scmp.lt.s32.totalorder %s4059_s19, 1 }
  0x11   : > { %3628 = vset.pattern.permute.xlu1 %v6217_v5  ;;  %v228_v7 = vld [vmem:[%s4088_s7] sm:$0xff]  ;;  %v229_v8 = vld [vmem:[%s4088_s7 + $0x8] sm:$0xff]  ;;  %v230_v9 = vld [vmem:[%s4088_s7 + $0x10] sm:$0xff] }
  0x12   : > { %1186 = vperm.xlu1 %3628, %v4066_v0   ;;  %3469 = vmatprep.mubr.msk.f32.mxu0 %vm262_vm0, %v228_v7  ;;  %v231_v10 = vld [vmem:[%s4088_s7 + $0x18] sm:$0xff]  ;;  %v232_v12 = vld [vmem:[%s4088_s7 + $0x20] sm:$0xff]  ;;  %v233_v13 = vld [vmem:[%s4088_s7 + $0x28] sm:$0xff]  ;;  %s6523_s19 = smov (!%p224_p4, %s4059_s19), 1 }
  0x13   : > { %1190 = vperm.xlu0 %3626, %v4093_v6   ;;  %3470 = vmatmul.mubr.msk.f32.vlgmr.msra.gmra.mxu0 %vm262_vm0, %v229_v8  ;;  %v234_v15 = vld [vmem:[%s4088_s7 + $0x30] sm:$0xff]  ;;  %v235_v16 = vld [vmem:[%s4088_s7 + $0x38] sm:$0xff]  ;;  %v236_v18 = vld [vmem:[%s4088_s7 + $0x40] sm:$0xff] }
  0x14   : > { %3472 = vmatprep.mubr.msk.f32.mxu0 %vm262_vm0, %v230_v9  ;;  %v237_v19 = vld [vmem:[%s4088_s7 + $0x48] sm:$0xff]  ;;  %v238_v21 = vld [vmem:[%s4088_s7 + $0x50] sm:$0xff]  ;;  %v239_v22 = vld [vmem:[%s4088_s7 + $0x58] sm:$0xff] }
  0x15   : > { %v240_v24 = vld [vmem:[%s4088_s7 + $0x60] sm:$0xff]  ;;  %v241_v25 = vld [vmem:[%s4088_s7 + $0x68] sm:$0xff]  ;;  %v242_v27 = vld [vmem:[%s4088_s7 + $0x70] sm:$0xff] }
  0x16   : > { %3629 = vset.pattern.permute.xlu1 %v6214_v3  ;;  %v243_v28 = vld [vmem:[%s4088_s7 + $0x78] sm:$0xff]  ;;  %v244_v30 = vld [vmem:[%s4088_s7 + $0x80] sm:$0xff]  ;;  %v245_v32 = vld [vmem:[%s4088_s7 + $0x88] sm:$0xff] }
  0x17   : > { %965 = vperm.xlu1 %3629, %v4093_v6   ;;  %1194 = vperm.xlu0 %3626, %v4108_v11   ;;  %v246_v33 = vld [vmem:[%s4088_s7 + $0x90] sm:$0xff]  ;;  %v247_v36 = vld [vmem:[%s4088_s7 + $0x98] sm:$0xff]  ;;  %v248_v37 = vld [vmem:[%s4088_s7 + $0xa0] sm:$0xff] }
  0x18   : > { %3473 = vmatmul.mubr.msk.f32.gmra.mxu0 %vm262_vm0, %v231_v10  ;;  %v249_v38 = vld [vmem:[%s4088_s7 + $0xa8] sm:$0xff]  ;;  %v250_v39 = vld [vmem:[%s4088_s7 + $0xb0] sm:$0xff]  ;;  %v251_v42 = vld [vmem:[%s4088_s7 + $0xb8] sm:$0xff] }
  0x19   : > { %3475 = vmatprep.mubr.msk.f32.mxu0 %vm262_vm0, %v232_v12  ;;  %v252_v43 = vld [vmem:[%s4088_s7 + $0xc0] sm:$0xff]  ;;  %v253_v44 = vld [vmem:[%s4088_s7 + $0xc8] sm:$0xff]  ;;  %v254_v46 = vld [vmem:[%s4088_s7 + $0xd0] sm:$0xff] }
  0x1a   : > { %v255_v47 = vld [vmem:[%s4088_s7 + $0xd8] sm:$0xff]  ;;  %v256_v48 = vld [vmem:[%s4088_s7 + $0xe0] sm:$0xff]  ;;  %v257_v49 = vld [vmem:[%s4088_s7 + $0xe8] sm:$0xff] }
  0x1b   : > { %969 = vperm.xlu1 %3629, %v4108_v11   ;;  %1198 = vperm.xlu0 %3626, %v4119_v14   ;;  %v258_v50 = vld [vmem:[%s4088_s7 + $0xf0] sm:$0xff]  ;;  %v259_v52 = vld [vmem:[%s4088_s7 + $0xf8] sm:$0xff]  ;;  %v4267_v53 = vld [vmem:[%s6212_s4 + $0x80] sm:$0xff] }
  0x1c   : > { %3476 = vmatmul.mubr.msk.f32.gmra.mxu0 %vm262_vm0, %v233_v13  ;;  %v4252_v51 = vld [vmem:[%s6212_s4 + $0x10] sm:$0xff]  ;;  %v4274_v54 = vld [vmem:[%s6212_s4 + $0x88] sm:$0xff]  ;;  %v4291_v56 = vld [vmem:[%s6212_s4 + $0xa0] sm:$0xff] }
  0x1d   : > { %3478 = vmatprep.mubr.msk.f32.mxu0 %vm262_vm0, %v234_v15  ;;  %6311 = vst [vmem:[#allocation3_spill] sm:$0xff] %v4252_v51  ;;  %6312 = vst [vmem:[#allocation4_spill] sm:$0xff] %v4274_v54  ;;  %v4286_v55 = vld [vmem:[%s6212_s4 + $0x90] sm:$0xff]  ;;  %v4304_v58 = vld [vmem:[%s6212_s4 + $0xc0] sm:$0xff] }
  0x1e   : > { %6313 = vst [vmem:[#allocation5_spill] sm:$0xff] %v4286_v55  ;;  %6314 = vst [vmem:[#allocation6_spill] sm:$0xff] %v4291_v56  ;;  %v673_v57 = vld [vmem:[%s6212_s4 + $0xb0] sm:$0xff]  ;;  %v4309_v59 = vld [vmem:[%s6212_s4 + $0x98] sm:$0xff] }
  0x1f   : > { %973 = vperm.xlu1 %3629, %v4119_v14   ;;  %1202 = vperm.xlu0 %3626, %v4130_v17   ;;  %6315 = vst [vmem:[#allocation7_spill] sm:$0xff] %v4304_v58  ;;  %6316 = vst [vmem:[#allocation8_spill] sm:$0xff] %v4309_v59  ;;  %v4316_v60 = vld [vmem:[%s6212_s4 + $0xd0] sm:$0xff]  ;;  %v4323_v61 = vld [vmem:[%s6212_s4 + $0xe0] sm:$0xff] }
  0x20   : > { %3479 = vmatmul.mubr.msk.f32.gmra.mxu0 %vm262_vm0, %v235_v16  ;;  %6317 = vst [vmem:[#allocation9_spill] sm:$0xff] %v4323_v61  ;;  %v4331_v63 = vld [vmem:[%s6212_s4 + $0xe8] sm:$0xff]  ;;  %v4367_v13 = vld [vmem:[%s6212_s4 + $0xb8] sm:$0xff] }
  0x21   : > { %3481 = vmatprep.mubr.msk.f32.mxu0 %vm262_vm0, %v236_v18  ;;  %v672_v1 = vld [vmem:[%s6212_s4 + $0xa8] sm:$0xff]  ;;  %6318 = vst [vmem:[#allocation10_spill] sm:$0xff] %v4367_v13 }
  0x23   : > { %977 = vperm.xlu1 %3629, %v4130_v17   ;;  %1206 = vperm.xlu0 %3626, %v4141_v20  }
  0x24   : > { %3482 = vmatmul.mubr.msk.f32.gmra.mxu0 %vm262_vm0, %v237_v19 }
  0x25   : > { %3484 = vmatprep.mubr.msk.f32.mxu0 %vm262_vm0, %v238_v21 }
  0x27   : > { %981 = vperm.xlu1 %3629, %v4141_v20   ;;  %1210 = vperm.xlu0 %3626, %v4152_v23  }
  0x28   : > { %3485 = vmatmul.mubr.msk.f32.gmra.mxu0 %vm262_vm0, %v239_v22 }
  0x29   : > { %3487 = vmatprep.mubr.msk.f32.mxu0 %vm262_vm0, %v240_v24 }
  0x2b   : > { %985 = vperm.xlu1 %3629, %v4152_v23   ;;  %1214 = vperm.xlu0 %3626, %v4163_v26  }
  0x2c   : > { %3488 = vmatmul.mubr.msk.f32.gmra.mxu0 %vm262_vm0, %v241_v25 }
  0x2d   : > { %3490 = vmatprep.mubr.msk.f32.mxu0 %vm262_vm0, %v242_v27 }
  0x2f   : > { %989 = vperm.xlu1 %3629, %v4163_v26   ;;  %1218 = vperm.xlu0 %3626, %v4174_v29  }
  0x30   : > { %3491 = vmatmul.mubr.msk.f32.gmra.mxu0 %vm262_vm0, %v243_v28 }
  0x31   : > { %3493 = vmatprep.mubr.msk.f32.mxu0 %vm262_vm0, %v244_v30  ;;  %v676_v30 = vld [vmem:[%s6212_s4 + $0xc8] sm:$0xff] }
  0x33   : > { %993 = vperm.xlu1 %3629, %v4174_v29   ;;  %1170 = vperm.xlu0 %3626, %v4183_v31  }
  0x34   : > { %3494 = vmatmul.mubr.msk.f32.gmra.mxu0 %vm262_vm0, %v245_v32 }
  0x35   : > { %3496 = vmatprep.mubr.msk.f32.mxu0 %vm262_vm0, %v246_v33 }
  0x37   : > { %941 = vperm.xlu1 %3629, %v4194_v34   ;;  %1178 = vperm.xlu0 %3626, %v4199_v35  }
  0x38   : > { %3497 = vmatmul.mubr.msk.f32.gmra.mxu0 %vm262_vm0, %v247_v36 }
  0x39   : > { %3499 = vmatprep.mubr.msk.f32.mxu0 %vm262_vm0, %v248_v37 }
  0x3b   : > { %3630 = vset.pattern.permute.xlu1 %v6217_v5  ;;  %3640 = vset.pattern.permute.xlu0 %v6215_v40 }
  0x3c   : > { %1166 = vperm.xlu1 %3630, %v4194_v34   ;;  %3500 = vmatmul.mubr.msk.f32.gmra.mxu0 %vm262_vm0, %v249_v38 }
  0x3d   : > { %3502 = vmatprep.mubr.msk.f32.mxu0 %vm262_vm0, %v250_v39  ;;  %1407 = vperm.xlu0 %3640, %v4079_v4  }
  0x40   : > { %1222 = vperm.xlu1 %3630, %v4218_v41   ;;  %3503 = vmatmul.mubr.msk.f32.gmra.mxu0 %vm262_vm0, %v251_v42 }
  0x41   : > { %3505 = vmatprep.mubr.msk.f32.mxu0 %vm262_vm0, %v252_v43  ;;  %1415 = vperm.xlu0 %3640, %v4093_v6  }
  0x44   : > { %3631 = vset.pattern.permute.xlu1 %v6214_v3  ;;  %3506 = vmatmul.mubr.msk.f32.gmra.mxu0 %vm262_vm0, %v253_v44  ;;  %v4433_v44 = vld [vmem:[%s6212_s4 + $0xd8] sm:$0xff] }
  0x45   : > { %1001 = vperm.xlu1 %3631, %v4231_v45   ;;  %3508 = vmatprep.mubr.msk.f32.mxu0 %vm262_vm0, %v254_v46  ;;  %6324 = vst [vmem:[#allocation16_spill] sm:$0xff] %v4433_v44 }
  0x46   : > { %1423 = vperm.xlu0 %3640, %v4119_v14  }
  0x48   : > { %3509 = vmatmul.mubr.msk.f32.gmra.mxu0 %vm262_vm0, %v255_v47 }
  0x49   : > { %3632 = vset.pattern.permute.xlu1 %v6217_v5  ;;  %3511 = vmatprep.mubr.msk.f32.mxu0 %vm262_vm0, %v256_v48 }
  0x4a   : > { %1226 = vperm.xlu1 %3632, %v4231_v45   ;;  %1431 = vperm.xlu0 %3640, %v4141_v20  }
  0x4c   : > { %3512 = vmatmul.mubr.msk.f32.gmra.mxu0 %vm262_vm0, %v257_v49 }
  0x4d   : > { %3514 = vmatprep.mubr.msk.f32.mxu0 %vm262_vm0, %v258_v50 }
  0x4e   : > { %3633 = vset.pattern.permute.xlu1 %v6214_v3  ;;  %1439 = vperm.xlu0 %3640, %v4163_v26  }
  0x4f   : > { %949 = vperm.xlu1 %3633, %v4252_v51  }
  0x50   : > { %3515 = vmatmul.mubr.msk.f32.gmra.mxu0 %vm262_vm0, %v259_v52  ;;  %v6222_v52 = vlaneseq }
  0x52   : > { %3661 = vset.pattern.permute.xlu0 %v6214_v3 }
  0x53   : > { %3634 = vset.pattern.permute.xlu1 %v6217_v5  ;;  %957 = vperm.xlu0 %3661, %v4079_v4  }
  0x54   : > { %1174 = vperm.xlu1 %3634, %v4252_v51  }
  0x57   : > { %997 = vperm.xlu0 %3661, %v4218_v41  }
  0x58   : > { %1230 = vperm.xlu1 %3634, %v4267_v53  }
  0x5b   : > { %945 = vperm.xlu0 %3661, %v4183_v31  }
  0x5c   : > { %3635 = vset.pattern.permute.xlu1 %v6214_v3 }
  0x5d   : > { %1009 = vperm.xlu1 %3635, %v4274_v54  }
  0x5f   : > { %1005 = vperm.xlu0 %3661, %v4267_v53  }
  0x61   : > { %3636 = vset.pattern.permute.xlu1 %v6217_v5 }
  0x62   : > { %1234 = vperm.xlu1 %3636, %v4274_v54  }
  0x63   : > { %953 = vperm.xlu0 %3661, %v4199_v35  }
  0x66   : > { %3637 = vset.pattern.permute.xlu1 %v6214_v3 }
  0x67   : > { %1013 = vperm.xlu1 %3637, %v4286_v55   ;;  %1021 = vperm.xlu0 %3661, %v4291_v56  }
  0x6b   : > { %3638 = vset.pattern.permute.xlu1 %v6217_v5  ;;  %1029 = vperm.xlu0 %3661, %v673_v57  }
  0x6c   : > { %1238 = vperm.xlu1 %3638, %v4286_v55  }
  0x6f   : > { %1037 = vperm.xlu0 %3661, %v4304_v58  }
  0x70   : > { %3639 = vset.pattern.permute.xlu1 %v6214_v3 }
  0x71   : > { %1017 = vperm.xlu1 %3639, %v4309_v59  }
  0x73   : > { %1045 = vperm.xlu0 %3661, %v4316_v60  }
  0x75   : > { %3641 = vset.pattern.permute.xlu1 %v6219_v62 }
  0x76   : > { %710 = vperm.xlu1 %3641, %v4066_v0  }
  0x77   : > { %1053 = vperm.xlu0 %3661, %v4323_v61  }
  0x7a   : > { %3642 = vset.pattern.permute.xlu1 %v6217_v5 }
  0x7b   : > { %1242 = vperm.xlu1 %3642, %v4309_v59   ;;  %1057 = vperm.xlu0 %3661, %v4331_v63  }
  0x7f   : > { %3643 = vset.pattern.permute.xlu1 %v6215_v40 }
  0x80   : > { %1411 = vperm.xlu1 %3643, %v4066_v0  }
  0x84   : > { %3644 = vset.pattern.permute.xlu1 %v6217_v5 }
  0x85   : > { %1246 = vperm.xlu1 %3644, %v4291_v56   ;;  %v6348_v56 = vmov 0  }
  0x88   : > { %v4343_v2 = vpop.permute.xlu1 %961 }
  0x89   : > { %3645 = vset.pattern.permute.xlu1 %v6214_v3  ;;  %v4359_v10 = vpop.permute.xlu0 %1182 }
  0x8a   : > { %1025 = vperm.xlu1 %3645, %v672_v1  }
  0x8d   : > { %v4346_v7 = vpop.permute.xlu1 %1186 }
  0x8e   : > { %3646 = vset.pattern.permute.xlu1 %v6219_v62  ;;  %v4369_v15 = vpop.permute.xlu0 %1190 }
  0x8f   : > { %720 = vperm.xlu1 %3646, %v4108_v11  }
  0x92   : > { %v4350_v0 = vpop.permute.xlu1 %965  ;;  %v4377_v18 = vpop.permute.xlu0 %1194 }
  0x93   : > { %3647 = vset.pattern.permute.xlu1 %v6217_v5 }
  0x94   : > { %1250 = vperm.xlu1 %3647, %v672_v1  }
  0x96   : > { %v4353_v8 = vpop.permute.xlu1 %969  ;;  %v4384_v21 = vpop.permute.xlu0 %1198 }
  0x98   : > { %3648 = vset.pattern.permute.xlu1 %v6215_v40 }
  0x99   : > { %1419 = vperm.xlu1 %3648, %v4108_v11  }
  0x9a   : > { %v4357_v9 = vpop.permute.xlu1 %973  ;;  %v4393_v25 = vpop.permute.xlu0 %1202 }
  0x9d   : > { %3649 = vset.pattern.permute.xlu1 %v6217_v5 }
  0x9e   : > { %v4362_v12 = vpop.permute.xlu1 %977  ;;  %1254 = vperm.xlu1 %3649, %v673_v57   ;;  %v4399_v28 = vpop.permute.xlu0 %1206 }
  0xa2   : > { %v4371_v16 = vpop.permute.xlu1 %981  ;;  %3650 = vset.pattern.permute.xlu1 %v6214_v3 }
  0xa3   : > { %1033 = vperm.xlu1 %3650, %v4367_v13  }
  0xa6   : > { %v4375_v11 = vpop.permute.xlu1 %985 }
  0xa7   : > { %3651 = vset.pattern.permute.xlu1 %v6219_v62 }
  0xa8   : > { %730 = vperm.xlu1 %3651, %v4130_v17  }
  0xaa   : > { %v4381_v19 = vpop.permute.xlu1 %989 }
  0xac   : > { %3652 = vset.pattern.permute.xlu1 %v6217_v5 }
  0xad   : > { %1258 = vperm.xlu1 %3652, %v4367_v13  }
  0xae   : > { %v4387_v22 = vpop.permute.xlu1 %993 }
  0xb1   : > { %3653 = vset.pattern.permute.xlu1 %v6215_v40 }
  0xb2   : > { %1427 = vperm.xlu1 %3653, %v4130_v17   ;;  %v4391_v24 = vpop.permute.xlu1 %941  ;;  %v4407_v17 = vpop.permute.xlu0 %1210 }
  0xb6   : > { %3654 = vset.pattern.permute.xlu1 %v6217_v5  ;;  %v4413_v36 = vpop.permute.xlu0 %1214 }
  0xb7   : > { %1262 = vperm.xlu1 %3654, %v4304_v58   ;;  %v4397_v27 = vpop.permute.xlu1 %1166 }
  0xba   : > { %v4421_v39 = vpop.permute.xlu0 %1218 }
  0xbb   : > { %3655 = vset.pattern.permute.xlu1 %v6214_v3  ;;  %v4405_v32 = vpop.permute.xlu1 %1222 }
  0xbc   : > { %1041 = vperm.xlu1 %3655, %v676_v30  }
  0xbe   : > { %v4428_v43 = vpop.permute.xlu0 %1170 }
  0xbf   : > { %6323 = vst [vmem:[#allocation15_spill] sm:$0xff] %v4428_v43 }
  0xc0   : > { %3656 = vset.pattern.permute.xlu1 %v6219_v62  ;;  %v4410_v33 = vpop.permute.xlu1 %1001 }
  0xc1   : > { %6319 = vst [vmem:[#allocation11_spill] sm:$0xff] %v4410_v33  ;;  %740 = vperm.xlu1 %3656, %v4152_v23  }
  0xc2   : > { %v4443_v48 = vpop.permute.xlu0 %1178 }
  0xc3   : > { %6328 = vst [vmem:[#allocation20_spill] sm:$0xff] %v4443_v48  ;;  %v6334_v48 = vmov 3  }
  0xc5   : > { %3657 = vset.pattern.permute.xlu1 %v6217_v5  ;;  %v4416_v37 = vpop.permute.xlu1 %1226 }
  0xc6   : > { %6320 = vst [vmem:[#allocation12_spill] sm:$0xff] %v4416_v37  ;;  %1266 = vperm.xlu1 %3657, %v676_v30   ;;  %v4456_v30 = vshrl.u32 %v6222_v52, 7  ;;  %v6341_v37 = vmov 4  }
  0xc8   : > { %6332 = vst [vmem:[#allocation24_spill] sm:$0xff] %v4456_v30  ;;  %vm1357_vm1 = vcmp.lt.s32.totalorder %v4456_v30, 6  ;;  %vm1132_vm3 = vcmp.lt.s32.totalorder %v4456_v30, 7  ;;  %vm907_vm4 = vcmp.lt.s32.totalorder %v4456_v30, 1  ;;  %vm618_vm5 = vcmp.lt.s32.totalorder %v4456_v30, 2 }
  0xca   : > { %3658 = vset.pattern.permute.xlu1 %v6215_v40  ;;  %v4419_v38 = vpop.permute.xlu1 %949  ;;  %v2047_v40 = vld [vmem:[%s6210_s2 + $0x70] sm:$0xff] }
  0xcb   : > { %6321 = vst [vmem:[#allocation13_spill] sm:$0xff] %v4419_v38  ;;  %1435 = vperm.xlu1 %3658, %v4152_v23  }
  0xcf   : > { %3659 = vset.pattern.permute.xlu1 %v6217_v5  ;;  %v4425_v42 = vpop.permute.xlu1 %1174  ;;  %v2048_v5 = vld [vmem:[%s6210_s2 + $0x78] sm:$0xff] }
  0xd0   : > { %6322 = vst [vmem:[#allocation14_spill] sm:$0xff] %v4425_v42  ;;  %1270 = vperm.xlu1 %3659, %v4316_v60   ;;  %v1408_v60 = vpop.permute.xlu0 %1407 }
  0xd3   : > { %v4435_v46 = vpop.permute.xlu1 %1230  ;;  %v4438_v47 = vpop.f32.mrf.mxu0 }
  0xd4   : > { %6325 = vst [vmem:[#allocation17_spill] sm:$0xff] %v4435_v46  ;;  %3660 = vset.pattern.permute.xlu1 %v6214_v3  ;;  %6326 = vst [vmem:[#allocation18_spill] sm:$0xff] %v4438_v47  ;;  %v4479_v59 = vpop.permute.xlu0 %1415 }
  0xd5   : > { %1049 = vperm.xlu1 %3660, %v4433_v44   ;;  %v4441_v23 = vpop.f32.mrf.mxu0  ;;  %6337 = vst [vmem:[#allocation28_spill] sm:$0xff] %v4479_v59  ;;  %v2046_v59 = vld [vmem:[%s6210_s2 + $0x68] sm:$0xff] }
  0xd6   : > { %6327 = vst [vmem:[#allocation19_spill] sm:$0xff] %v4441_v23 }
  0xd8   : > { %v4445_v49 = vpop.permute.xlu1 %1009  ;;  %v4447_v50 = vpop.f32.mrf.mxu0 }
  0xd9   : > { %6329 = vst [vmem:[#allocation21_spill] sm:$0xff] %v4445_v49  ;;  %3662 = vset.pattern.permute.xlu1 %v6219_v62  ;;  %v6226_v49 = vmov 0.0  }
  0xda   : > { %750 = vperm.xlu1 %3662, %v4174_v29   ;;  %v4451_v57 = vpop.f32.mrf.mxu0  ;;  %3569 = vmatprep.subr.mxu1 %v6226_v49 }
  0xdb   : > { %6330 = vst [vmem:[#allocation22_spill] sm:$0xff] %v4451_v57  ;;  %3589 = vmatpush1.msra.mxu1 %v2048_v5  ;;  %2149 = vmatprep.subr.mxu0 %v6226_v49 }
  0xdc   : > { %v4453_v1 = vpop.f32.mrf.mxu0  ;;  %3570 = vmatprep.subr.mxu1 %v6226_v49  ;;  %2150 = vmatpush1.msra.mxu0 %v2048_v5 }
  0xdd   : > { %6331 = vst [vmem:[#allocation23_spill] sm:$0xff] %v4453_v1  ;;  %v4458_v3 = vpop.permute.xlu1 %1234  ;;  %v1105_v52 = vrot.slane %v4453_v1, 1  ;;  %v6338_v13 = vrot.slane %v4453_v1, 2  ;;  %3590 = vmatpush1.msra.mxu1 %v2047_v40 }
  0xde   : > { %6333 = vst [vmem:[#allocation25_spill] sm:$0xff] %v4458_v3  ;;  %3663 = vset.pattern.permute.xlu1 %v6334_v48  ;;  %v4465_v62 = vpop.f32.mrf.mxu0 }
  0xdf   : > { %6335 = vst [vmem:[#allocation26_spill] sm:$0xff] %v4465_v62  ;;  %1274 = vperm.xlu1 %3663, %v4433_v44   ;;  %v6225_v3 = vrot.slane %v4465_v62, 2 }
  0xe0   : > { %v4476_v42 = vpop.f32.mrf.mxu0 }
  0xe1   : > { %6336 = vst [vmem:[#allocation27_spill] sm:$0xff] %v4476_v42  ;;  %v1384_v44 = vsel %vm1357_vm1, %v6225_v3, %v6338_v13  ;;  %v6342_v3 = vrot.slane %v4465_v62, 1  ;;  %v1107_v49 = vrot.slane %v4476_v42, 1 }
  0xe2   : > { %v4488_v46 = vpop.permute.xlu1 %1013  ;;  %v4490_v38 = vpop.f32.mrf.mxu0  ;;  %v1522_v43 = vmul.f32 %v1408_v60, %v1384_v44  ;;  %v4511_v60 = vld [vmem:[%s6210_s2 + $0x60] sm:$0xff] }
  0xe3   : > { %6339 = vst [vmem:[#allocation29_spill] sm:$0xff] %v4488_v46  ;;  %6340 = vst [vmem:[#allocation30_spill] sm:$0xff] %v4490_v38  ;;  %3664 = vset.pattern.permute.xlu1 %v6341_v37  ;;  %v1106_v13 = vrot.slane %v4490_v38, 1  ;;  %v1159_v5 = vsel %vm1132_vm3, %v6342_v3, %v1105_v52  ;;  %v6343_v46 = vmov 0.0  }
  0xe4   : > { %3571 = vmatprep.subr.mxu1 %v6343_v46  ;;  %1443 = vperm.xlu1 %3664, %v4174_v29   ;;  %v4505_v44 = vpop.f32.mrf.mxu0  ;;  %v1297_v57 = vmul.f32 %v4359_v10, %v1159_v5  ;;  %v4549_v5 = vld [vmem:[%s6210_s2 + $0x50] sm:$0xff] }
  0xe5   : > { %6344 = vst [vmem:[#allocation31_spill] sm:$0xff] %v4505_v44  ;;  %3333 = vmatprep.mubr.msk.f32.mxu1 %vm1934_vm2, %v1522_v43  ;;  %v1158_v54 = vsel %vm1132_vm3, %v1105_v52, %v1106_v13  ;;  %3591 = vmatpush1.msra.mxu1 %v2046_v59  ;;  %v4521_v43 = vpop.permute.xlu0 %1423  ;;  %v1157_v52 = vsel %vm1132_vm3, %v1106_v13, %v1107_v49 }
  0xe6   : > { %2151 = vmatprep.subr.mxu0 %v6343_v46  ;;  %v4516_v3 = vpop.f32.mrf.mxu0  ;;  %v1298_v29 = vmul.f32 %v4346_v7, %v1158_v54  ;;  %3572 = vmatprep.subr.mxu1 %v6343_v46  ;;  %6346 = vst [vmem:[#allocation33_spill] sm:$0xff] %v4521_v43  ;;  %v4535_v54 = vld [vmem:[%s6210_s2 + $0x58] sm:$0xff]  ;;  %v1299_v13 = vmul.f32 %v4369_v15, %v1157_v52 }
  0xe7   : > { %6345 = vst [vmem:[#allocation32_spill] sm:$0xff] %v4516_v3  ;;  %v4523_v58 = vpop.permute.xlu1 %1238  ;;  %v1108_v33 = vrot.slane %v4516_v3, 1  ;;  %3592 = vmatpush1.msra.mxu1 %v4511_v60  ;;  %2152 = vmatpush1.msra.mxu0 %v2047_v40 }
  0xe8   : > { %6347 = vst [vmem:[#allocation34_spill] sm:$0xff] %v4523_v58  ;;  %3665 = vset.pattern.permute.xlu1 %v6348_v56  ;;  %v4530_v51 = vpop.f32.mrf.mxu0  ;;  %v3688_v10 = vpack.i.bf16 %v1298_v29, %v1297_v57  ;;  %3573 = vmatprep.subr.mxu1 %v6343_v46  ;;  %v1109_v29 = vrot.slane %v4505_v44, 1 }
  0xe9   : > { %6349 = vst [vmem:[#allocation35_spill] sm:$0xff] %v4530_v51  ;;  %755 = vperm.xlu1 %3665, %v4218_v41   ;;  %v1156_v7 = vsel %vm1132_vm3, %v1107_v49, %v1108_v33  ;;  %3593 = vmatpush1.msra.mxu1 %v4535_v54  ;;  %v1111_v58 = vrot.slane %v4530_v51, 1 }
  0xea   : > { %3689 = vrot.lane.b32.xlu0 %v3688_v10, %s4019_s30  ;;  %v4542_v40 = vpop.f32.mrf.mxu0  ;;  %v1300_v57 = vmul.f32 %v4377_v18, %v1156_v7  ;;  %2153 = vmatprep.subr.mxu0 %v6343_v46  ;;  %v4560_v18 = vpop.permute.xlu0 %1431  ;;  %v4569_v7 = vld [vmem:[%s6210_s2 + $0x48] sm:$0xff] }
  0xeb   : > { %6350 = vst [vmem:[#allocation36_spill] sm:$0xff] %v4542_v40  ;;  %v1110_v49 = vrot.slane %v4542_v40, 1  ;;  %3574 = vmatprep.subr.mxu1 %v6343_v46  ;;  %6353 = vst [vmem:[#allocation39_spill] sm:$0xff] %v4560_v18  ;;  %v1155_v18 = vsel %vm1132_vm3, %v1108_v33, %v1109_v29  ;;  %2154 = vmatpush1.msra.mxu0 %v2046_v59 }
  0xec   : > { %v4555_v10 = vpop.permute.xlu1 %1017  ;;  %v4557_v43 = vpop.f32.mrf.mxu0  ;;  %v3703_v15 = vpack.i.bf16 %v1300_v57, %v1299_v13  ;;  %3594 = vmatpush1.msra.mxu1 %v4549_v5  ;;  %2155 = vmatprep.subr.mxu0 %v6343_v46 }
  0xed   : > { %6351 = vst [vmem:[#allocation37_spill] sm:$0xff] %v4555_v10  ;;  %6352 = vst [vmem:[#allocation38_spill] sm:$0xff] %v4557_v43  ;;  %3666 = vset.pattern.permute.xlu1 %v6334_v48  ;;  %v1154_v52 = vsel %vm1132_vm3, %v1109_v29, %v1110_v49  ;;  %3575 = vmatprep.subr.mxu1 %v6343_v46  ;;  %v4607_v29 = vld [vmem:[%s6210_s2 + $0x38] sm:$0xff] }
  0xee   : > { %1278 = vperm.xlu1 %3666, %v4323_v61   ;;  %3704 = vrot.lane.b32.xlu0 %v3703_v15, %s4019_s30  ;;  %v4573_v13 = vpop.f32.mrf.mxu0  ;;  %v1302_v61 = vmul.f32 %v4393_v25, %v1154_v52  ;;  %v4589_v15 = vld [vmem:[%s6210_s2 + $0x40] sm:$0xff]  ;;  %v1301_v25 = vmul.f32 %v4384_v21, %v1155_v18  ;;  %v4609_v52 = vpop.permute.xlu0 %1439  ;;  %v4622_v21 = vld [vmem:[%s6210_s2 + $0x30] sm:$0xff] }
  0xef   : > { %6354 = vst [vmem:[#allocation40_spill] sm:$0xff] %v4573_v13  ;;  %v3713_v57 = vpack.i.bf16 %v4557_v43, %v4573_v13  ;;  %v6238_v10 = vrot.slane %v4573_v13, 1  ;;  %3595 = vmatpush1.msra.mxu1 %v4569_v7  ;;  %6357 = vst [vmem:[#allocation43_spill] sm:$0xff] %v4609_v52  ;;  %2156 = vmatpush1.msra.mxu0 %v4511_v60  ;;  %v4639_v60 = vld [vmem:[%s6210_s2 + $0x28] sm:$0xff] }
  0xf0   : > { %v4582_v55 = vpop.f32.mrf.mxu0  ;;  %3576 = vmatprep.subr.mxu1 %v6343_v46  ;;  %2157 = vmatprep.subr.mxu0 %v6343_v46 }
  0xf1   : > { %v4591_v35 = vpop.permute.xlu1 %710  ;;  %v1152_v33 = vsel %vm1132_vm3, %v1111_v58, %v6238_v10  ;;  %v1153_v10 = vsel %vm1132_vm3, %v1110_v49, %v1111_v58  ;;  %3596 = vmatpush1.msra.mxu1 %v4589_v15  ;;  %v880_v58 = vrot.slane %v4453_v1, 7  ;;  %v879_v49 = vrot.slane %v4465_v62, 7  ;;  %2158 = vmatpush1.msra.mxu0 %v4535_v54  ;;  %v4672_v54 = vld [vmem:[%s6212_s4 + $0xf0] sm:$0xff] }
  0xf2   : > { %6355 = vst [vmem:[#allocation41_spill] sm:$0xff] %v4591_v35  ;;  %3667 = vset.pattern.permute.xlu1 %v6341_v37  ;;  %3714 = vrot.lane.b32.xlu0 %v3713_v57, %s4020_s13  ;;  %v4601_v59 = vpop.f32.mrf.mxu0  ;;  %v3718_v57 = vpack.i.bf16 %v1302_v61, %v1301_v25  ;;  %v1304_v37 = vmul.f32 %v4407_v17, %v1152_v33  ;;  %6365 = vst [vmem:[#allocation50_spill] sm:$0xff] %v4672_v54 }
  0xf3   : > { %6356 = vst [vmem:[#allocation42_spill] sm:$0xff] %v4601_v59  ;;  %1391 = vperm.xlu1 %3667, %v4194_v34   ;;  %3577 = vmatprep.subr.mxu1 %v6343_v46  ;;  %v1303_v33 = vmul.f32 %v4399_v28, %v1153_v10  ;;  %v3668_v28 = vpack.i.bf16 %v4453_v1, %v4465_v62  ;;  %v882_v62 = vrot.slane %v4476_v42, 7 }
  0xf4   : > { %v4615_v35 = vpop.f32.mrf.mxu0  ;;  %3597 = vmatpush1.msra.mxu1 %v4607_v29  ;;  %v934_v10 = vsel %vm907_vm4, %v879_v49, %v880_v58  ;;  %2159 = vmatprep.subr.mxu0 %v6343_v46 }
  0xf5   : > { %6358 = vst [vmem:[#allocation44_spill] sm:$0xff] %v4615_v35  ;;  %3578 = vmatprep.subr.mxu1 %v6343_v46  ;;  %v3728_v18 = vpack.i.bf16 %v1304_v37, %v1303_v33  ;;  %v6363_v33 = vrot.slane %v4447_v50, 7  ;;  %2160 = vmatpush1.msra.mxu0 %v4549_v5  ;;  %v4728_v5 = vld [vmem:[%s6210_s2] sm:$0xff] }
  0xf6   : > { %v4629_v61 = vpop.permute.xlu1 %1242  ;;  %3719 = vrot.lane.b32.xlu0 %v3718_v57, %s4019_s30  ;;  %v4632_v17 = vpop.f32.mrf.mxu0  ;;  %3598 = vmatpush1.msra.mxu1 %v4622_v21 }
  0xf7   : > { %6359 = vst [vmem:[#allocation45_spill] sm:$0xff] %v4629_v61  ;;  %6360 = vst [vmem:[#allocation46_spill] sm:$0xff] %v4632_v17  ;;  %1447 = vperm.xlu1 %3667, %v4218_v41   ;;  %3579 = vmatprep.subr.mxu1 %v6343_v46  ;;  %v958_v57 = vpop.permute.xlu0 %957  ;;  %v4654_v41 = vld [vmem:[%s6210_s2 + $0x20] sm:$0xff]  ;;  %v935_v52 = vsel %vm907_vm4, %v6363_v33, %v879_v49  ;;  %v3673_v49 = vpack.i.bf16 %v4476_v42, %v4490_v38 }
  0xf8   : > { %v4643_v25 = vpop.f32.mrf.mxu0  ;;  %3599 = vmatpush1.msra.mxu1 %v4639_v60  ;;  %v1073_v33 = vmul.f32 %v4343_v2, %v934_v10  ;;  %2161 = vmatprep.subr.mxu0 %v6343_v46 }
  0xf9   : > { %6361 = vst [vmem:[#allocation47_spill] sm:$0xff] %v4643_v25  ;;  %3580 = vmatprep.subr.mxu1 %v6343_v46  ;;  %2162 = vmatpush1.msra.mxu0 %v4569_v7  ;;  %v884_v7 = vrot.slane %v4505_v44, 7 }
  0xfa   : > { %3729 = vrot.lane.b32.xlu0 %v3728_v18, %s4019_s30  ;;  %v4658_v37 = vpop.f32.mrf.mxu0  ;;  %v4678_v18 = vld [vmem:[%s6210_s2 + $0x18] sm:$0xff]  ;;  %3600 = vmatpush1.msra.mxu1 %v4654_v41 }
  0xfb   : > { %6362 = vst [vmem:[#allocation48_spill] sm:$0xff] %v4658_v37  ;;  %v4666_v61 = vpop.permute.xlu1 %1411  ;;  %3669 = vrot.lane.b32.xlu1 %v3668_v28, %s4020_s13  ;;  %v1072_v28 = vmul.f32 %v958_v57, %v935_v52  ;;  %3581 = vmatprep.subr.mxu1 %v6343_v46  ;;  %v881_v37 = vrot.slane %v4490_v38, 7  ;;  %v4700_v2 = vpop.permute.xlu0 %997  ;;  %v4707_v52 = vld [vmem:[%s6210_s2 + $0x8] sm:$0xff] }
  0xfc   : > { %6364 = vst [vmem:[#allocation49_spill] sm:$0xff] %v4666_v61  ;;  %v4680_v1 = vpop.f32.mrf.mxu0  ;;  %3743 = vset.pattern.permute.xlu1 %v6348_v56  ;;  %v4691_v61 = vld [vmem:[%s6210_s2 + $0x10] sm:$0xff]  ;;  %3601 = vmatpush1.msra.mxu1 %v4678_v18 }
  0xfd   : > { %3582 = vmatprep.subr.mxu1 %v6343_v46  ;;  %v3678_v42 = vpack.i.bf16 %v1073_v33, %v1072_v28  ;;  %v932_v38 = vsel %vm907_vm4, %v881_v37, %v882_v62  ;;  %2163 = vmatprep.subr.mxu0 %v6343_v46 }
  0xfe   : > { %1061 = vperm.xlu0 %3661, %v4672_v54   ;;  %v4697_v17 = vpop.f32.mrf.mxu0  ;;  %3602 = vmatpush1.msra.mxu1 %v4691_v61  ;;  %v1075_v54 = vmul.f32 %v4353_v8, %v932_v38 }
  0xff   : > { %3674 = vrot.lane.b32.xlu1 %v3673_v49, %s4020_s13  ;;  %3583 = vmatprep.subr.mxu1 %v6343_v46 }
 0x100   : > { %v4709_v57 = vpop.permute.xlu1 %1246  ;;  %v4711_v10 = vpop.f32.mrf.mxu0  ;;  %3603 = vmatpush1.msra.mxu1 %v4707_v52  ;;  %2164 = vmatpush1.msra.mxu0 %v4589_v15  ;;  %v888_v15 = vrot.slane %v4557_v43, 7 }
 0x101   : > { %6366 = vst [vmem:[#allocation51_spill] sm:$0xff] %v4709_v57  ;;  %v933_v57 = vsel %vm907_vm4, %v880_v58, %v881_v37  ;;  %3584 = vmatprep.subr.mxu1 %v6343_v46  ;;  %v3683_v58 = vpack.i.bf16 %v4505_v44, %v4516_v3  ;;  %v885_v44 = vrot.slane %v4542_v40, 7  ;;  %2165 = vmatprep.subr.mxu0 %v6343_v46 }
 0x102   : > { %3745 = vset.pattern.permute.xlu0 %v6348_v56  ;;  %v4718_v49 = vpop.f32.mrf.mxu0  ;;  %v1074_v37 = vmul.f32 %v4350_v0, %v933_v57  ;;  %3604 = vmatpush1.msra.mxu1 %v4728_v5  ;;  %v4761_v0 = vld [vmem:[%s6210_s2 + $0x90] sm:$0xff]  ;;  %v886_v57 = vrot.slane %v4530_v51, 7 }
 0x103   : > { %3679 = vrot.lane.b32.xlu1 %v3678_v42, %s4021_s10  ;;  %705 = vperm.xlu0 %3745, %v4079_v4   ;;  %v4746_v4 = vld [vmem:[%s6210_s2 + $0x98] sm:$0xff]  ;;  %v4748_v42 = vpop.permute.xlu0 %945 }
 0x104   : > { %v4732_v28 = vpop.f32.mrf.mxu0  ;;  %6369 = vst [vmem:[#allocation54_spill] sm:$0xff] %v4748_v42  ;;  %3585 = vmatprep.subr.mxu1 %v6343_v46  ;;  %v3693_v38 = vpack.i.bf16 %v1075_v54, %v1074_v37  ;;  %v4781_v54 = vld [vmem:[%s6210_s2 + $0x88] sm:$0xff]  ;;  %2166 = vmatpush1.msra.mxu0 %v4607_v29  ;;  %v1114_v29 = vrot.slane %v4601_v59, 1 }
 0x105   : > { %6367 = vst [vmem:[#allocation52_spill] sm:$0xff] %v4732_v28  ;;  %v4736_v33 = vpop.permute.xlu1 %1025  ;;  %v883_v28 = vrot.slane %v4516_v3, 7  ;;  %3605 = vmatpush2.msra.mxu1 %v4746_v4  ;;  %2167 = vmatprep.subr.mxu0 %v6343_v46 }
 0x106   : > { %6368 = vst [vmem:[#allocation53_spill] sm:$0xff] %v4736_v33  ;;  %v4752_v33 = vpop.f32.mrf.mxu0  ;;  %3586 = vmatprep.subr.mxu1 %v6343_v46  ;;  %2168 = vmatpush1.msra.mxu0 %v4622_v21 }
 0x107   : > { %3684 = vrot.lane.b32.xlu1 %v3683_v58, %s4020_s13  ;;  %715 = vperm.xlu0 %3745, %v4093_v6   ;;  %v930_v6 = vsel %vm907_vm4, %v883_v28, %v884_v7  ;;  %v931_v42 = vsel %vm907_vm4, %v882_v62, %v883_v28  ;;  %v4786_v37 = vpop.permute.xlu0 %1005  ;;  %v3698_v62 = vpack.i.bf16 %v4530_v51, %v4542_v40 }
 0x108   : > { %v4763_v8 = vpop.f32.mrf.mxu0  ;;  %3606 = vmatpush2.msra.mxu1 %v4761_v0  ;;  %v1076_v28 = vmul.f32 %v4357_v9, %v931_v42  ;;  %v929_v51 = vsel %vm907_vm4, %v884_v7, %v885_v44  ;;  %2169 = vmatprep.subr.mxu0 %v6343_v46 }
 0x109   : > { %6370 = vst [vmem:[#allocation55_spill] sm:$0xff] %v4763_v8  ;;  %3587 = vmatprep.subr.mxu1 %v6343_v46  ;;  %2170 = vmatpush1.msra.mxu0 %v4639_v60  ;;  %v6376_v60 = vrot.slane %v4573_v13, 1 }
 0x10a   : > { %v4769_v3 = vpop.permute.xlu1 %720  ;;  %v4771_v58 = vpop.f32.mrf.mxu0  ;;  %3607 = vmatpush2.msra.mxu1 %v4781_v54  ;;  %2171 = vmatprep.subr.mxu0 %v6343_v46 }
 0x10b   : > { %6371 = vst [vmem:[#allocation56_spill] sm:$0xff] %v4769_v3  ;;  %6372 = vst [vmem:[#allocation57_spill] sm:$0xff] %v4771_v58  ;;  %3694 = vrot.lane.b32.xlu1 %v3693_v38, %s4021_s10  ;;  %725 = vperm.xlu0 %3745, %v4119_v14   ;;  %v1077_v3 = vmul.f32 %v4362_v12, %v930_v6  ;;  %v4800_v14 = vld [vmem:[%s6210_s2 + $0x80] sm:$0xff]  ;;  %v887_v38 = vrot.slane %v4573_v13, 7  ;;  %v1078_v6 = vmul.f32 %v4371_v16, %v929_v51 }
 0x10c   : > { %v4788_v58 = vpop.f32.mrf.mxu0  ;;  %3588 = vmatprep.subr.mxu1 %v6343_v46  ;;  %v1113_v51 = vrot.slane %v4557_v43, 1  ;;  %2172 = vmatpush1.msra.mxu0 %v4654_v41  ;;  %v1115_v41 = vrot.slane %v4582_v55, 1 }
 0x10d   : > { %6373 = vst [vmem:[#allocation58_spill] sm:$0xff] %v4788_v58  ;;  %v928_v58 = vsel %vm907_vm4, %v885_v44, %v886_v57  ;;  %3608 = vmatpush2.msra.mxu1 %v4800_v14  ;;  %v3708_v42 = vpack.i.bf16 %v1077_v3, %v1076_v28  ;;  %v4820_v44 = vpop.permute.xlu0 %953  ;;  %v926_v7 = vsel %vm907_vm4, %v887_v38, %v888_v15 }
 0x10e   : > { %v4810_v9 = vpop.f32.mrf.mxu0  ;;  %v1079_v40 = vmul.f32 %v4375_v11, %v928_v58  ;;  %v1081_v58 = vmul.f32 %v4387_v22, %v926_v7  ;;  %v1150_v21 = vsel %vm1132_vm3, %v1113_v51, %v1114_v29  ;;  %v897_v22 = vrot.slane %v4718_v49, 7  ;;  %2173 = vmatprep.subr.mxu0 %v6343_v46 }
 0x10f   : > { %6374 = vst [vmem:[#allocation59_spill] sm:$0xff] %v4810_v9  ;;  %v4812_v12 = vpop.permute.xlu1 %1250  ;;  %3699 = vrot.lane.b32.xlu1 %v3698_v62, %s4020_s13  ;;  %735 = vperm.xlu0 %3745, %v4141_v20   ;;  %v927_v62 = vsel %vm907_vm4, %v886_v57, %v887_v38  ;;  %v1151_v28 = vsel %vm1132_vm3, %v6376_v60, %v1113_v51  ;;  %v889_v7 = vrot.slane %v4601_v59, 7  ;;  %v1101_v51 = vrot.slane %v4438_v47, 1 }
 0x110   : > { %v4828_v20 = vpop.f32.mrf.mxu0  ;;  %v3723_v11 = vpack.i.bf16 %v1079_v40, %v1078_v6  ;;  %v1080_v3 = vmul.f32 %v4381_v19, %v927_v62  ;;  %v896_v19 = vrot.slane %v4680_v1, 7  ;;  %v898_v6 = vrot.slane %v4711_v10, 7  ;;  %2174 = vmatpush1.msra.mxu0 %v4678_v18 }
 0x111   : > { %6375 = vst [vmem:[#allocation60_spill] sm:$0xff] %v4828_v20  ;;  %v6264_v57 = vrot.slane %v4828_v20, 7  ;;  %v4846_v40 = vpop.permute.xlu0 %1021  ;;  %v925_v18 = vsel %vm907_vm4, %v888_v15, %v889_v7  ;;  %2175 = vmatprep.subr.mxu0 %v6343_v46 }
 0x112   : > { %2176 = vmatpush1.msra.mxu0 %v4691_v61 }
 0x113   : > { %3709 = vrot.lane.b32.xlu1 %v3708_v42, %s4021_s10  ;;  %745 = vperm.xlu0 %3745, %v4163_v26   ;;  %v875_v26 = vrot.slane %v4441_v23, 7  ;;  %v3733_v42 = vpack.i.bf16 %v1081_v58, %v1080_v3  ;;  %v917_v3 = vsel %vm907_vm4, %v896_v19, %v897_v22  ;;  %v6263_v58 = vrot.slane %v4441_v23, 1 }
 0x114   : > { %v4833_v16 = vpop.permute.xlu1 %1419  ;;  %2177 = vmatprep.subr.mxu0 %v6343_v46 }
 0x115   : > { %v939_v62 = vsel %vm907_vm4, %v6264_v57, %v875_v26  ;;  %v1030_v60 = vpop.permute.xlu0 %1029  ;;  %v1163_v61 = vsel %vm1132_vm3, %v6263_v58, %v1101_v51  ;;  %2178 = vmatpush1.msra.mxu0 %v4707_v52 }
 0x116   : > { %2179 = vmatprep.subr.mxu0 %v6343_v46 }
 0x117   : > { %3724 = vrot.lane.b32.xlu1 %v3723_v11, %s4021_s10  ;;  %685 = vperm.xlu0 %3745, %v4194_v34   ;;  %v1306_v34 = vmul.f32 %v4421_v39, %v1150_v21  ;;  %v1305_v39 = vmul.f32 %v4413_v36, %v1151_v28  ;;  %v916_v11 = vsel %vm907_vm4, %v897_v22, %v898_v6 }
 0x118   : > { %v1068_v21 = vmul.f32 %v4391_v24, %v939_v62  ;;  %v1149_v22 = vsel %vm1132_vm3, %v1114_v29, %v1115_v41  ;;  %v1082_v24 = vmul.f32 %v4700_v2, %v925_v18  ;;  %2180 = vmatpush1.msra.mxu0 %v4728_v5  ;;  %v6378_v5 = vmov 4  }
 0x119   : > { %v4855_v38 = vpop.permute.xlu1 %1254  ;;  %v3738_v36 = vpack.i.bf16 %v1306_v34, %v1305_v39  ;;  %v1307_v62 = vmul.f32 %v4405_v32, %v1149_v22  ;;  %v1293_v39 = vmul.f32 %v4397_v27, %v1163_v61  ;;  %2205 = vmatprep.subr.mxu0 %v6343_v46  ;;  %v6377_v27 = vld [vmem:[#allocation2_spill] sm:$0xff]  ;;  %v3749_v61 = vpack.i.bf16 %v4601_v59, %v4441_v23 }
 0x11a   : > { %v3754_v34 = vpack.i.bf16 %v1082_v24, %v1068_v21  ;;  %2206 = vmatpush2.msra.mxu0 %v4746_v4  ;;  %v6384_v22 = vld [vmem:[#allocation6_spill] sm:$0xff] }
 0x11b   : > { %690 = vperm.xlu0 %3745, %v4183_v31   ;;  %3734 = vrot.lane.b32.xlu1 %v3733_v42, %s4021_s10  ;;  %v4894_v42 = vmul.f32 %v1030_v60, %v917_v3  ;;  %v3759_v52 = vpack.i.bf16 %v1307_v62, %v1293_v39  ;;  %v6381_v3 = vld [vmem:[#allocation3_spill] sm:$0xff]  ;;  %v3837_v62 = vpack.i.bf16 %v4680_v1, %v4697_v17  ;;  %v6385_v39 = vld [vmem:[#allocation52_spill] sm:$0xff] }
 0x11c   : > { %2207 = vmatprep.subr.mxu0 %v6343_v46 }
 0x11d   : > { %2208 = vmatpush2.msra.mxu0 %v4761_v0 }
 0x11e   : > { %v1034_v28 = vpop.permute.xlu1 %1033  ;;  %2209 = vmatprep.subr.mxu0 %v6343_v46 }
 0x11f   : > { %v4896_v15 = vmul.f32 %v1034_v28, %v916_v11  ;;  %765 = vperm.xlu0 %3745, %v4267_v53   ;;  %3739 = vrot.lane.b32.xlu1 %v3738_v36, %s4019_s30  ;;  %v6382_v36 = vld [vmem:[#allocation53_spill] sm:$0xff]  ;;  %v6383_v28 = vld [vmem:[#allocation50_spill] sm:$0xff] }
 0x120   : > { %2210 = vmatpush2.msra.mxu0 %v4781_v54  ;;  %v6380_v54 = vld [vmem:[#allocation5_spill] sm:$0xff] }
 0x121   : > { %2211 = vmatprep.subr.mxu0 %v6343_v46  ;;  %v895_v46 = vrot.slane %v4697_v17, 7 }
 0x122   : > { %2212 = vmatpush2.msra.mxu0 %v4800_v14  ;;  %v3805_v14 = vpack.i.bf16 %v4615_v35, %v4447_v50 }
 0x123   : > { %v4913_v2 = vpop.permute.xlu1 %730  ;;  %760 = vperm.xlu1 %3743, %v4231_v45   ;;  %3755 = vrot.lane.b32.xlu0 %v3754_v34, %s4021_s10  ;;  %v918_v11 = vsel %vm907_vm4, %v895_v46, %v896_v19  ;;  %v890_v34 = vrot.slane %v4582_v55, 7 }
 0x124   : > { %v1089_v21 = vmul.f32 %v6382_v36, %v918_v11  ;;  %v876_v11 = vrot.slane %v4438_v47, 7 }
 0x126   : > { %v938_v36 = vsel %vm907_vm4, %v875_v26, %v876_v11  ;;  %v3869_v26 = vpack.i.bf16 %v6385_v39, %v4752_v33 }
 0x127   : > { %3744 = vset.pattern.permute.xlu1 %v6334_v48  ;;  %3760 = vrot.lane.b32.xlu0 %v3759_v52, %s4019_s30  ;;  %v6265_v52 = vrot.slane %v6385_v39, 7  ;;  %v6429_v39 = vrot.slane %v4763_v8, 7 }
 0x128   : > { %v4923_v32 = vpop.permute.xlu1 %1258  ;;  %1282 = vperm.xlu1 %3744, %v4331_v63   ;;  %v3773_v63 = vpack.i.bf16 %v4582_v55, %v4438_v47 }
 0x12b   : > { %700 = vperm.xlu0 %3745, %v6377_v27   ;;  %v6386_v27 = vmov 1  }
 0x12c   : > { %3746 = vset.pattern.permute.xlu1 %v6378_v5 }
 0x12d   : > { %v4933_v4 = vpop.permute.xlu1 %1427  ;;  %1395 = vperm.xlu1 %3746, %v4183_v31   ;;  %v6266_v31 = vrot.slane %v4643_v25, 7 }
 0x12f   : > { %3774 = vrot.lane.b32.xlu0 %v3773_v63, %s4020_s13  ;;  %v919_v18 = vsel %vm907_vm4, %v6266_v31, %v895_v46  ;;  %v4978_v63 = vld [vmem:[%s6212_s4 + $0xf8] sm:$0xff]  ;;  %v6407_v31 = vrot.slane %v4447_v50, 7 }
 0x130   : > { %v1088_v60 = vmul.f32 %v4846_v40, %v919_v18  ;;  %v899_v40 = vrot.slane %v4752_v33, 7 }
 0x131   : > { %1451 = vperm.xlu1 %3746, %v4231_v45  }
 0x132   : > { %v4940_v0 = vpop.permute.xlu1 %1262  ;;  %v3831_v24 = vpack.i.bf16 %v1089_v21, %v1088_v60  ;;  %v915_v18 = vsel %vm907_vm4, %v898_v6, %v899_v40  ;;  %v1038_v60 = vpop.permute.xlu0 %1037 }
 0x133   : > { %6379 = vst [vmem:[#allocation2_spill] sm:$0xff] %v4940_v0  ;;  %775 = vperm.xlu0 %3745, %v6380_v54  }
 0x135   : > { %3747 = vset.pattern.permute.xlu1 %v6348_v56 }
 0x136   : > { %695 = vperm.xlu1 %3747, %v6381_v3   ;;  %v924_v3 = vsel %vm907_vm4, %v889_v7, %v890_v34  ;;  %v6389_v7 = vld [vmem:[#allocation7_spill] sm:$0xff] }
 0x137   : > { %v1042_v45 = vpop.permute.xlu1 %1041  ;;  %3806 = vrot.lane.b32.xlu0 %v3805_v14, %s4020_s13  ;;  %v914_v14 = vsel %vm907_vm4, %v899_v40, %v6265_v52  ;;  %v1103_v52 = vrot.slane %v4447_v50, 1 }
 0x138   : > { %v1093_v21 = vmul.f32 %v1042_v45, %v914_v14  ;;  %v6392_v45 = vld [vmem:[#allocation46_spill] sm:$0xff] }
 0x139   : > { %v1116_v14 = vrot.slane %v6392_v45, 1 }
 0x13a   : > { %3748 = vset.pattern.permute.xlu1 %v6334_v48 }
 0x13b   : > { %1286 = vperm.xlu1 %3748, %v6383_v28   ;;  %785 = vperm.xlu0 %3745, %v6384_v22  }
 0x13c   : > { %v4963_v19 = vpop.permute.xlu1 %740 }
 0x13f   : > { %3750 = vrot.lane.b32.xlu1 %v3749_v61, %s4020_s13  ;;  %3832 = vrot.lane.b32.xlu0 %v3831_v24, %s4021_s10  ;;  %v6388_v24 = vld [vmem:[#allocation11_spill] sm:$0xff] }
 0x140   : > { %3764 = vset.pattern.permute.xlu1 %v6386_v27  ;;  %v1083_v61 = vmul.f32 %v6388_v24, %v924_v3  ;;  %v6390_v27 = vld [vmem:[#allocation54_spill] sm:$0xff]  ;;  %v5015_v3 = vpop.permute.xlu0 %1045 }
 0x141   : > { %v4980_v46 = vpop.permute.xlu1 %1266  ;;  %v1069_v58 = vmul.f32 %v6390_v27, %v938_v36  ;;  %6393 = vst [vmem:[#allocation53_spill] sm:$0xff] %v5015_v3  ;;  %v891_v27 = vrot.slane %v6392_v45, 7 }
 0x142   : > { %6387 = vst [vmem:[#allocation5_spill] sm:$0xff] %v4980_v46 }
 0x143   : > { %1065 = vperm.xlu1 %3764, %v4978_v63   ;;  %3838 = vrot.lane.b32.xlu0 %v3837_v62, %s4020_s13  ;;  %v1092_v62 = vmul.f32 %v1038_v60, %v915_v18  ;;  %v3766_v40 = vpack.i.bf16 %v1083_v61, %v1069_v58  ;;  %v6394_v18 = vld [vmem:[#allocation22_spill] sm:$0xff]  ;;  %v6396_v58 = vld [vmem:[#allocation4_spill] sm:$0xff]  ;;  %v6397_v61 = vld [vmem:[#allocation9_spill] sm:$0xff] }
 0x144   : > { %v1102_v36 = vrot.slane %v6394_v18, 1  ;;  %v5031_v24 = vpop.permute.xlu0 %1053 }
 0x145   : > { %v3863_v6 = vpack.i.bf16 %v1093_v21, %v1092_v62  ;;  %v1148_v21 = vsel %vm1132_vm3, %v1115_v41, %v1116_v14  ;;  %v6398_v62 = vld [vmem:[#allocation12_spill] sm:$0xff]  ;;  %v6399_v41 = vld [vmem:[#allocation15_spill] sm:$0xff] }
 0x146   : > { %v5001_v22 = vpop.permute.xlu1 %1435  ;;  %v1162_v60 = vsel %vm1132_vm3, %v1101_v51, %v1102_v36 }
 0x147   : > { %3765 = vset.pattern.permute.xlu1 %v6378_v5  ;;  %805 = vperm.xlu0 %3745, %v6389_v7   ;;  %v1308_v7 = vmul.f32 %v6398_v62, %v1148_v21  ;;  %v923_v21 = vsel %vm907_vm4, %v890_v34, %v891_v27 }
 0x148   : > { %1455 = vperm.xlu1 %3765, %v4267_v53  }
 0x14b   : > { %v5008_v57 = vpop.permute.xlu1 %1270  ;;  %3864 = vrot.lane.b32.xlu0 %v3863_v6, %s4021_s10 }
 0x14c   : > { %6391 = vst [vmem:[#allocation3_spill] sm:$0xff] %v5008_v57  ;;  %3767 = vrot.lane.b32.xlu1 %v3766_v40, %s4021_s10  ;;  %v1294_v40 = vmul.f32 %v6399_v41, %v1162_v60  ;;  %v1117_v41 = vrot.slane %v4615_v35, 1 }
 0x14d   : > { %3771 = vset.pattern.permute.xlu1 %v6348_v56 }
 0x14e   : > { %v3778_v51 = vpack.i.bf16 %v1308_v7, %v1294_v40  ;;  %v1084_v7 = vmul.f32 %v4786_v37, %v923_v21  ;;  %v3993_v40 = vld [vmem:[%s6212_s4 + $0x18] sm:$0xff]  ;;  %v892_v37 = vrot.slane %v4615_v35, 7  ;;  %v1147_v21 = vsel %vm1132_vm3, %v1116_v14, %v1117_v41 }
 0x14f   : > { %3870 = vrot.lane.b32.xlu0 %v3869_v26, %s4020_s13  ;;  %v877_v26 = vrot.slane %v6394_v18, 7 }
 0x150   : > { %v5020_v53 = vpop.permute.xlu1 %1049  ;;  %770 = vperm.xlu1 %3771, %v6396_v58   ;;  %v922_v14 = vsel %vm907_vm4, %v891_v27, %v892_v37 }
 0x151   : > { %6395 = vst [vmem:[#allocation50_spill] sm:$0xff] %v5020_v53  ;;  %v937_v60 = vsel %vm907_vm4, %v876_v11, %v877_v26  ;;  %v936_v35 = vsel %vm907_vm4, %v877_v26, %v6407_v31  ;;  %v6271_v31 = vrot.slane %v4441_v23, 2  ;;  %v6272_v26 = vrot.slane %v4438_v47, 2 }
 0x152   : > { %v1071_v27 = vmul.f32 %v4820_v44, %v936_v35 }
 0x153   : > { %825 = vperm.xlu0 %3745, %v6397_v61   ;;  %v3992_v61 = vld [vmem:[%s6212_s4 + $0x10] sm:$0xff] }
 0x154   : > { %3772 = vset.pattern.permute.xlu1 %v6334_v48  ;;  %v5048_v48 = vpop.permute.xlu0 %1057 }
 0x155   : > { %v5037_v6 = vpop.permute.xlu1 %750  ;;  %1290 = vperm.xlu1 %3772, %v4978_v63  }
 0x157   : > { %3884 = vset.pattern.permute.xlu0 %v6378_v5 }
 0x158   : > { %1399 = vperm.xlu0 %3884, %v3992_v61  }
 0x159   : > { %3779 = vrot.lane.b32.xlu1 %v3778_v51, %s4019_s30  ;;  %v6401_v51 = vld [vmem:[#allocation13_spill] sm:$0xff] }
 0x15a   : > { %v5051_v62 = vpop.permute.xlu1 %1274  ;;  %3783 = vset.pattern.permute.xlu1 %v6378_v5  ;;  %v1070_v61 = vmul.f32 %v6401_v51, %v937_v60  ;;  %v3789_v60 = vpack.i.bf16 %v6392_v45, %v6394_v18 }
 0x15b   : > { %6400 = vst [vmem:[#allocation6_spill] sm:$0xff] %v5051_v62  ;;  %v6408_v62 = vld [vmem:[#allocation21_spill] sm:$0xff] }
 0x15c   : > { %1403 = vperm.xlu0 %3884, %v3993_v40   ;;  %v5061_v34 = vpop.permute.xlu0 %3689  ;;  %v3784_v11 = vpack.i.bf16 %v1084_v7, %v1070_v61  ;;  %v1161_v40 = vsel %vm1132_vm3, %v1102_v36, %v1103_v52  ;;  %v6403_v7 = vld [vmem:[#allocation17_spill] sm:$0xff]  ;;  %v1085_v3 = vmul.f32 %v6408_v62, %v922_v14  ;;  %v5109_v14 = vld [vmem:[%s6212_s4 + $0xb0] sm:$0xff] }
 0x15d   : > { %1459 = vperm.xlu1 %3783, %v6396_v58   ;;  %v1309_v51 = vmul.f32 %v6403_v7, %v1147_v21  ;;  %v6409_v21 = vld [vmem:[#allocation48_spill] sm:$0xff] }
 0x15e   : > { %v1118_v7 = vrot.slane %v6409_v21, 1  ;;  %v3799_v62 = vpack.i.bf16 %v1085_v3, %v1071_v27  ;;  %v6411_v3 = vld [vmem:[#allocation26_spill] sm:$0xff]  ;;  %v3820_v0 = vpack.i.bf16 %v4643_v25, %v6409_v21 }
 0x15f   : > { %v5066_v29 = vpop.permute.xlu1 %1443 }
 0x160   : > { %6402 = vst [vmem:[#allocation11_spill] sm:$0xff] %v5066_v29  ;;  %1463 = vperm.xlu0 %3884, %v6380_v54   ;;  %v5076_v58 = vpop.permute.xlu0 %3704  ;;  %v6405_v54 = vld [vmem:[#allocation8_spill] sm:$0xff]  ;;  %v1146_v35 = vsel %vm1132_vm3, %v1117_v41, %v1118_v7 }
 0x161   : > { %3785 = vrot.lane.b32.xlu1 %v3784_v11, %s4021_s10  ;;  %v6406_v11 = vld [vmem:[#allocation14_spill] sm:$0xff] }
 0x162   : > { %3804 = vset.pattern.permute.xlu1 %v6348_v56  ;;  %v1295_v36 = vmul.f32 %v6406_v11, %v1161_v40  ;;  %v6412_v11 = vrot.slane %v6411_v3, 1 }
 0x164   : > { %v5081_v61 = vpop.permute.xlu1 %755  ;;  %1467 = vperm.xlu0 %3884, %v6405_v54   ;;  %v3794_v57 = vpack.i.bf16 %v1309_v51, %v1295_v36  ;;  %v3994_v54 = vld [vmem:[%s6212_s4 + $0xa0] sm:$0xff]  ;;  %v893_v51 = vrot.slane %v6409_v21, 7  ;;  %v1160_v36 = vsel %vm1132_vm3, %v1103_v52, %v6412_v11  ;;  %v3996_v52 = vld [vmem:[%s6212_s4 + $0x98] sm:$0xff] }
 0x165   : > { %6404 = vst [vmem:[#allocation7_spill] sm:$0xff] %v5081_v61  ;;  %3790 = vrot.lane.b32.xlu1 %v3789_v60, %s4020_s13  ;;  %v5098_v60 = vpop.permute.xlu0 %3714  ;;  %v6414_v61 = vld [vmem:[#allocation10_spill] sm:$0xff]  ;;  %v6419_v11 = vld [vmem:[#allocation29_spill] sm:$0xff] }
 0x166   : > { %v6434_v21 = vld [vmem:[#allocation34_spill] sm:$0xff] }
 0x168   : > { %1471 = vperm.xlu0 %3884, %v3994_v54  }
 0x169   : > { %v5100_v40 = vpop.permute.xlu1 %1278  ;;  %3795 = vrot.lane.b32.xlu1 %v3794_v57, %s4019_s30  ;;  %v1388_v57 = vsel %vm1357_vm1, %v6271_v31, %v6272_v26  ;;  %v5125_v54 = vpop.permute.xlu0 %3719  ;;  %v921_v31 = vsel %vm907_vm4, %v892_v37, %v893_v51 }
 0x16a   : > { %6410 = vst [vmem:[#allocation54_spill] sm:$0xff] %v5100_v40  ;;  %v6413_v40 = vld [vmem:[#allocation25_spill] sm:$0xff]  ;;  %v1086_v26 = vmul.f32 %v6419_v11, %v921_v31 }
 0x16b   : > { %v1310_v41 = vmul.f32 %v6413_v40, %v1146_v35  ;;  %v5140_v40 = vpop.f32.mrf.mxu0 }
 0x16c   : > { %1479 = vperm.xlu0 %3884, %v5109_v14   ;;  %6417 = vst [vmem:[#allocation4_spill] sm:$0xff] %v5140_v40  ;;  %v6425_v53 = vrot.slane %v5140_v40, 7 }
 0x16d   : > { %3800 = vrot.lane.b32.xlu1 %v3799_v62, %s4021_s10  ;;  %v6415_v62 = vrot.slane %v4643_v25, 7 }
 0x16e   : > { %v1392_v44 = vpop.permute.xlu1 %1391 }
 0x16f   : > { %v1518_v27 = vmul.f32 %v1392_v44, %v1388_v57  ;;  %v920_v47 = vsel %vm907_vm4, %v893_v51, %v6415_v62  ;;  %v6416_v44 = vld [vmem:[#allocation20_spill] sm:$0xff]  ;;  %v6420_v62 = vld [vmem:[#allocation37_spill] sm:$0xff]  ;;  %v3997_v51 = vld [vmem:[%s6212_s4 + $0xc0] sm:$0xff] }
 0x170   : > { %1483 = vperm.xlu0 %3884, %v6414_v61   ;;  %v1296_v57 = vmul.f32 %v6416_v44, %v1160_v36  ;;  %v1087_v23 = vmul.f32 %v6420_v62, %v920_v47  ;;  %v1119_v47 = vrot.slane %v4643_v25, 1  ;;  %v6422_v62 = vld [vmem:[#allocation58_spill] sm:$0xff]  ;;  %v6424_v44 = vrot.slane %v4697_v17, 1 }
 0x171   : > { %3329 = vmatprep.mubr.msk.f32.mxu0 %vm1934_vm2, %v1518_v27  ;;  %780 = vperm.xlu1 %3804, %v3996_v52   ;;  %v5150_v27 = vpop.permute.xlu0 %3729  ;;  %v588_v52 = vrot.slane %v6411_v3, 6 }
 0x172   : > { %v5142_v61 = vpop.permute.xlu1 %1447  ;;  %v3810_v35 = vpack.i.bf16 %v1310_v41, %v1296_v57  ;;  %v6421_v41 = vld [vmem:[#allocation23_spill] sm:$0xff]  ;;  %v903_v57 = vrot.slane %v4810_v9, 7  ;;  %v3815_v37 = vpack.i.bf16 %v1087_v23, %v1086_v26  ;;  %v1144_v36 = vsel %vm1132_vm3, %v1119_v47, %v6424_v44 }
 0x173   : > { %6418 = vst [vmem:[#allocation9_spill] sm:$0xff] %v5142_v61  ;;  %v6426_v23 = vrot.slane %v6421_v41, 6  ;;  %v1145_v44 = vsel %vm1132_vm3, %v1118_v7, %v1119_v47  ;;  %v6433_v7 = vld [vmem:[#allocation27_spill] sm:$0xff] }
 0x174   : > { %1487 = vperm.xlu0 %3884, %v3997_v51   ;;  %v904_v51 = vrot.slane %v6422_v62, 7  ;;  %v1332_v47 = vrot.slane %v6433_v7, 2 }
 0x175   : > { %3811 = vrot.lane.b32.xlu1 %v3810_v35, %s4019_s30  ;;  %v5164_v35 = vld [vmem:[%s6212_s4 + $0xd0] sm:$0xff]  ;;  %v645_v26 = vsel %vm618_vm5, %v588_v52, %v6426_v23  ;;  %v6431_v23 = vld [vmem:[#allocation41_spill] sm:$0xff] }
 0x176   : > { %v3670_v31 = vpop.permute.xlu1 %3669  ;;  %6423 = vst [vmem:[#allocation12_spill] sm:$0xff] %v5164_v35  ;;  %v909_v11 = vsel %vm907_vm4, %v904_v51, %v6425_v53  ;;  %v6428_v53 = vld [vmem:[#allocation45_spill] sm:$0xff] }
 0x177   : > { %v1312_v46 = vmul.f32 %v6428_v53, %v1144_v36  ;;  %v1311_v36 = vmul.f32 %v6434_v21, %v1145_v44  ;;  %v3671_v29 = vunpack.i.l.bf16 %v3670_v31  ;;  %v3999_v21 = vld [vmem:[%s6212_s4 + $0xe0] sm:$0xff]  ;;  %v3691_v44 = vunpack.i.l.bf16 %v5061_v34 }
 0x178   : > { %1495 = vperm.xlu0 %3884, %v5164_v35   ;;  %v848_v35 = vmul.f32 %v6431_v23, %v645_v26 }
 0x179   : > { %v1062_v3 = vpop.permute.xlu0 %1061  ;;  %3816 = vrot.lane.b32.xlu1 %v3815_v37, %s4021_s10  ;;  %v910_v37 = vsel %vm907_vm4, %v903_v57, %v904_v51  ;;  %v6435_v51 = vrot.slane %v4447_v50, 6  ;;  %v3825_v18 = vpack.i.bf16 %v1312_v46, %v1311_v36 }
 0x17a   : > { %v5180_v45 = vmul.f32 %v1062_v3, %v909_v11  ;;  %v5182_v20 = vpop.permute.xlu1 %3674  ;;  %v911_v3 = vsel %vm907_vm4, %v6429_v39, %v903_v57  ;;  %v6430_v11 = vld [vmem:[#allocation16_spill] sm:$0xff]  ;;  %v1097_v57 = vmul.f32 %v5048_v48, %v910_v37  ;;  %v3672_v48 = vunpack.i.h.bf16 %v3670_v31 }
 0x17b   : > { %v646_v25 = vsel %vm618_vm5, %v6435_v51, %v588_v52  ;;  %v1096_v39 = vmul.f32 %v5031_v24, %v911_v3  ;;  %v6437_v51 = vld [vmem:[#allocation49_spill] sm:$0xff] }
 0x17c   : > { %6427 = vst [vmem:[#allocation15_spill] sm:$0xff] %v5180_v45  ;;  %1499 = vperm.xlu0 %3884, %v6430_v11   ;;  %v6432_v45 = vld [vmem:[#allocation30_spill] sm:$0xff] }
 0x17d   : > { %v1331_v61 = vrot.slane %v6432_v45, 2  ;;  %3821 = vrot.lane.b32.xlu1 %v3820_v0, %s4020_s13  ;;  %v6287_v0 = vrot.slane %v6433_v7, 6  ;;  %v590_v52 = vrot.slane %v6432_v45, 6 }
 0x17e   : > { %v3680_v53 = vpop.permute.xlu1 %3679  ;;  %v706_v8 = vpop.permute.xlu0 %705 }
 0x17f   : > { %v3682_v26 = vunpack.i.h.bf16 %v3680_v53  ;;  %v3681_v11 = vunpack.i.l.bf16 %v3680_v53  ;;  %v847_v23 = vmul.f32 %v706_v8, %v646_v25  ;;  %v6436_v8 = vrot.slane %v6421_v41, 2 }
 0x180   : > { %1503 = vperm.xlu0 %3884, %v3999_v21   ;;  %v3896_v53 = vpack.i.bf16 %v1097_v57, %v1096_v39  ;;  %v1121_v39 = vrot.slane %v4680_v1, 1 }
 0x181   : > { %v1939_v24 = vsel %vm1934_vm2, %v847_v23, %v3681_v11  ;;  %3826 = vrot.lane.b32.xlu1 %v3825_v18, %s4019_s30  ;;  %v1940_v25 = vsel %vm1934_vm2, %v848_v35, %v3682_v26  ;;  %v1383_v46 = vsel %vm1357_vm1, %v6436_v8, %v1331_v61  ;;  %v1382_v18 = vsel %vm1357_vm1, %v1331_v61, %v1332_v47  ;;  %v6438_v26 = vld [vmem:[#allocation32_spill] sm:$0xff]  ;;  %v6439_v23 = vld [vmem:[#allocation31_spill] sm:$0xff] }
 0x182   : > { %v5221_v37 = vpop.permute.xlu1 %3684  ;;  %v716_v3 = vpop.permute.xlu0 %715  ;;  %v1972_v36 = vsel %vm1967_vm6, %v1939_v24, %v3671_v29  ;;  %v1523_v21 = vmul.f32 %v6437_v51, %v1383_v46  ;;  %v643_v35 = vsel %vm618_vm5, %v590_v52, %v6287_v0  ;;  %v1333_v31 = vrot.slane %v6438_v26, 2  ;;  %v4000_v24 = vld [vmem:[%s6212_s4 + $0xa8] sm:$0xff]  ;;  %v6440_v8 = vld [vmem:[#allocation56_spill] sm:$0xff] }
 0x183   : > { %v2005_v11 = vsel %vm2000_vm7, %v1972_v36, %v3691_v44  ;;  %v1973_v29 = vsel %vm1967_vm6, %v1940_v25, %v3672_v48  ;;  %v3692_v61 = vunpack.i.h.bf16 %v5061_v34  ;;  %v850_v46 = vmul.f32 %v6440_v8, %v643_v35  ;;  %v6442_v34 = vld [vmem:[#allocation28_spill] sm:$0xff] }
 0x184   : > { %2234 = vmatmul.mubr.f32.vlgmr.msra.gmra.mxu1 %v2005_v11  ;;  %3897 = vrot.lane.b32.xlu0 %v3896_v53, %s4021_s10  ;;  %v6441_v36 = vrot.slane %v6421_v41, 6  ;;  %v3902_v51 = vpack.i.bf16 %v6422_v62, %v4810_v9  ;;  %v1524_v11 = vmul.f32 %v6442_v34, %v1382_v18  ;;  %v1381_v35 = vsel %vm1357_vm1, %v1332_v47, %v1333_v31 }
 0x185   : > { %3334 = vmatprep.mubr.msk.f32.mxu1 %vm1934_vm2, %v1523_v21  ;;  %790 = vperm.xlu1 %3804, %v4000_v24   ;;  %v2006_v57 = vsel %vm2000_vm7, %v1973_v29, %v3692_v61  ;;  %v3676_v8 = vunpack.i.l.bf16 %v5182_v20  ;;  %v6443_v29 = vrot.slane %v4718_v49, 1  ;;  %v3677_v61 = vunpack.i.h.bf16 %v5182_v20 }
 0x186   : > { %v644_v25 = vsel %vm618_vm5, %v6441_v36, %v590_v52  ;;  %v3695_v48 = vpop.permute.xlu1 %3694  ;;  %v726_v53 = vpop.permute.xlu0 %725  ;;  %v593_v52 = vrot.slane %v6439_v23, 6  ;;  %v3706_v36 = vunpack.i.l.bf16 %v5076_v58  ;;  %v6444_v34 = vrot.slane %v4697_v17, 1 }
 0x187   : > { %v849_v21 = vmul.f32 %v716_v3, %v644_v25  ;;  %v3697_v0 = vunpack.i.h.bf16 %v3695_v48  ;;  %v3696_v44 = vunpack.i.l.bf16 %v3695_v48  ;;  %v1142_v47 = vsel %vm1132_vm3, %v1121_v39, %v6443_v29 }
 0x188   : > { %2239 = vmatmul.mubr.f32.gmra.mxu1 %v2006_v57  ;;  %3903 = vrot.lane.b32.xlu0 %v3902_v51, %s4020_s13  ;;  %v592_v57 = vrot.slane %v6438_v26, 6  ;;  %v6448_v29 = vrot.slane %v6433_v7, 6 }
 0x189   : > { %3335 = vmatprep.mubr.msk.f32.mxu1 %vm1934_vm2, %v1524_v11  ;;  %3830 = vset.pattern.permute.xlu1 %v6378_v5  ;;  %v1941_v3 = vsel %vm1934_vm2, %v849_v21, %v3696_v44  ;;  %v1942_v18 = vsel %vm1934_vm2, %v850_v46, %v3697_v0  ;;  %v1143_v0 = vsel %vm1132_vm3, %v6444_v34, %v1121_v39  ;;  %v6445_v11 = vrot.slane %v6439_v23, 2  ;;  %v6446_v39 = vld [vmem:[#allocation36_spill] sm:$0xff] }
 0x18a   : > { %v5268_v25 = vpop.permute.xlu1 %3699  ;;  %v736_v48 = vpop.permute.xlu0 %735  ;;  %1475 = vperm.xlu1 %3830, %v4000_v24   ;;  %v1974_v51 = vsel %vm1967_vm6, %v1941_v3, %v3676_v8  ;;  %v1525_v44 = vmul.f32 %v4833_v16, %v1381_v35  ;;  %v1975_v24 = vsel %vm1967_vm6, %v1942_v18, %v3677_v61  ;;  %v1314_v21 = vmul.f32 %v4812_v12, %v1142_v47  ;;  %v6447_v35 = vld [vmem:[#allocation51_spill] sm:$0xff]  ;;  %v6449_v47 = vld [vmem:[#allocation33_spill] sm:$0xff] }
 0x18b   : > { %v2007_v46 = vsel %vm2000_vm7, %v1974_v51, %v3706_v36  ;;  %v1380_v20 = vsel %vm1357_vm1, %v1333_v31, %v6445_v11  ;;  %v641_v8 = vsel %vm618_vm5, %v592_v57, %v593_v52  ;;  %v594_v3 = vrot.slane %v6446_v39, 6 }
 0x18c   : > { %2244 = vmatmul.mubr.f32.gmra.mxu1 %v2007_v46  ;;  %1511 = vperm.xlu0 %3884, %v6383_v28   ;;  %v3707_v16 = vunpack.i.h.bf16 %v5076_v58  ;;  %v1313_v36 = vmul.f32 %v6447_v35, %v1143_v0  ;;  %v852_v31 = vmul.f32 %v4913_v2, %v641_v8  ;;  %v642_v28 = vsel %vm618_vm5, %v6448_v29, %v592_v57 }
 0x18d   : > { %3336 = vmatprep.mubr.msk.f32.mxu1 %vm1934_vm2, %v1525_v44  ;;  %v1526_v61 = vmul.f32 %v6449_v47, %v1380_v20  ;;  %v851_v51 = vmul.f32 %v726_v53, %v642_v28  ;;  %v1335_v2 = vrot.slane %v6446_v39, 2  ;;  %v6450_v44 = vld [vmem:[#allocation35_spill] sm:$0xff]  ;;  %v3686_v11 = vunpack.i.l.bf16 %v5221_v37 }
 0x18e   : > { %v3710_v18 = vpop.permute.xlu1 %3709  ;;  %v5295_v12 = vpop.permute.xlu0 %745  ;;  %3836 = vset.pattern.permute.xlu1 %v6348_v56  ;;  %v2008_v0 = vsel %vm2000_vm7, %v1975_v24, %v3707_v16  ;;  %v595_v46 = vrot.slane %v6450_v44, 6  ;;  %v1336_v57 = vrot.slane %v6450_v44, 2  ;;  %v3842_v8 = vpack.i.bf16 %v1314_v21, %v1313_v36 }
 0x18f   : > { %v3712_v58 = vunpack.i.h.bf16 %v3710_v18  ;;  %v3711_v34 = vunpack.i.l.bf16 %v3710_v18  ;;  %795 = vperm.xlu1 %3836, %v5109_v14   ;;  %v3721_v53 = vunpack.i.l.bf16 %v5125_v54  ;;  %v6451_v24 = vrot.slane %v6439_v23, 2 }
 0x190   : > { %2249 = vmatmul.mubr.f32.gmra.mxu1 %v2008_v0  ;;  %1515 = vperm.xlu0 %3884, %v4978_v63   ;;  %v3687_v35 = vunpack.i.h.bf16 %v5221_v37  ;;  %v640_v29 = vsel %vm618_vm5, %v593_v52, %v594_v3  ;;  %v1378_v52 = vsel %vm1357_vm1, %v1335_v2, %v1336_v57  ;;  %v1124_v0 = vrot.slane %v4752_v33, 1 }
 0x191   : > { %3337 = vmatprep.mubr.msk.f32.mxu1 %vm1934_vm2, %v1526_v61  ;;  %v1943_v14 = vsel %vm1934_vm2, %v851_v51, %v3711_v34  ;;  %v1944_v20 = vsel %vm1934_vm2, %v852_v31, %v3712_v58  ;;  %v1379_v16 = vsel %vm1357_vm1, %v6451_v24, %v1335_v2  ;;  %v853_v47 = vmul.f32 %v736_v48, %v640_v29  ;;  %v6452_v24 = vld [vmem:[#allocation39_spill] sm:$0xff] }
 0x192   : > { %v3725_v28 = vpop.permute.xlu1 %3724  ;;  %v5317_v21 = vpop.permute.xlu0 %685  ;;  %v1976_v36 = vsel %vm1967_vm6, %v1943_v14, %v3686_v11  ;;  %v1527_v18 = vmul.f32 %v4933_v4, %v1379_v16  ;;  %v1977_v37 = vsel %vm1967_vm6, %v1944_v20, %v3687_v35  ;;  %v639_v51 = vsel %vm618_vm5, %v594_v3, %v595_v46  ;;  %v4001_v14 = vld [vmem:[%s6212_s4 + $0xb8] sm:$0xff] }
 0x193   : > { %v3726_v61 = vunpack.i.l.bf16 %v3725_v28  ;;  %3843 = vrot.lane.b32.xlu1 %v3842_v8, %s4019_s30  ;;  %v2009_v31 = vsel %vm2000_vm7, %v1976_v36, %v3721_v53  ;;  %v3722_v4 = vunpack.i.h.bf16 %v5125_v54  ;;  %v3727_v48 = vunpack.i.h.bf16 %v3725_v28 }
 0x194   : > { %2254 = vmatmul.mubr.f32.gmra.mxu1 %v2009_v31  ;;  %1770 = vrot.lane.b32.xlu0 %v5140_v40, %s4020_s13  ;;  %v1123_v34 = vrot.slane %v4711_v10, 1  ;;  %v1337_v11 = vrot.slane %v4573_v13, 2  ;;  %v3701_v8 = vunpack.i.l.bf16 %v5268_v25  ;;  %v854_v3 = vmul.f32 %v4963_v19, %v639_v51 }
 0x195   : > { %3338 = vmatprep.mubr.msk.f32.mxu1 %vm1934_vm2, %v1527_v18  ;;  %v1945_v58 = vsel %vm1934_vm2, %v853_v47, %v3726_v61  ;;  %v1338_v54 = vrot.slane %v4557_v43, 2  ;;  %v2010_v20 = vsel %vm2000_vm7, %v1977_v37, %v3722_v4  ;;  %v1528_v16 = vmul.f32 %v6452_v24, %v1378_v52  ;;  %v6455_v24 = vld [vmem:[#allocation43_spill] sm:$0xff] }
 0x196   : > { %v5337_v53 = vpop.permute.xlu0 %690  ;;  %v3735_v2 = vpop.permute.xlu1 %3734  ;;  %v596_v35 = vrot.slane %v4573_v13, 6  ;;  %v1978_v29 = vsel %vm1967_vm6, %v1945_v58, %v3701_v8  ;;  %v3731_v28 = vunpack.i.l.bf16 %v5150_v27  ;;  %v1946_v19 = vsel %vm1934_vm2, %v854_v3, %v3727_v48 }
 0x197   : > { %800 = vperm.xlu1 %3836, %v4001_v14   ;;  %v6453_v36 = vrot.slane %v4718_v49, 1  ;;  %v1140_v47 = vsel %vm1132_vm3, %v1123_v34, %v1124_v0  ;;  %v1377_v61 = vsel %vm1357_vm1, %v1336_v57, %v1337_v11  ;;  %v3702_v31 = vunpack.i.h.bf16 %v5268_v25 }
 0x198   : > { %2259 = vmatmul.mubr.f32.gmra.mxu1 %v2010_v20  ;;  %v1529_v51 = vmul.f32 %v5001_v22, %v1377_v61  ;;  %v3736_v4 = vunpack.i.l.bf16 %v3735_v2  ;;  %v6454_v48 = vpack.i.bf16 %v4896_v15, %v4894_v42  ;;  %v2011_v58 = vsel %vm2000_vm7, %v1978_v29, %v3731_v28 }
 0x199   : > { %3339 = vmatprep.mubr.msk.f32.mxu1 %vm1934_vm2, %v1528_v16  ;;  %v1141_v18 = vsel %vm1132_vm3, %v6453_v36, %v1123_v34  ;;  %v1376_v34 = vsel %vm1357_vm1, %v1337_v11, %v1338_v54  ;;  %v597_v57 = vrot.slane %v4557_v43, 6  ;;  %v638_v25 = vsel %vm618_vm5, %v595_v46, %v596_v35 }
 0x19a   : > { %v5362_v37 = vpop.permute.xlu0 %765  ;;  %v3740_v52 = vpop.permute.xlu1 %3739  ;;  %v1979_v8 = vsel %vm1967_vm6, %v1946_v19, %v3702_v31  ;;  %v1316_v22 = vmul.f32 %v4923_v32, %v1140_v47  ;;  %v3732_v3 = vunpack.i.h.bf16 %v5150_v27  ;;  %v855_v42 = vmul.f32 %v5295_v12, %v638_v25  ;;  %v6456_v31 = vld [vmem:[#allocation11_spill] sm:$0xff] }
 0x19b   : > { %3848 = vrot.lane.b32.xlu1 %v6454_v48, %s4021_s10  ;;  %v3852_v15 = vpack.i.bf16 %v4711_v10, %v4718_v49  ;;  %v1315_v11 = vmul.f32 %v4855_v38, %v1141_v18  ;;  %v1339_v14 = vrot.slane %v4601_v59, 2  ;;  %v1530_v16 = vmul.f32 %v6455_v24, %v1376_v34  ;;  %v6460_v24 = vld [vmem:[#allocation57_spill] sm:$0xff] }
 0x19c   : > { %2264 = vmatmul.mubr.f32.gmra.mxu1 %v2011_v58  ;;  %v3737_v32 = vunpack.i.h.bf16 %v3735_v2  ;;  %v3741_v29 = vunpack.i.l.bf16 %v3740_v52  ;;  %v2012_v27 = vsel %vm2000_vm7, %v1979_v8, %v3732_v3  ;;  %v1947_v12 = vsel %vm1934_vm2, %v855_v42, %v3736_v4  ;;  %v6459_v3 = vld [vmem:[#allocation9_spill] sm:$0xff] }
 0x19d   : > { %3340 = vmatprep.mubr.msk.f32.mxu1 %vm1934_vm2, %v1529_v51  ;;  %v637_v38 = vsel %vm618_vm5, %v596_v35, %v597_v57  ;;  %v3716_v28 = vunpack.i.l.bf16 %v5098_v60  ;;  %v3857_v19 = vpack.i.bf16 %v1316_v22, %v1315_v11  ;;  %v1375_v2 = vsel %vm1357_vm1, %v1338_v54, %v1339_v14  ;;  %v6457_v54 = vld [vmem:[#allocation22_spill] sm:$0xff]  ;;  %v4002_v11 = vld [vmem:[%s6212_s4 + $0xc8] sm:$0xff] }
 0x19e   : > { %v5384_v20 = vpop.permute.xlu1 %760  ;;  %v5386_v46 = vpop.permute.xlu0 %3755  ;;  %v856_v36 = vmul.f32 %v5037_v6, %v637_v38  ;;  %v6289_v18 = vrot.slane %v4582_v55, 2  ;;  %v1531_v51 = vmul.f32 %v6456_v31, %v1375_v2  ;;  %v3742_v35 = vunpack.i.h.bf16 %v3740_v52  ;;  %v6462_v2 = vld [vmem:[#allocation5_spill] sm:$0xff]  ;;  %v6463_v31 = vld [vmem:[#allocation2_spill] sm:$0xff] }
 0x19f   : > { %3853 = vrot.lane.b32.xlu1 %v3852_v15, %s4020_s13  ;;  %v1980_v61 = vsel %vm1967_vm6, %v1947_v12, %v3716_v28  ;;  %v3717_v58 = vunpack.i.h.bf16 %v5098_v60  ;;  %v6288_v34 = vrot.slane %v6457_v54, 6  ;;  %v6458_v25 = vrot.slane %v4447_v50, 6 }
 0x1a0   : > { %2269 = vmatmul.mubr.f32.gmra.mxu1 %v2012_v27  ;;  %v2013_v6 = vsel %vm2000_vm7, %v1980_v61, %v3741_v29  ;;  %v1948_v48 = vsel %vm1934_vm2, %v856_v36, %v3737_v32  ;;  %v1374_v52 = vsel %vm1357_vm1, %v1339_v14, %v6289_v18  ;;  %v6461_v29 = vld [vmem:[#allocation52_spill] sm:$0xff]  ;;  %v6478_v13 = vrot.slane %v4582_v55, 2 }
 0x1a1   : > { %3341 = vmatprep.mubr.msk.f32.mxu1 %vm1934_vm2, %v1530_v16  ;;  %v647_v8 = vsel %vm618_vm5, %v6288_v34, %v6458_v25  ;;  %v1981_v60 = vsel %vm1967_vm6, %v1948_v48, %v3717_v58  ;;  %v1532_v42 = vmul.f32 %v6459_v3, %v1374_v52  ;;  %v1126_v16 = vrot.slane %v6460_v24, 1  ;;  %v6464_v48 = vld [vmem:[#allocation12_spill] sm:$0xff]  ;;  %v6465_v25 = vld [vmem:[#allocation55_spill] sm:$0xff] }
 0x1a2   : > { %v5402_v47 = vpop.permute.xlu0 %3760  ;;  %v2014_v14 = vsel %vm2000_vm7, %v1981_v60, %v3742_v35  ;;  %v1125_v27 = vrot.slane %v6461_v29, 1  ;;  %v901_v35 = vrot.slane %v6460_v24, 7  ;;  %v1127_v60 = vrot.slane %v6465_v25, 1 }
 0x1a3   : > { %v5406_v4 = vpop.permute.xlu1 %1282  ;;  %3858 = vrot.lane.b32.xlu1 %v3857_v19, %s4019_s30  ;;  %v3758_v3 = vunpack.i.h.bf16 %v5386_v46  ;;  %v6480_v44 = vrot.slane %v4697_v17, 6 }
 0x1a4   : > { %2274 = vmatmul.mubr.f32.gmra.mxu1 %v2013_v6  ;;  %v1138_v38 = vsel %vm1132_vm3, %v1125_v27, %v1126_v16  ;;  %v1139_v19 = vsel %vm1132_vm3, %v1124_v0, %v1125_v27  ;;  %v6468_v27 = vld [vmem:[#allocation60_spill] sm:$0xff] }
 0x1a5   : > { %3342 = vmatprep.mubr.msk.f32.mxu1 %vm1934_vm2, %v1531_v51  ;;  %v1318_v61 = vmul.f32 %v6462_v2, %v1138_v38  ;;  %v1317_v51 = vmul.f32 %v6463_v31, %v1139_v19  ;;  %v6293_v38 = vrot.slane %v6468_v27, 6  ;;  %v6469_v19 = vld [vmem:[#allocation46_spill] sm:$0xff] }
 0x1a6   : > { %v701_v22 = vpop.permute.xlu0 %700 }
 0x1a7   : > { %v5426_v15 = vmul.f32 %v701_v22, %v647_v8  ;;  %810 = vperm.xlu1 %3836, %v4002_v11   ;;  %v3874_v52 = vpack.i.bf16 %v1318_v61, %v1317_v51  ;;  %v6466_v8 = vrot.slane %v6465_v25, 7  ;;  %v6290_v22 = vrot.slane %v4601_v59, 6  ;;  %v6470_v61 = vld [vmem:[#allocation50_spill] sm:$0xff] }
 0x1a8   : > { %v5433_v32 = vpop.permute.xlu1 %1395  ;;  %2279 = vmatmul.mubr.f32.gmra.mxu1 %v2014_v14  ;;  %v6292_v14 = vrot.slane %v4810_v9, 1 }
 0x1a9   : > { %3343 = vmatprep.mubr.msk.f32.mxu1 %vm1934_vm2, %v1532_v42  ;;  %v912_v0 = vsel %vm907_vm4, %v901_v35, %v6466_v8  ;;  %v6467_v42 = vrot.slane %v6461_v29, 7  ;;  %v3757_v8 = vunpack.i.l.bf16 %v5386_v46  ;;  %v6477_v46 = vrot.slane %v6469_v19, 2 }
 0x1aa   : > { %v5437_v12 = vpop.permute.xlu0 %3774  ;;  %v1095_v31 = vmul.f32 %v6470_v61, %v912_v0  ;;  %v6473_v0 = vld [vmem:[#allocation53_spill] sm:$0xff]  ;;  %v1136_v34 = vsel %vm1132_vm3, %v1127_v60, %v6292_v14 }
 0x1ab   : > { %3862 = vset.pattern.permute.xlu1 %v6378_v5  ;;  %v4003_v14 = vld [vmem:[%s6212_s4 + $0xd8] sm:$0xff] }
 0x1ac   : > { %v1452_v28 = vpop.permute.xlu1 %1451  ;;  %1491 = vperm.xlu1 %3862, %v4002_v11   ;;  %v913_v11 = vsel %vm907_vm4, %v6467_v42, %v901_v35  ;;  %v636_v35 = vsel %vm618_vm5, %v597_v57, %v6290_v22  ;;  %v6472_v42 = vld [vmem:[#allocation19_spill] sm:$0xff]  ;;  %v6475_v22 = vld [vmem:[#allocation18_spill] sm:$0xff] }
 0x1ad   : > { %v6294_v2 = vrot.slane %v6472_v42, 6  ;;  %v1094_v61 = vmul.f32 %v6473_v0, %v913_v11  ;;  %v6476_v11 = vrot.slane %v6475_v22, 2 }
 0x1ae   : > { %v5446_v36 = vpop.permute.xlu0 %775 }
 0x1af   : > { %v650_v57 = vsel %vm618_vm5, %v6293_v38, %v6294_v2  ;;  %v3879_v38 = vpack.i.bf16 %v1095_v31, %v1094_v61  ;;  %v6479_v2 = vld [vmem:[#allocation7_spill] sm:$0xff] }
 0x1b0   : > { %3868 = vset.pattern.permute.xlu1 %v6348_v56  ;;  %v857_v43 = vmul.f32 %v6479_v2, %v636_v35  ;;  %v843_v39 = vmul.f32 %v5317_v21, %v650_v57  ;;  %v3763_v2 = vunpack.i.h.bf16 %v5402_v47  ;;  %v3762_v21 = vunpack.i.l.bf16 %v5402_v47 }
 0x1b1   : > { %v5452_v6 = vpop.permute.xlu1 %695  ;;  %815 = vperm.xlu1 %3868, %v6464_v48   ;;  %v6471_v48 = vld [vmem:[#allocation47_spill] sm:$0xff] }
 0x1b2   : > { %v5455_v58 = vpop.permute.xlu0 %3806  ;;  %v1935_v31 = vsel %vm1934_vm2, %v843_v39, %v3757_v8  ;;  %v1949_v35 = vsel %vm1934_vm2, %v857_v43, %v3758_v3 }
 0x1b5   : > { %3875 = vrot.lane.b32.xlu1 %v3874_v52, %s4019_s30  ;;  %v1137_v52 = vsel %vm1132_vm3, %v1126_v16, %v1127_v60  ;;  %v6474_v16 = vrot.slane %v6457_v54, 2  ;;  %v1373_v60 = vsel %vm1357_vm1, %v6478_v13, %v6477_v46 }
 0x1b6   : > { %v5473_v51 = vpop.permute.xlu1 %1286  ;;  %v786_v18 = vpop.permute.xlu0 %785  ;;  %v1533_v47 = vmul.f32 %v1452_v28, %v1373_v60  ;;  %v6302_v60 = vrot.slane %v4752_v33, 6 }
 0x1b7   : > { %v1387_v0 = vsel %vm1357_vm1, %v6476_v11, %v6474_v16  ;;  %v6481_v16 = vrot.slane %v6471_v48, 6 }
 0x1b8   : > { %v1519_v8 = vmul.f32 %v5433_v32, %v1387_v0  ;;  %v6485_v32 = vld [vmem:[#allocation3_spill] sm:$0xff]  ;;  %v6303_v0 = vrot.slane %v4711_v10, 6 }
 0x1b9   : > { %820 = vperm.xlu1 %3868, %v4003_v14   ;;  %v630_v11 = vsel %vm618_vm5, %v6481_v16, %v6480_v44  ;;  %v6482_v44 = vrot.slane %v6468_v27, 7  ;;  %v1319_v28 = vmul.f32 %v6485_v32, %v1137_v52  ;;  %v6486_v32 = vrot.slane %v6472_v42, 6 }
 0x1ba   : > { %v3751_v26 = vpop.permute.xlu1 %3750  ;;  %v5522_v23 = vpop.permute.xlu0 %3832  ;;  %v863_v13 = vmul.f32 %v786_v18, %v630_v11  ;;  %v6483_v18 = vrot.slane %v5140_v40, 7  ;;  %v626_v52 = vsel %vm618_vm5, %v6303_v0, %v6302_v60  ;;  %v6490_v60 = vld [vmem:[#allocation44_spill] sm:$0xff] }
 0x1bb   : > { %v3753_v46 = vunpack.i.h.bf16 %v3751_v26  ;;  %v3752_v45 = vunpack.i.l.bf16 %v3751_v26  ;;  %v3834_v14 = vunpack.i.l.bf16 %v5522_v23  ;;  %v1342_v0 = vrot.slane %v6490_v60, 2 }
 0x1bc   : > { %v908_v26 = vsel %vm907_vm4, %v6483_v18, %v6482_v44  ;;  %v4004_v44 = vld [vmem:[%s6212_s4 + $0xe8] sm:$0xff] }
 0x1bd   : > { %v1968_v61 = vsel %vm1967_vm6, %v1935_v31, %v3752_v45  ;;  %3880 = vrot.lane.b32.xlu1 %v3879_v38, %s4021_s10  ;;  %v1982_v57 = vsel %vm1967_vm6, %v1949_v35, %v3753_v46  ;;  %v1955_v39 = vsel %vm1934_vm2, %v863_v13, %v3834_v14  ;;  %v6484_v38 = vld [vmem:[#allocation6_spill] sm:$0xff]  ;;  %v3885_v13 = vpack.i.bf16 %v6465_v25, %v6460_v24 }
 0x1be   : > { %v1066_v16 = vpop.permute.xlu1 %1065  ;;  %v5540_v43 = vpop.permute.xlu0 %3838  ;;  %v2001_v45 = vsel %vm2000_vm7, %v1968_v61, %v3762_v21  ;;  %v2015_v3 = vsel %vm2000_vm7, %v1982_v57, %v3763_v2  ;;  %v1320_v11 = vmul.f32 %v6484_v38, %v1136_v34  ;;  %v6304_v57 = vrot.slane %v6475_v22, 6 }
 0x1bf   : > { %v1099_v31 = vmul.f32 %v1066_v16, %v908_v26  ;;  %v3840_v7 = vunpack.i.l.bf16 %v5540_v43  ;;  %2214 = vmatmul.mubr.f32.vlgmr.msra.gmra.mxu0 %v2001_v45  ;;  %2284 = vmatmul.mubr.f32.gmra.mxu1 %v2015_v3  ;;  %v599_v16 = vrot.slane %v4582_v55, 6  ;;  %v1130_v45 = vrot.slane %v5140_v40, 1 }
 0x1c0   : > { %3330 = vmatprep.mubr.msk.f32.mxu0 %vm1934_vm2, %v1519_v8  ;;  %3344 = vmatprep.mubr.msk.f32.mxu1 %vm1934_vm2, %v1533_v47  ;;  %v3890_v14 = vpack.i.bf16 %v1320_v11, %v1319_v28  ;;  %v1129_v47 = vrot.slane %v6422_v62, 1  ;;  %v1131_v3 = vrot.slane %v6468_v27, 1  ;;  %v649_v28 = vsel %vm618_vm5, %v6486_v32, %v6304_v57 }
 0x1c1   : > { %3886 = vrot.lane.b32.xlu1 %v3885_v13, %s4020_s13  ;;  %1644 = vrot.lane.b32.xlu0 %v1099_v31, %s4021_s10  ;;  %v5554_v34 = vsel %vm1967_vm6, %v1955_v39, %v3840_v7  ;;  %v6489_v32 = vrot.slane %v4810_v9, 1  ;;  %v1328_v57 = vrot.slane %v4447_v50, 2 }
 0x1c2   : > { %v806_v46 = vpop.permute.xlu0 %805 }
 0x1c3   : > { %v1456_v2 = vpop.permute.xlu1 %1455  ;;  %v867_v7 = vmul.f32 %v806_v46, %v626_v52  ;;  %v6487_v46 = vrot.slane %v4601_v59, 6  ;;  %v6491_v59 = vld [vmem:[#allocation54_spill] sm:$0xff] }
 0x1c5   : > { %3891 = vrot.lane.b32.xlu1 %v3890_v14, %s4019_s30  ;;  %v1134_v14 = vsel %vm1132_vm3, %v1129_v47, %v1130_v45 }
 0x1c6   : > { %v5565_v21 = vpop.permute.xlu0 %3864 }
 0x1c7   : > { %v3866_v35 = vunpack.i.l.bf16 %v5565_v21  ;;  %v3768_v61 = vpop.permute.xlu1 %3767 }
 0x1c8   : > { %v3770_v31 = vunpack.i.h.bf16 %v3768_v61  ;;  %v3769_v13 = vunpack.i.l.bf16 %v3768_v61  ;;  %v844_v61 = vmul.f32 %v5337_v53, %v649_v28  ;;  %v4005_v53 = vld [vmem:[%s6212_s4 + $0xf0] sm:$0xff]  ;;  %v3776_v28 = vunpack.i.l.bf16 %v5437_v12 }
 0x1c9   : > { %830 = vperm.xlu1 %3868, %v4004_v44   ;;  %v1959_v18 = vsel %vm1934_vm2, %v867_v7, %v3866_v35  ;;  %v6488_v7 = vrot.slane %v6472_v42, 1 }
 0x1ca   : > { %v5572_v26 = vpop.permute.xlu0 %3870 }
 0x1cb   : > { %v3872_v39 = vunpack.i.l.bf16 %v5572_v26  ;;  %v5576_v8 = vpop.permute.xlu1 %770  ;;  %v1164_v35 = vsel %vm1132_vm3, %v1131_v3, %v6488_v7 }
 0x1cd   : > { %3895 = vset.pattern.permute.xlu1 %v6378_v5  ;;  %v5584_v38 = vsel %vm1967_vm6, %v1959_v18, %v3872_v39  ;;  %v635_v5 = vsel %vm618_vm5, %v6487_v46, %v599_v16  ;;  %v1322_v18 = vmul.f32 %v5406_v4, %v1134_v14  ;;  %v1135_v46 = vsel %vm1132_vm3, %v6489_v32, %v1129_v47 }
 0x1ce   : > { %1507 = vperm.xlu1 %3895, %v4004_v44   ;;  %v5586_v11 = vpop.permute.xlu0 %825  ;;  %v858_v44 = vmul.f32 %v5384_v20, %v635_v5  ;;  %v1321_v7 = vmul.f32 %v6491_v59, %v1135_v46  ;;  %v1936_v20 = vsel %vm1934_vm2, %v844_v61, %v3769_v13  ;;  %v3777_v47 = vunpack.i.h.bf16 %v5437_v12 }
 0x1d0   : > { %v1291_v52 = vpop.permute.xlu1 %1290  ;;  %v1950_v4 = vsel %vm1934_vm2, %v858_v44, %v3770_v31  ;;  %v3907_v14 = vpack.i.bf16 %v1322_v18, %v1321_v7  ;;  %v1969_v31 = vsel %vm1967_vm6, %v1936_v20, %v3776_v28  ;;  %v600_v20 = vrot.slane %v6469_v19, 6 }
 0x1d1   : > { %v1324_v39 = vmul.f32 %v1291_v52, %v1164_v35  ;;  %v6492_v35 = vrot.slane %v6469_v19, 2  ;;  %v1983_v61 = vsel %vm1967_vm6, %v1950_v4, %v3777_v47  ;;  %v1133_v4 = vsel %vm1132_vm3, %v1130_v45, %v1131_v3 }
 0x1d2   : > { %3901 = vset.pattern.permute.xlu1 %v6348_v56  ;;  %v634_v28 = vsel %vm618_vm5, %v599_v16, %v600_v20 }
 0x1d3   : > { %835 = vperm.xlu1 %3901, %v4005_v53   ;;  %1900 = vrot.lane.b32.xlu0 %v1324_v39, %s4019_s30  ;;  %v1400_v56 = vpop.permute.xlu0 %1399  ;;  %v1372_v32 = vsel %vm1357_vm1, %v6492_v35, %v1342_v0  ;;  %v6493_v39 = vrot.slane %v6457_v54, 2  ;;  %v6497_v35 = vld [vmem:[#allocation48_spill] sm:$0xff]  ;;  %v859_v45 = vmul.f32 %v5362_v37, %v634_v28 }
 0x1d4   : > { %v3780_v5 = vpop.permute.xlu1 %3779  ;;  %v1534_v12 = vmul.f32 %v1456_v2, %v1372_v32  ;;  %v6494_v2 = vld [vmem:[#allocation15_spill] sm:$0xff]  ;;  %v1343_v32 = vrot.slane %v6497_v35, 2 }
 0x1d5   : > { %v3782_v52 = vunpack.i.h.bf16 %v3780_v5  ;;  %v3781_v59 = vunpack.i.l.bf16 %v3780_v5  ;;  %v1386_v13 = vsel %vm1357_vm1, %v6493_v39, %v1328_v57 }
 0x1d6   : > { %v1520_v44 = vmul.f32 %v1400_v56, %v1386_v13  ;;  %v1323_v56 = vmul.f32 %v5473_v51, %v1133_v4  ;;  %v1371_v37 = vsel %vm1357_vm1, %v1342_v0, %v1343_v32 }
 0x1d7   : > { %3908 = vrot.lane.b32.xlu1 %v3907_v14, %s4019_s30  ;;  %v2002_v18 = vsel %vm2000_vm7, %v1969_v31, %v3781_v59  ;;  %v2016_v46 = vsel %vm2000_vm7, %v1983_v61, %v3782_v52  ;;  %v6495_v52 = vrot.slane %v6457_v54, 6  ;;  %v1404_v51 = vpop.permute.xlu0 %1403 }
 0x1d8   : > { %v1460_v7 = vpop.permute.xlu1 %1459  ;;  %2219 = vmatmul.mubr.f32.gmra.mxu0 %v2002_v18  ;;  %2289 = vmatmul.mubr.f32.gmra.mxu1 %v2016_v46  ;;  %v6498_v18 = vld [vmem:[#allocation26_spill] sm:$0xff] }
 0x1d9   : > { %3331 = vmatprep.mubr.msk.f32.mxu0 %vm1934_vm2, %v1520_v44  ;;  %3345 = vmatprep.mubr.msk.f32.mxu1 %vm1934_vm2, %v1534_v12  ;;  %v6499_v46 = vrot.slane %v6498_v18, 2 }
 0x1db   : > { %840 = vperm.xlu1 %3901, %v4978_v63   ;;  %v6496_v63 = vrot.slane %v6475_v22, 6 }
 0x1dc   : > { %v3786_v53 = vpop.permute.xlu1 %3785 }
 0x1dd   : > { %v3788_v5 = vunpack.i.h.bf16 %v3786_v53  ;;  %v3787_v14 = vunpack.i.l.bf16 %v3786_v53  ;;  %v648_v59 = vsel %vm618_vm5, %v6496_v63, %v6495_v52  ;;  %v1385_v53 = vsel %vm1357_vm1, %v1328_v57, %v6499_v46 }
 0x1de   : > { %v845_v3 = vmul.f32 %v5452_v6, %v648_v59  ;;  %v1521_v4 = vmul.f32 %v1404_v51, %v1385_v53  ;;  %v1344_v59 = vrot.slane %v6471_v48, 2  ;;  %v1464_v51 = vpop.permute.xlu0 %1463 }
 0x1df   : > { %1642 = vrot.lane.b32.xlu1 %v6494_v2, %s4021_s10  ;;  %v1951_v44 = vsel %vm1934_vm2, %v859_v45, %v3788_v5  ;;  %v601_v5 = vrot.slane %v6490_v60, 6  ;;  %v3809_v45 = vunpack.i.h.bf16 %v5455_v58 }
 0x1e0   : > { %v3791_v47 = vpop.permute.xlu1 %3790  ;;  %v1937_v12 = vsel %vm1934_vm2, %v845_v3, %v3787_v14  ;;  %v3808_v3 = vunpack.i.l.bf16 %v5455_v58  ;;  %v602_v58 = vrot.slane %v6497_v35, 6 }
 0x1e1   : > { %v3793_v39 = vunpack.i.h.bf16 %v3791_v47  ;;  %v3792_v13 = vunpack.i.l.bf16 %v3791_v47  ;;  %v1535_v47 = vmul.f32 %v1460_v7, %v1371_v37  ;;  %v633_v7 = vsel %vm618_vm5, %v600_v20, %v601_v5 }
 0x1e2   : > { %v860_v63 = vmul.f32 %v5576_v8, %v633_v7  ;;  %v1370_v20 = vsel %vm1357_vm1, %v1343_v32, %v1344_v59  ;;  %v632_v32 = vsel %vm618_vm5, %v601_v5, %v602_v58  ;;  %v6500_v5 = vrot.slane %v6471_v48, 6 }
 0x1e3   : > { %1898 = vrot.lane.b32.xlu1 %v1323_v56, %s4019_s30  ;;  %v1970_v6 = vsel %vm1967_vm6, %v1937_v12, %v3792_v13  ;;  %v1984_v2 = vsel %vm1967_vm6, %v1951_v44, %v3793_v39  ;;  %v1536_v44 = vmul.f32 %v1464_v51, %v1370_v20 }
 0x1e4   : > { %v3796_v16 = vpop.permute.xlu1 %3795 }
 0x1e5   : > { %v3798_v31 = vunpack.i.h.bf16 %v3796_v16  ;;  %v3797_v61 = vunpack.i.l.bf16 %v3796_v16 }
 0x1e7   : > { %1772 = vrot.lane.b32.xlu1 %v6468_v27, %s4020_s13  ;;  %v2003_v28 = vsel %vm2000_vm7, %v1970_v6, %v3797_v61  ;;  %v2017_v56 = vsel %vm2000_vm7, %v1984_v2, %v3798_v31  ;;  %v1345_v2 = vrot.slane %v4697_v17, 2 }
 0x1e8   : > { %v3801_v14 = vpop.permute.xlu1 %3800  ;;  %2224 = vmatmul.mubr.f32.gmra.mxu0 %v2003_v28  ;;  %2294 = vmatmul.mubr.f32.gmra.mxu1 %v2017_v56  ;;  %v861_v28 = vmul.f32 %v5446_v36, %v632_v32 }
 0x1e9   : > { %3332 = vmatprep.mubr.msk.f32.mxu0 %vm1934_vm2, %v1521_v4  ;;  %3346 = vmatprep.mubr.msk.f32.mxu1 %vm1934_vm2, %v1535_v47  ;;  %v3803_v0 = vunpack.i.h.bf16 %v3801_v14  ;;  %v3802_v57 = vunpack.i.l.bf16 %v3801_v14  ;;  %v1468_v4 = vpop.permute.xlu0 %1467  ;;  %v605_v14 = vrot.slane %v4680_v1, 6 }
 0x1eb   : > { %v1938_v39 = vsel %vm1934_vm2, %v5426_v15, %v3802_v57  ;;  %v1952_v13 = vsel %vm1934_vm2, %v860_v63, %v3803_v0  ;;  %v1346_v0 = vrot.slane %v4680_v1, 2 }
 0x1ec   : > { %v781_v52 = vpop.permute.xlu1 %780  ;;  %v1971_v8 = vsel %vm1967_vm6, %v1938_v39, %v3808_v3  ;;  %v1985_v12 = vsel %vm1967_vm6, %v1952_v13, %v3809_v45  ;;  %v1369_v39 = vsel %vm1357_vm1, %v1344_v59, %v1345_v2  ;;  %v631_v13 = vsel %vm618_vm5, %v602_v58, %v6500_v5 }
 0x1ed   : > { %v1537_v3 = vmul.f32 %v1468_v4, %v1369_v39  ;;  %v862_v51 = vmul.f32 %v781_v52, %v631_v13  ;;  %v3841_v52 = vunpack.i.h.bf16 %v5540_v43 }
 0x1f0   : > { %v3812_v16 = vpop.permute.xlu1 %3811 }
 0x1f1   : > { %v3814_v31 = vunpack.i.h.bf16 %v3812_v16  ;;  %v3813_v61 = vunpack.i.l.bf16 %v3812_v16 }
 0x1f3   : > { %v2004_v15 = vsel %vm2000_vm7, %v1971_v8, %v3813_v61  ;;  %v2018_v46 = vsel %vm2000_vm7, %v1985_v12, %v3814_v31  ;;  %v1472_v61 = vpop.permute.xlu0 %1471  ;;  %v6501_v8 = vrot.slane %v4697_v17, 6  ;;  %v3835_v12 = vunpack.i.h.bf16 %v5522_v23 }
 0x1f4   : > { %v3817_v53 = vpop.permute.xlu1 %3816  ;;  %2229 = vmatmul.mubr.f32.gmra.mxu0 %v2004_v15  ;;  %2299 = vmatmul.mubr.f32.gmra.mxu1 %v2018_v46  ;;  %v1368_v46 = vsel %vm1357_vm1, %v1345_v2, %v1346_v0  ;;  %v1348_v2 = vrot.slane %v4711_v10, 2 }
 0x1f5   : > { %3347 = vmatprep.mubr.msk.f32.mxu1 %vm1934_vm2, %v1536_v44  ;;  %v3818_v6 = vunpack.i.l.bf16 %v3817_v53  ;;  %v3819_v57 = vunpack.i.h.bf16 %v3817_v53  ;;  %v629_v59 = vsel %vm618_vm5, %v6501_v8, %v605_v14  ;;  %v1538_v58 = vmul.f32 %v1472_v61, %v1368_v46 }
 0x1f7   : > { %v1953_v63 = vsel %vm1934_vm2, %v861_v28, %v3818_v6  ;;  %v1954_v15 = vsel %vm1934_vm2, %v862_v51, %v3819_v57  ;;  %v1480_v39 = vpop.permute.xlu0 %1479 }
 0x1f8   : > { %v3822_v37 = vpop.permute.xlu1 %3821 }
 0x1f9   : > { %v3823_v47 = vunpack.i.l.bf16 %v3822_v37  ;;  %v3824_v45 = vunpack.i.h.bf16 %v3822_v37 }
 0x1fb   : > { %v1986_v36 = vsel %vm1967_vm6, %v1953_v63, %v3823_v47  ;;  %v1987_v53 = vsel %vm1967_vm6, %v1954_v15, %v3824_v45  ;;  %v1347_v47 = vrot.slane %v4718_v49, 2 }
 0x1fc   : > { %v3827_v56 = vpop.permute.xlu1 %3826 }
 0x1fd   : > { %v3828_v7 = vunpack.i.l.bf16 %v3827_v56  ;;  %v3829_v16 = vunpack.i.h.bf16 %v3827_v56  ;;  %v1367_v56 = vsel %vm1357_vm1, %v1346_v0, %v1347_v47  ;;  %v1366_v13 = vsel %vm1357_vm1, %v1347_v47, %v1348_v2 }
 0x1fe   : > { %v1540_v45 = vmul.f32 %v1480_v39, %v1366_v13  ;;  %v606_v0 = vrot.slane %v4718_v49, 6  ;;  %v3873_v39 = vunpack.i.h.bf16 %v5572_v26 }
 0x1ff   : > { %v2019_v31 = vsel %vm2000_vm7, %v1986_v36, %v3828_v7  ;;  %v2020_v6 = vsel %vm2000_vm7, %v1987_v53, %v3829_v16 }
 0x200   : > { %v791_v20 = vpop.permute.xlu1 %790  ;;  %2304 = vmatmul.mubr.f32.gmra.mxu1 %v2019_v31  ;;  %v1484_v31 = vpop.permute.xlu0 %1483  ;;  %v628_v61 = vsel %vm618_vm5, %v605_v14, %v606_v0 }
 0x201   : > { %v864_v44 = vmul.f32 %v791_v20, %v629_v59  ;;  %3348 = vmatprep.mubr.msk.f32.mxu1 %vm1934_vm2, %v1537_v3 }
 0x203   : > { %v1956_v37 = vsel %vm1934_vm2, %v864_v44, %v3835_v12  ;;  %v609_v12 = vrot.slane %v6461_v29, 6  ;;  %v1350_v44 = vrot.slane %v6461_v29, 2 }
 0x204   : > { %2309 = vmatmul.mubr.f32.gmra.mxu1 %v2020_v6  ;;  %v1989_v23 = vsel %vm1967_vm6, %v1956_v37, %v3841_v52 }
 0x205   : > { %v1476_v32 = vpop.permute.xlu1 %1475  ;;  %3349 = vmatprep.mubr.msk.f32.mxu1 %vm1934_vm2, %v1538_v58  ;;  %v6502_v58 = vrot.slane %v4711_v10, 6 }
 0x206   : > { %v1539_v57 = vmul.f32 %v1476_v32, %v1367_v56  ;;  %v6503_v56 = vrot.slane %v4752_v33, 6 }
 0x207   : > { %v627_v37 = vsel %vm618_vm5, %v606_v0, %v6502_v58 }
 0x20a   : > { %v796_v4 = vpop.permute.xlu1 %795 }
 0x20b   : > { %v865_v8 = vmul.f32 %v796_v4, %v628_v61 }
 0x20e   : > { %v3844_v43 = vpop.permute.xlu1 %3843 }
 0x20f   : > { %v3845_v28 = vunpack.i.l.bf16 %v3844_v43  ;;  %v3846_v7 = vunpack.i.h.bf16 %v3844_v43  ;;  %v1488_v43 = vpop.permute.xlu0 %1487 }
 0x211   : > { %v2021_v63 = vsel %vm2000_vm7, %v5554_v34, %v3845_v28  ;;  %v2022_v36 = vsel %vm2000_vm7, %v1989_v23, %v3846_v7  ;;  %v1349_v34 = vrot.slane %v4752_v33, 2 }
 0x212   : > { %v801_v5 = vpop.permute.xlu1 %800  ;;  %2314 = vmatmul.mubr.f32.gmra.mxu1 %v2021_v63 }
 0x213   : > { %3350 = vmatprep.mubr.msk.f32.mxu1 %vm1934_vm2, %v1539_v57  ;;  %v1365_v53 = vsel %vm1357_vm1, %v1348_v2, %v1349_v34  ;;  %v866_v32 = vmul.f32 %v801_v5, %v627_v37  ;;  %v625_v2 = vsel %vm618_vm5, %v6503_v56, %v609_v12  ;;  %v3867_v57 = vunpack.i.h.bf16 %v5565_v21 }
 0x214   : > { %v1541_v23 = vmul.f32 %v1484_v31, %v1365_v53  ;;  %v1364_v5 = vsel %vm1357_vm1, %v1349_v34, %v1350_v44  ;;  %v1496_v31 = vpop.permute.xlu0 %1495  ;;  %v1352_v34 = vrot.slane %v6465_v25, 2 }
 0x216   : > { %v3849_v3 = vpop.permute.xlu1 %3848  ;;  %2319 = vmatmul.mubr.f32.gmra.mxu1 %v2022_v36 }
 0x217   : > { %3351 = vmatprep.mubr.msk.f32.mxu1 %vm1934_vm2, %v1540_v45  ;;  %v3850_v16 = vunpack.i.l.bf16 %v3849_v3  ;;  %v3851_v15 = vunpack.i.h.bf16 %v3849_v3  ;;  %v1542_v45 = vmul.f32 %v1488_v43, %v1364_v5 }
 0x218   : > { %v1500_v58 = vpop.permute.xlu0 %1499 }
 0x219   : > { %v1957_v46 = vsel %vm1934_vm2, %v865_v8, %v3850_v16  ;;  %v1958_v63 = vsel %vm1934_vm2, %v866_v32, %v3851_v15  ;;  %v1351_v16 = vrot.slane %v6460_v24, 2  ;;  %v611_v32 = vrot.slane %v6465_v25, 6 }
 0x21a   : > { %v3854_v51 = vpop.permute.xlu1 %3853 }
 0x21b   : > { %v3855_v20 = vunpack.i.l.bf16 %v3854_v51  ;;  %v3856_v14 = vunpack.i.h.bf16 %v3854_v51 }
 0x21d   : > { %v1990_v6 = vsel %vm1967_vm6, %v1957_v46, %v3855_v20  ;;  %v1991_v13 = vsel %vm1967_vm6, %v1958_v63, %v3856_v14  ;;  %v1363_v20 = vsel %vm1357_vm1, %v1350_v44, %v1351_v16  ;;  %v1362_v46 = vsel %vm1357_vm1, %v1351_v16, %v1352_v34 }
 0x21e   : > { %v3859_v59 = vpop.permute.xlu1 %3858  ;;  %v1544_v53 = vmul.f32 %v1496_v31, %v1362_v46  ;;  %v610_v44 = vrot.slane %v6460_v24, 6 }
 0x21f   : > { %v3860_v52 = vunpack.i.l.bf16 %v3859_v59  ;;  %v3861_v4 = vunpack.i.h.bf16 %v3859_v59 }
 0x220   : > { %v623_v5 = vsel %vm618_vm5, %v610_v44, %v611_v32 }
 0x221   : > { %v2023_v47 = vsel %vm2000_vm7, %v1990_v6, %v3860_v52  ;;  %v2024_v3 = vsel %vm2000_vm7, %v1991_v13, %v3861_v4  ;;  %v1353_v4 = vrot.slane %v4810_v9, 2 }
 0x222   : > { %v811_v28 = vpop.permute.xlu1 %810  ;;  %2324 = vmatmul.mubr.f32.gmra.mxu1 %v2023_v47  ;;  %v624_v47 = vsel %vm618_vm5, %v609_v12, %v610_v44  ;;  %v613_v44 = vrot.slane %v6422_v62, 6 }
 0x223   : > { %v868_v7 = vmul.f32 %v811_v28, %v625_v2  ;;  %3352 = vmatprep.mubr.msk.f32.mxu1 %vm1934_vm2, %v1541_v23  ;;  %v1504_v23 = vpop.permute.xlu0 %1503  ;;  %v1354_v2 = vrot.slane %v6422_v62, 2 }
 0x225   : > { %v1960_v36 = vsel %vm1934_vm2, %v868_v7, %v3867_v57  ;;  %v1360_v31 = vsel %vm1357_vm1, %v1353_v4, %v1354_v2 }
 0x226   : > { %2329 = vmatmul.mubr.f32.gmra.mxu1 %v2024_v3  ;;  %v1993_v21 = vsel %vm1967_vm6, %v1960_v36, %v3873_v39  ;;  %v1361_v39 = vsel %vm1357_vm1, %v1352_v34, %v1353_v4 }
 0x227   : > { %v1492_v0 = vpop.permute.xlu1 %1491  ;;  %3353 = vmatprep.mubr.msk.f32.mxu1 %vm1934_vm2, %v1542_v45  ;;  %v1545_v36 = vmul.f32 %v1500_v58, %v1361_v39  ;;  %v3898_v12 = vpop.permute.xlu0 %3897 }
 0x228   : > { %v1543_v8 = vmul.f32 %v1492_v0, %v1363_v20  ;;  %v1546_v20 = vmul.f32 %v1504_v23, %v1360_v31  ;;  %v3899_v4 = vunpack.i.l.bf16 %v3898_v12 }
 0x22c   : > { %v816_v51 = vpop.permute.xlu1 %815 }
 0x22d   : > { %v869_v28 = vmul.f32 %v816_v51, %v624_v47 }
 0x230   : > { %v3876_v26 = vpop.permute.xlu1 %3875 }
 0x231   : > { %v3877_v61 = vunpack.i.l.bf16 %v3876_v26  ;;  %v3878_v59 = vunpack.i.h.bf16 %v3876_v26 }
 0x233   : > { %v2025_v15 = vsel %vm2000_vm7, %v5584_v38, %v3877_v61  ;;  %v2026_v37 = vsel %vm2000_vm7, %v1993_v21, %v3878_v59 }
 0x234   : > { %v821_v52 = vpop.permute.xlu1 %820  ;;  %2334 = vmatmul.mubr.f32.gmra.mxu1 %v2025_v15  ;;  %v3904_v15 = vpop.permute.xlu0 %3903 }
 0x235   : > { %3354 = vmatprep.mubr.msk.f32.mxu1 %vm1934_vm2, %v1543_v8  ;;  %v870_v3 = vmul.f32 %v821_v52, %v623_v5 }
 0x238   : > { %v3881_v14 = vpop.permute.xlu1 %3880  ;;  %2339 = vmatmul.mubr.f32.gmra.mxu1 %v2026_v37  ;;  %v1512_v47 = vpop.permute.xlu0 %1511 }
 0x239   : > { %3355 = vmatprep.mubr.msk.f32.mxu1 %vm1934_vm2, %v1544_v53  ;;  %v3882_v38 = vunpack.i.l.bf16 %v3881_v14  ;;  %v3883_v57 = vunpack.i.h.bf16 %v3881_v14  ;;  %v612_v14 = vrot.slane %v4810_v9, 6 }
 0x23b   : > { %v1961_v63 = vsel %vm1934_vm2, %v869_v28, %v3882_v38  ;;  %v1962_v26 = vsel %vm1934_vm2, %v870_v3, %v3883_v57  ;;  %v3905_v28 = vunpack.i.l.bf16 %v3904_v15  ;;  %v621_v57 = vsel %vm618_vm5, %v612_v14, %v613_v44 }
 0x23c   : > { %v3887_v6 = vpop.permute.xlu1 %3886  ;;  %v3900_v3 = vunpack.i.h.bf16 %v3898_v12 }
 0x23d   : > { %v3888_v43 = vunpack.i.l.bf16 %v3887_v6  ;;  %v3889_v13 = vunpack.i.h.bf16 %v3887_v6 }
 0x23f   : > { %v1994_v45 = vsel %vm1967_vm6, %v1961_v63, %v3888_v43  ;;  %v1995_v34 = vsel %vm1967_vm6, %v1962_v26, %v3889_v13  ;;  %v622_v43 = vsel %vm618_vm5, %v611_v32, %v612_v14 }
 0x240   : > { %v3892_v56 = vpop.permute.xlu1 %3891  ;;  %v871_v63 = vmul.f32 %v5586_v11, %v622_v43  ;;  %v614_v11 = vrot.slane %v5140_v40, 6 }
 0x241   : > { %v3893_v7 = vunpack.i.l.bf16 %v3892_v56  ;;  %v3894_v21 = vunpack.i.h.bf16 %v3892_v56  ;;  %v1355_v56 = vrot.slane %v5140_v40, 2 }
 0x242   : > { %v1963_v26 = vsel %vm1934_vm2, %v871_v63, %v3899_v4  ;;  %v620_v43 = vsel %vm618_vm5, %v613_v44, %v614_v11 }
 0x243   : > { %v2027_v0 = vsel %vm2000_vm7, %v1994_v45, %v3893_v7  ;;  %v2028_v8 = vsel %vm2000_vm7, %v1995_v34, %v3894_v21  ;;  %v1356_v21 = vrot.slane %v6468_v27, 2  ;;  %v1359_v31 = vsel %vm1357_vm1, %v1354_v2, %v1355_v56 }
 0x244   : > { %v5786_v51 = vpop.f32.mrf.mxu1  ;;  %v831_v16 = vpop.permute.xlu1 %830  ;;  %2344 = vmatmul.mubr.f32.gmra.mxu1 %v2027_v0  ;;  %v1996_v34 = vsel %vm1967_vm6, %v1963_v26, %v3905_v28 }
 0x245   : > { %3356 = vmatprep.mubr.msk.f32.mxu1 %vm1934_vm2, %v1545_v36  ;;  %v2418_v52 = vsel %vm2374_vm8, %v5786_v51, -inf  ;;  %v872_v39 = vmul.f32 %v831_v16, %v621_v57  ;;  %v1358_v2 = vsel %vm1357_vm1, %v1355_v56, %v1356_v21 }
 0x246   : > { %v2237_v61 = vpop.f32.mrf.mxu1 }
 0x248   : > { %v5794_v59 = vpop.f32.mrf.mxu1  ;;  %2349 = vmatmul.mubr.f32.gmra.mxu1 %v2028_v8  ;;  %v1964_v8 = vsel %vm1934_vm2, %v872_v39, %v3900_v3 }
 0x249   : > { %v2419_v46 = vsel %vm2374_vm8, %v5794_v59, -inf  ;;  %v1508_v53 = vpop.permute.xlu1 %1507  ;;  %3357 = vmatprep.mubr.msk.f32.mxu1 %vm1934_vm2, %v1546_v20  ;;  %v1516_v20 = vpop.permute.xlu0 %1515 }
 0x24a   : > { %v2422_v58 = vmax.f32 %v2418_v52, %v2419_v46  ;;  %v2242_v37 = vpop.f32.mrf.mxu1  ;;  %v1547_v52 = vmul.f32 %v1508_v53, %v1359_v31  ;;  %v6505_v31 = vrot.slane %v6472_v42, 2 }
 0x24b   : > { %v3906_v37 = vunpack.i.h.bf16 %v3904_v15 }
 0x24c   : > { %v5803_v6 = vpop.f32.mrf.mxu1 }
 0x24d   : > { %v2420_v5 = vsel %vm2374_vm8, %v5803_v6, -inf  ;;  %v1997_v53 = vsel %vm1967_vm6, %v1964_v8, %v3906_v37  ;;  %v1771_v44 = vpop.permute.xlu0 %1770 }
 0x24e   : > { %v2247_v23 = vpop.f32.mrf.mxu1  ;;  %v836_v38 = vpop.permute.xlu1 %835 }
 0x24f   : > { %v873_v63 = vmul.f32 %v836_v38, %v620_v43  ;;  %v6504_v38 = vrot.slane %v6468_v27, 6 }
 0x250   : > { %v5810_v7 = vpop.f32.mrf.mxu1 }
 0x251   : > { %v2421_v13 = vsel %vm2374_vm8, %v5810_v7, -inf  ;;  %v619_v3 = vsel %vm618_vm5, %v614_v11, %v6504_v38  ;;  %v1645_v37 = vpop.permute.xlu0 %1644 }
 0x252   : > { %v2423_v45 = vmax.f32 %v2420_v5, %v2421_v13  ;;  %v2252_v36 = vpop.f32.mrf.mxu1  ;;  %v3909_v32 = vpop.permute.xlu1 %3908 }
 0x253   : > { %v3910_v0 = vunpack.i.l.bf16 %v3909_v32  ;;  %v3911_v12 = vunpack.i.h.bf16 %v3909_v32 }
 0x254   : > { %v2424_v16 = vmax.f32 %v2422_v58, %v2423_v45  ;;  %v5822_v61 = vpop.f32.mrf.mxu1  ;;  %v1548_v58 = vmul.f32 %v1512_v47, %v1358_v2 }
 0x255   : > { %v2029_v46 = vsel %vm2000_vm7, %v1996_v34, %v3910_v0  ;;  %v2461_v15 = vsel %vm2374_vm8, %v5822_v61, -inf  ;;  %v2030_v56 = vsel %vm2000_vm7, %v1997_v53, %v3911_v12 }
 0x256   : > { %v2425_v14 = vrot.slane %v2424_v16, 4  ;;  %v2257_v23 = vpop.f32.mrf.mxu1  ;;  %v841_v4 = vpop.permute.xlu1 %840  ;;  %2354 = vmatmul.mubr.f32.gmra.mxu1 %v2029_v46 }
 0x257   : > { %3358 = vmatprep.mubr.msk.f32.mxu1 %vm1934_vm2, %v1547_v52  ;;  %v874_v26 = vmul.f32 %v841_v4, %v619_v3 }
 0x258   : > { %v2426_v28 = vmax.f32 %v2424_v16, %v2425_v14  ;;  %v5832_v57 = vpop.f32.mrf.mxu1  ;;  %v1389_v16 = vsel %vm1357_vm1, %v1356_v21, %v6505_v31 }
 0x259   : > { %v2462_v39 = vsel %vm2374_vm8, %v5832_v57, -inf  ;;  %v1549_v46 = vmul.f32 %v1516_v20, %v1389_v16  ;;  %v1966_v21 = vsel %vm1934_vm2, %v874_v26, %v1645_v37 }
 0x25a   : > { %v2427_v5 = vrot.slane %v2426_v28, 2  ;;  %v2465_v13 = vmax.f32 %v2461_v15, %v2462_v39  ;;  %v2262_v47 = vpop.f32.mrf.mxu1  ;;  %2359 = vmatmul.mubr.f32.gmra.mxu1 %v2030_v56  ;;  %v1643_v45 = vpop.permute.xlu1 %1642 }
 0x25b   : > { %v1965_v36 = vsel %vm1934_vm2, %v873_v63, %v1643_v45  ;;  %3359 = vmatprep.mubr.msk.f32.mxu1 %vm1934_vm2, %v1548_v58  ;;  %v1901_v15 = vpop.permute.xlu0 %1900 }
 0x25c   : > { %v2428_v32 = vmax.f32 %v2426_v28, %v2427_v5  ;;  %v2265_v0 = vpop.f32.mrf.mxu1  ;;  %v1998_v12 = vsel %vm1967_vm6, %v1965_v36, %v1771_v44 }
 0x25d   : > { %v2463_v11 = vsel %vm2374_vm8, %v2265_v0, -inf }
 0x25e   : > { %v2429_v34 = vrot.slane %v2428_v32, 1  ;;  %v2267_v8 = vpop.f32.mrf.mxu1  ;;  %v1899_v52 = vpop.permute.xlu1 %1898 }
 0x25f   : > { %v2031_v14 = vsel %vm2000_vm7, %v1998_v12, %v1899_v52 }
 0x260   : > { %v2430_v23 = vmax.f32 %v2428_v32, %v2429_v34  ;;  %v2270_v2 = vpop.f32.mrf.mxu1  ;;  %2364 = vmatmul.mubr.f32.gmra.mxu1 %v2031_v14 }
 0x261   : > { %v2464_v4 = vsel %vm2374_vm8, %v2270_v2, -inf  ;;  %3360 = vmatprep.mubr.msk.f32.mxu1 %vm1934_vm2, %v1549_v46 }
 0x262   : > { %v2431_v58 = vsub.f32 %v5786_v51, %v2430_v23  ;;  %v2432_v43 = vsub.f32 %v5794_v59, %v2430_v23  ;;  %v2433_v20 = vsub.f32 %v5803_v6, %v2430_v23  ;;  %v2434_v28 = vsub.f32 %v5810_v7, %v2430_v23  ;;  %v2272_v53 = vpop.f32.mrf.mxu1  ;;  %v1773_v63 = vpop.permute.xlu1 %1772 }
 0x263   : > { %v2466_v39 = vmax.f32 %v2463_v11, %v2464_v4  ;;  %v1999_v56 = vsel %vm1967_vm6, %v1966_v21, %v1773_v63 }
 0x264   : > { %v2435_v5 = vmul.f32 1.442695, %v2431_v58  ;;  %v2437_v47 = vmul.f32 1.442695, %v2432_v43  ;;  %v2439_v45 = vmul.f32 1.442695, %v2433_v20  ;;  %v5861_v44 = vpop.f32.mrf.mxu1  ;;  %v2032_v36 = vsel %vm2000_vm7, %v1999_v56, %v1901_v15 }
 0x265   : > { %v2441_v51 = vmul.f32 1.442695, %v2434_v28  ;;  %v2467_v32 = vmax.f32 %v2465_v13, %v2466_v39  ;;  %2369 = vmatmul.mubr.f32.gmra.mxu1 %v2032_v36 }
 0x266   : > { %3912 = vpow2.f32 %v2435_v5  ;;  %v2277_v59 = vpop.f32.mrf.mxu1 }
 0x267   : > { %3914 = vpow2.f32 %v2437_v47  ;;  %v2468_v6 = vrot.slane %v2467_v32, 4 }
 0x268   : > { %3916 = vpow2.f32 %v2439_v45  ;;  %v5864_v7 = vpop.f32.mrf.mxu1 }
 0x269   : > { %3918 = vpow2.f32 %v2441_v51  ;;  %v2469_v38 = vmax.f32 %v2467_v32, %v2468_v6 }
 0x26a   : > { %v2282_v3 = vpop.f32.mrf.mxu1 }
 0x26b   : > { %v2470_v26 = vrot.slane %v2469_v38, 2 }
 0x26d   : > { %v2471_v31 = vmax.f32 %v2469_v38, %v2470_v26 }
 0x26f   : > { %v2472_v16 = vrot.slane %v2471_v31, 1 }
 0x271   : > { %v2473_v34 = vmax.f32 %v2471_v31, %v2472_v16 }
 0x273   : > { %v3913_v8 = vpop.eup %3912  ;;  %v2474_v52 = vsub.f32 %v5822_v61, %v2473_v34  ;;  %v2475_v13 = vsub.f32 %v5832_v57, %v2473_v34  ;;  %v2476_v12 = vsub.f32 %v2265_v0, %v2473_v34  ;;  %v2477_v46 = vsub.f32 %v2270_v2, %v2473_v34 }
 0x274   : > { %v3915_v37 = vpop.eup %3914  ;;  %v2443_v14 = vsel %vm2374_vm8, %v3913_v8, 0.0 }
 0x275   : > { %v3917_v23 = vpop.eup %3916  ;;  %v2444_v11 = vsel %vm2374_vm8, %v3915_v37, 0.0  ;;  %v2478_v4 = vmul.f32 1.442695, %v2474_v52  ;;  %v2480_v21 = vmul.f32 1.442695, %v2475_v13 }
 0x276   : > { %v3919_v58 = vpop.eup %3918  ;;  %v2445_v43 = vadd.f32 %v2444_v11, %v2443_v14  ;;  %v2482_v20 = vmul.f32 1.442695, %v2476_v12  ;;  %v2484_v28 = vmul.f32 1.442695, %v2477_v46  ;;  %v2446_v53 = vsel %vm2374_vm8, %v3917_v23, 0.0 }
 0x277   : > { %3920 = vpow2.f32 %v2478_v4  ;;  %v2448_v57 = vsel %vm2374_vm8, %v3919_v58, 0.0 }
 0x278   : > { %v2447_v61 = vadd.f32 %v2446_v53, %v2445_v43  ;;  %3922 = vpow2.f32 %v2480_v21 }
 0x279   : > { %3924 = vpow2.f32 %v2482_v20 }
 0x27a   : > { %v2449_v0 = vadd.f32 %v2448_v57, %v2447_v61  ;;  %3926 = vpow2.f32 %v2484_v28  ;;  %v2505_v57 = vsel %vm2374_vm8, %v5864_v7, -inf }
 0x27c   : > { %v2450_v2 = vrot.slane %v2449_v0, 4 }
 0x27e   : > { %v2451_v63 = vadd.f32 %v2450_v2, %v2449_v0 }
 0x27f   : > { %v5872_v15 = vpop.f32.mrf.mxu0  ;;  %v5874_v39 = vpop.f32.mrf.mxu1 }
 0x280   : > { %v2452_v56 = vrot.slane %v2451_v63, 2 }
 0x281   : > { %v2217_v5 = vpop.f32.mrf.mxu0  ;;  %v2287_v47 = vpop.f32.mrf.mxu1 }
 0x282   : > { %v2453_v45 = vadd.f32 %v2452_v56, %v2451_v63  ;;  %v2504_v63 = vsel %vm2374_vm8, %v5861_v44, -inf }
 0x284   : > { %v3921_v36 = vpop.eup %3920  ;;  %v2454_v51 = vrot.slane %v2453_v45, 1 }
 0x285   : > { %v3923_v32 = vpop.eup %3922  ;;  %v2486_v59 = vsel %vm2374_vm8, %v3921_v36, 0.0 }
 0x286   : > { %v3925_v6 = vpop.eup %3924  ;;  %v2455_v38 = vadd.f32 %v2454_v51, %v2453_v45  ;;  %v2487_v3 = vsel %vm2374_vm8, %v3923_v32, 0.0  ;;  %v2720_v51 = vld [vmem:[%s6211_s3 + $0x8] sm:$0xf] }
 0x287   : > { %v3927_v26 = vpop.eup %3926  ;;  %v2488_v31 = vadd.f32 %v2487_v3, %v2486_v59  ;;  %v2489_v16 = vsel %vm2374_vm8, %v3925_v6, 0.0  ;;  %v2719_v59 = vld [vmem:[%s6211_s3] sm:$0xff]  ;;  %3517 = vmatprep.subr.msk.mxu0 %vm2817_vm9, %v2720_v51 }
 0x288   : > { %3928 = vrcp.f32 %v2455_v38  ;;  %v2491_v52 = vsel %vm2374_vm8, %v3927_v26, 0.0  ;;  %3518 = vmatpush3.msk.msra.mxu0 %vm2817_vm9, %v2720_v51 }
 0x289   : > { %v2490_v34 = vadd.f32 %v2489_v16, %v2488_v31  ;;  %3519 = vmatprep.subr.mxu0 %v2719_v59 }
 0x28a   : > { %3520 = vmatpush3.msra.mxu0 %v2719_v59 }
 0x28b   : > { %v2492_v13 = vadd.f32 %v2491_v52, %v2490_v34 }
 0x28d   : > { %v2493_v12 = vrot.slane %v2492_v13, 4 }
 0x28f   : > { %v2494_v46 = vadd.f32 %v2493_v12, %v2492_v13 }
 0x291   : > { %v2495_v14 = vrot.slane %v2494_v46, 2 }
 0x293   : > { %v2496_v11 = vadd.f32 %v2495_v14, %v2494_v46 }
 0x295   : > { %v3929_v4 = vpop.eup %3928  ;;  %v2497_v21 = vrot.slane %v2496_v11, 1 }
 0x296   : > { %v5880_v43 = vmul.f32 %v3929_v4, %v3913_v8  ;;  %v5882_v20 = vmul.f32 %v3929_v4, %v3915_v37  ;;  %v5884_v28 = vmul.f32 %v3929_v4, %v3917_v23  ;;  %v5886_v53 = vmul.f32 %v3929_v4, %v3919_v58 }
 0x297   : > { %v2498_v61 = vadd.f32 %v2497_v21, %v2496_v11  ;;  %v2506_v8 = vsel %vm2374_vm8, %v5874_v39, -inf  ;;  %v2508_v23 = vmax.f32 %v2504_v63, %v2505_v57 }
 0x298   : > { %v5890_v0 = vpop.f32.mrf.mxu0  ;;  %v2290_v2 = vpop.f32.mrf.mxu1 }
 0x299   : > { %3930 = vrcp.f32 %v2498_v61  ;;  %v2507_v37 = vsel %vm2374_vm8, %v2290_v2, -inf }
 0x29a   : > { %v2509_v56 = vmax.f32 %v2506_v8, %v2507_v37  ;;  %v2222_v58 = vpop.f32.mrf.mxu0  ;;  %v2292_v5 = vpop.f32.mrf.mxu1 }
 0x29c   : > { %v2510_v47 = vmax.f32 %v2508_v23, %v2509_v56 }
 0x29e   : > { %v2511_v45 = vrot.slane %v2510_v47, 4 }
 0x2a0   : > { %v2512_v38 = vmax.f32 %v2510_v47, %v2511_v45 }
 0x2a2   : > { %v2513_v3 = vrot.slane %v2512_v38, 2 }
 0x2a4   : > { %v2514_v31 = vmax.f32 %v2512_v38, %v2513_v3 }
 0x2a6   : > { %v3931_v16 = vpop.eup %3930  ;;  %v2515_v34 = vrot.slane %v2514_v31, 1 }
 0x2a7   : > { %v5903_v52 = vmul.f32 %v3931_v16, %v3921_v36  ;;  %v5905_v13 = vmul.f32 %v3931_v16, %v3923_v32  ;;  %v5907_v12 = vmul.f32 %v3931_v16, %v3925_v6  ;;  %v5909_v46 = vmul.f32 %v3931_v16, %v3927_v26 }
 0x2a8   : > { %v2516_v14 = vmax.f32 %v2514_v31, %v2515_v34  ;;  %v5911_v11 = vpop.f32.mrf.mxu0  ;;  %v5913_v4 = vpop.f32.mrf.mxu1  ;;  %v2376_v26 = vsel %vm2374_vm8, %v5890_v0, -inf }
 0x2aa   : > { %v2517_v21 = vsub.f32 %v5861_v44, %v2516_v14  ;;  %v2518_v61 = vsub.f32 %v5864_v7, %v2516_v14  ;;  %v2519_v57 = vsub.f32 %v5874_v39, %v2516_v14  ;;  %v2520_v63 = vsub.f32 %v2290_v2, %v2516_v14  ;;  %v2227_v36 = vpop.f32.mrf.mxu0  ;;  %v2297_v8 = vpop.f32.mrf.mxu1 }
 0x2ab   : > { %v2375_v7 = vsel %vm2374_vm8, %v5872_v15, -inf  ;;  %v2377_v39 = vsel %vm2374_vm8, %v5911_v11, -inf }
 0x2ac   : > { %v2521_v32 = vmul.f32 1.442695, %v2517_v21  ;;  %v2523_v37 = vmul.f32 1.442695, %v2518_v61  ;;  %v2525_v6 = vmul.f32 1.442695, %v2519_v57  ;;  %v2379_v58 = vmax.f32 %v2375_v7, %v2376_v26 }
 0x2ad   : > { %v2527_v23 = vmul.f32 1.442695, %v2520_v63 }
 0x2ae   : > { %3932 = vpow2.f32 %v2521_v32 }
 0x2af   : > { %3934 = vpow2.f32 %v2523_v37 }
 0x2b0   : > { %3936 = vpow2.f32 %v2525_v6 }
 0x2b1   : > { %3938 = vpow2.f32 %v2527_v23 }
 0x2b4   : > { %v2230_v56 = vpop.f32.mrf.mxu0  ;;  %v5920_v44 = vpop.f32.mrf.mxu1 }
 0x2b5   : > { %v2378_v2 = vsel %vm2374_vm8, %v2230_v56, -inf }
 0x2b6   : > { %v2380_v5 = vmax.f32 %v2377_v39, %v2378_v2  ;;  %v2232_v47 = vpop.f32.mrf.mxu0  ;;  %v2302_v45 = vpop.f32.mrf.mxu1  ;;  %v2548_v2 = vsel %vm2374_vm8, %v5920_v44, -inf }
 0x2b8   : > { %v2381_v51 = vmax.f32 %v2379_v58, %v2380_v5  ;;  %v2547_v5 = vsel %vm2374_vm8, %v5913_v4, -inf }
 0x2ba   : > { %v2382_v59 = vrot.slane %v2381_v51, 4 }
 0x2bb   : > { %v5927_v38 = vpop.eup %3932 }
 0x2bc   : > { %v5929_v3 = vpop.eup %3934  ;;  %v2529_v31 = vsel %vm2374_vm8, %v5927_v38, 0.0  ;;  %v2383_v16 = vmax.f32 %v2381_v51, %v2382_v59 }
 0x2bd   : > { %v5933_v34 = vpop.eup %3936  ;;  %v2530_v14 = vsel %vm2374_vm8, %v5929_v3, 0.0 }
 0x2be   : > { %v5937_v21 = vpop.eup %3938  ;;  %v2531_v61 = vadd.f32 %v2530_v14, %v2529_v31  ;;  %v2384_v57 = vrot.slane %v2383_v16, 2  ;;  %v2532_v63 = vsel %vm2374_vm8, %v5933_v34, 0.0 }
 0x2bf   : > { %v2534_v37 = vsel %vm2374_vm8, %v5937_v21, 0.0 }
 0x2c0   : > { %v2533_v36 = vadd.f32 %v2532_v63, %v2531_v61  ;;  %v2385_v8 = vmax.f32 %v2383_v16, %v2384_v57  ;;  %v2305_v32 = vpop.f32.mrf.mxu1  ;;  %v2551_v57 = vmax.f32 %v2547_v5, %v2548_v2 }
 0x2c1   : > { %v2549_v47 = vsel %vm2374_vm8, %v2305_v32, -inf }
 0x2c2   : > { %v2535_v6 = vadd.f32 %v2534_v37, %v2533_v36  ;;  %v2386_v23 = vrot.slane %v2385_v8, 1  ;;  %v2307_v26 = vpop.f32.mrf.mxu1 }
 0x2c4   : > { %v2536_v7 = vrot.slane %v2535_v6, 4  ;;  %v2387_v39 = vmax.f32 %v2385_v8, %v2386_v23  ;;  %v2310_v58 = vpop.f32.mrf.mxu1 }
 0x2c5   : > { %v2550_v45 = vsel %vm2374_vm8, %v2310_v58, -inf }
 0x2c6   : > { %v2537_v51 = vadd.f32 %v2536_v7, %v2535_v6  ;;  %v2388_v59 = vsub.f32 %v5872_v15, %v2387_v39  ;;  %v2389_v31 = vsub.f32 %v5890_v0, %v2387_v39  ;;  %v2390_v16 = vsub.f32 %v5911_v11, %v2387_v39  ;;  %v2312_v14 = vpop.f32.mrf.mxu1 }
 0x2c7   : > { %v2391_v61 = vsub.f32 %v2230_v56, %v2387_v39  ;;  %v2552_v63 = vmax.f32 %v2549_v47, %v2550_v45 }
 0x2c8   : > { %v2538_v36 = vrot.slane %v2537_v51, 2  ;;  %v2392_v8 = vmul.f32 1.442695, %v2388_v59  ;;  %v2394_v37 = vmul.f32 1.442695, %v2389_v31 }
 0x2c9   : > { %v2396_v23 = vmul.f32 1.442695, %v2390_v16  ;;  %v2398_v26 = vmul.f32 1.442695, %v2391_v61  ;;  %v2553_v30 = vmax.f32 %v2551_v57, %v2552_v63 }
 0x2ca   : > { %v2539_v40 = vadd.f32 %v2538_v36, %v2537_v51  ;;  %3940 = vpow2.f32 %v2392_v8 }
 0x2cb   : > { %3942 = vpow2.f32 %v2394_v37  ;;  %v2554_v6 = vrot.slane %v2553_v30, 4 }
 0x2cc   : > { %v2540_v7 = vrot.slane %v2539_v40, 1  ;;  %3944 = vpow2.f32 %v2396_v23 }
 0x2cd   : > { %3946 = vpow2.f32 %v2398_v26  ;;  %v2555_v15 = vmax.f32 %v2553_v30, %v2554_v6 }
 0x2ce   : > { %v2541_v0 = vadd.f32 %v2540_v7, %v2539_v40 }
 0x2cf   : > { %v2556_v11 = vrot.slane %v2555_v15, 2 }
 0x2d0   : > { %3948 = vrcp.f32 %v2541_v0 }
 0x2d1   : > { %v2557_v56 = vmax.f32 %v2555_v15, %v2556_v11 }
 0x2d2   : > { %v5952_v39 = vpop.f32.mrf.mxu1 }
 0x2d3   : > { %v2558_v2 = vrot.slane %v2557_v56, 1 }
 0x2d4   : > { %v2317_v5 = vpop.f32.mrf.mxu1 }
 0x2d5   : > { %v2559_v47 = vmax.f32 %v2557_v56, %v2558_v2 }
 0x2d6   : > { %v5954_v45 = vpop.f32.mrf.mxu1 }
 0x2d7   : > { %v5956_v59 = vpop.eup %3940  ;;  %v2560_v51 = vsub.f32 %v5913_v4, %v2559_v47  ;;  %v2561_v31 = vsub.f32 %v5920_v44, %v2559_v47  ;;  %v2562_v16 = vsub.f32 %v2305_v32, %v2559_v47  ;;  %v2563_v14 = vsub.f32 %v2310_v58, %v2559_v47 }
 0x2d8   : > { %v5960_v30 = vpop.eup %3942  ;;  %v2400_v40 = vsel %vm2374_vm8, %v5956_v59, 0.0  ;;  %v2322_v61 = vpop.f32.mrf.mxu1 }
 0x2d9   : > { %v5964_v57 = vpop.eup %3944  ;;  %v2401_v63 = vsel %vm2374_vm8, %v5960_v30, 0.0  ;;  %v2564_v36 = vmul.f32 1.442695, %v2560_v51  ;;  %v2566_v8 = vmul.f32 1.442695, %v2561_v31 }
 0x2da   : > { %v5968_v37 = vpop.eup %3946  ;;  %v2402_v4 = vadd.f32 %v2401_v63, %v2400_v40  ;;  %v2568_v23 = vmul.f32 1.442695, %v2562_v16  ;;  %v2570_v44 = vmul.f32 1.442695, %v2563_v14  ;;  %v2403_v32 = vsel %vm2374_vm8, %v5964_v57, 0.0 }
 0x2db   : > { %3950 = vpow2.f32 %v2564_v36  ;;  %v2405_v6 = vsel %vm2374_vm8, %v5968_v37, 0.0  ;;  %v2591_v16 = vsel %vm2374_vm8, %v5954_v45, -inf }
 0x2dc   : > { %v2404_v58 = vadd.f32 %v2403_v32, %v2402_v4  ;;  %3952 = vpow2.f32 %v2566_v8 }
 0x2dd   : > { %v3949_v26 = vpop.eup %3948  ;;  %3954 = vpow2.f32 %v2568_v23 }
 0x2de   : > { %v2406_v7 = vadd.f32 %v2405_v6, %v2404_v58  ;;  %3956 = vpow2.f32 %v2570_v44  ;;  %v5975_v15 = vmul.f32 %v3949_v26, %v5927_v38  ;;  %v5978_v0 = vmul.f32 %v3949_v26, %v5929_v3 }
 0x2df   : > { %v5981_v11 = vmul.f32 %v3949_v26, %v5933_v34  ;;  %v5984_v56 = vmul.f32 %v3949_v26, %v5937_v21  ;;  %v2590_v3 = vsel %vm2374_vm8, %v5952_v39, -inf }
 0x2e0   : > { %v2407_v2 = vrot.slane %v2406_v7, 4  ;;  %v2594_v63 = vmax.f32 %v2590_v3, %v2591_v16 }
 0x2e2   : > { %v2408_v5 = vadd.f32 %v2407_v2, %v2406_v7  ;;  %v2325_v47 = vpop.f32.mrf.mxu1 }
 0x2e3   : > { %v2592_v40 = vsel %vm2374_vm8, %v2325_v47, -inf }
 0x2e4   : > { %v2409_v51 = vrot.slane %v2408_v5, 2  ;;  %v2327_v31 = vpop.f32.mrf.mxu1 }
 0x2e6   : > { %v2410_v14 = vadd.f32 %v2409_v51, %v2408_v5  ;;  %v2330_v38 = vpop.f32.mrf.mxu1 }
 0x2e7   : > { %v2593_v34 = vsel %vm2374_vm8, %v2330_v38, -inf }
 0x2e8   : > { %v5992_v61 = vpop.eup %3950  ;;  %v2411_v21 = vrot.slane %v2410_v14, 1  ;;  %v2595_v36 = vmax.f32 %v2592_v40, %v2593_v34  ;;  %v2332_v8 = vpop.f32.mrf.mxu1 }
 0x2e9   : > { %v5994_v4 = vpop.eup %3952  ;;  %v2572_v23 = vsel %vm2374_vm8, %v5992_v61, 0.0 }
 0x2ea   : > { %v5998_v44 = vpop.eup %3954  ;;  %v2412_v32 = vadd.f32 %v2411_v21, %v2410_v14  ;;  %v2573_v58 = vsel %vm2374_vm8, %v5994_v4, 0.0  ;;  %v2596_v26 = vmax.f32 %v2594_v63, %v2595_v36 }
 0x2eb   : > { %v6002_v6 = vpop.eup %3956  ;;  %v2574_v7 = vadd.f32 %v2573_v58, %v2572_v23  ;;  %v2575_v2 = vsel %vm2374_vm8, %v5998_v44, 0.0 }
 0x2ec   : > { %3958 = vrcp.f32 %v2412_v32  ;;  %v2597_v5 = vrot.slane %v2596_v26, 4  ;;  %v2577_v31 = vsel %vm2374_vm8, %v6002_v6, 0.0 }
 0x2ed   : > { %v2576_v51 = vadd.f32 %v2575_v2, %v2574_v7 }
 0x2ee   : > { %v2598_v16 = vmax.f32 %v2596_v26, %v2597_v5 }
 0x2ef   : > { %v2578_v3 = vadd.f32 %v2577_v31, %v2576_v51 }
 0x2f0   : > { %v2599_v40 = vrot.slane %v2598_v16, 2 }
 0x2f1   : > { %v2579_v14 = vrot.slane %v2578_v3, 4 }
 0x2f2   : > { %v2600_v34 = vmax.f32 %v2598_v16, %v2599_v40 }
 0x2f3   : > { %v2580_v63 = vadd.f32 %v2579_v14, %v2578_v3 }
 0x2f4   : > { %v2601_v21 = vrot.slane %v2600_v34, 1  ;;  %v6008_v8 = vpop.f32.mrf.mxu1 }
 0x2f5   : > { %v2581_v26 = vrot.slane %v2580_v63, 2 }
 0x2f6   : > { %v2602_v36 = vmax.f32 %v2600_v34, %v2601_v21  ;;  %v2337_v23 = vpop.f32.mrf.mxu1 }
 0x2f7   : > { %v2582_v34 = vadd.f32 %v2581_v26, %v2580_v63 }
 0x2f8   : > { %v2603_v32 = vsub.f32 %v5952_v39, %v2602_v36  ;;  %v2604_v58 = vsub.f32 %v5954_v45, %v2602_v36  ;;  %v2605_v27 = vsub.f32 %v2325_v47, %v2602_v36  ;;  %v2606_v7 = vsub.f32 %v2330_v38, %v2602_v36  ;;  %v6012_v2 = vpop.f32.mrf.mxu1 }
 0x2f9   : > { %v3959_v9 = vpop.eup %3958  ;;  %v2583_v45 = vrot.slane %v2582_v34, 1  ;;  %v2634_v47 = vsel %vm2374_vm8, %v6012_v2, -inf }
 0x2fa   : > { %v2607_v5 = vmul.f32 1.442695, %v2603_v32  ;;  %v2609_v51 = vmul.f32 1.442695, %v2604_v58  ;;  %v2342_v31 = vpop.f32.mrf.mxu1  ;;  %v2611_v16 = vmul.f32 1.442695, %v2605_v27  ;;  %v2414_v40 = vmul.f32 %v3959_v9, %v5956_v59 }
 0x2fb   : > { %v2415_v3 = vmul.f32 %v3959_v9, %v5960_v30  ;;  %v2613_v14 = vmul.f32 1.442695, %v2606_v7  ;;  %v2416_v39 = vmul.f32 %v3959_v9, %v5964_v57  ;;  %v2417_v27 = vmul.f32 %v3959_v9, %v5968_v37 }
 0x2fc   : > { %3960 = vpow2.f32 %v2607_v5  ;;  %3521 = vmatprep.mubr.msk.f32.mxu0 %vm2374_vm8, %v2414_v40  ;;  %v2584_v30 = vadd.f32 %v2583_v45, %v2582_v34  ;;  %v2633_v37 = vsel %vm2374_vm8, %v6008_v8, -inf }
 0x2fd   : > { %3962 = vpow2.f32 %v2609_v51  ;;  %3522 = vmatmul.mubr.msk.f32.vlgmr.msra.gmra.mxu0 %vm2374_vm8, %v2415_v3  ;;  %v2637_v63 = vmax.f32 %v2633_v37, %v2634_v47 }
 0x2fe   : > { %3964 = vpow2.f32 %v2611_v16  ;;  %3524 = vmatprep.mubr.msk.f32.mxu0 %vm2374_vm8, %v2416_v39 }
 0x2ff   : > { %3966 = vpow2.f32 %v2613_v14 }
 0x300   : > { %3968 = vrcp.f32 %v2584_v30 }
 0x301   : > { %3525 = vmatmul.mubr.msk.f32.gmra.mxu0 %vm2374_vm8, %v2417_v27 }
 0x302   : > { %3527 = vmatprep.mubr.msk.f32.mxu0 %vm2374_vm8, %v5880_v43 }
 0x304   : > { %v2345_v59 = vpop.f32.mrf.mxu1 }
 0x305   : > { %3528 = vmatmul.mubr.msk.f32.gmra.mxu0 %vm2374_vm8, %v5882_v20  ;;  %v2635_v43 = vsel %vm2374_vm8, %v2345_v59, -inf }
 0x306   : > { %v2347_v57 = vpop.f32.mrf.mxu1  ;;  %3530 = vmatprep.mubr.msk.f32.mxu0 %vm2374_vm8, %v5884_v28 }
 0x308   : > { %v2350_v38 = vpop.f32.mrf.mxu1 }
 0x309   : > { %v6030_v9 = vpop.eup %3960  ;;  %v2636_v21 = vsel %vm2374_vm8, %v2350_v38, -inf  ;;  %3531 = vmatmul.mubr.msk.f32.gmra.mxu0 %vm2374_vm8, %v5886_v53 }
 0x30a   : > { %v2615_v20 = vsel %vm2374_vm8, %v6030_v9, 0.0  ;;  %v2638_v36 = vmax.f32 %v2635_v43, %v2636_v21  ;;  %v2352_v28 = vpop.f32.mrf.mxu1  ;;  %v6040_v23 = vpop.eup %3962  ;;  %3533 = vmatprep.mubr.msk.f32.mxu0 %vm2374_vm8, %v5903_v52 }
 0x30b   : > { %v6044_v32 = vpop.eup %3964  ;;  %v2616_v58 = vsel %vm2374_vm8, %v6040_v23, 0.0 }
 0x30c   : > { %v2639_v7 = vmax.f32 %v2637_v63, %v2638_v36  ;;  %v6048_v26 = vpop.eup %3966  ;;  %v2617_v5 = vadd.f32 %v2616_v58, %v2615_v20  ;;  %v2618_v51 = vsel %vm2374_vm8, %v6044_v32, 0.0 }
 0x30d   : > { %3534 = vmatmul.mubr.msk.f32.gmra.mxu0 %vm2374_vm8, %v5905_v13  ;;  %v2620_v52 = vsel %vm2374_vm8, %v6048_v26, 0.0  ;;  %v3969_v13 = vpop.eup %3968 }
 0x30e   : > { %v2640_v31 = vrot.slane %v2639_v7, 4  ;;  %v2619_v53 = vadd.f32 %v2618_v51, %v2617_v5  ;;  %3536 = vmatprep.mubr.msk.f32.mxu0 %vm2374_vm8, %v5907_v12  ;;  %v2586_v47 = vmul.f32 %v3969_v13, %v5992_v61  ;;  %v2587_v28 = vmul.f32 %v3969_v13, %v5994_v4 }
 0x310   : > { %v2641_v16 = vmax.f32 %v2639_v7, %v2640_v31  ;;  %v2621_v40 = vadd.f32 %v2620_v52, %v2619_v53 }
 0x311   : > { %3537 = vmatmul.mubr.msk.f32.gmra.mxu0 %vm2374_vm8, %v5909_v46 }
 0x312   : > { %v2642_v3 = vrot.slane %v2641_v16, 2  ;;  %v2622_v14 = vrot.slane %v2621_v40, 4  ;;  %3539 = vmatprep.mubr.msk.f32.mxu0 %vm2374_vm8, %v5975_v15 }
 0x314   : > { %v2643_v34 = vmax.f32 %v2641_v16, %v2642_v3  ;;  %v2623_v39 = vadd.f32 %v2622_v14, %v2621_v40 }
 0x315   : > { %3540 = vmatmul.mubr.msk.f32.gmra.mxu0 %vm2374_vm8, %v5978_v0 }
 0x316   : > { %v2644_v27 = vrot.slane %v2643_v34, 1  ;;  %v6064_v12 = vpop.f32.mrf.mxu1  ;;  %v2624_v45 = vrot.slane %v2623_v39, 2  ;;  %3542 = vmatprep.mubr.msk.f32.mxu0 %vm2374_vm8, %v5981_v11 }
 0x317   : > { %v2676_v7 = vsel %vm2374_vm8, %v6064_v12, -inf }
 0x318   : > { %v2645_v30 = vmax.f32 %v2643_v34, %v2644_v27  ;;  %v2357_v57 = vpop.f32.mrf.mxu1  ;;  %v2625_v46 = vadd.f32 %v2624_v45, %v2623_v39 }
 0x319   : > { %3543 = vmatmul.mubr.msk.f32.gmra.mxu0 %vm2374_vm8, %v5984_v56 }
 0x31a   : > { %v2646_v15 = vsub.f32 %v6008_v8, %v2645_v30  ;;  %v2647_v37 = vsub.f32 %v6012_v2, %v2645_v30  ;;  %v2648_v43 = vsub.f32 %v2345_v59, %v2645_v30  ;;  %v2649_v21 = vsub.f32 %v2350_v38, %v2645_v30  ;;  %v6073_v0 = vpop.f32.mrf.mxu1  ;;  %3545 = vmatprep.mubr.msk.f32.mxu0 %vm2374_vm8, %v2586_v47 }
 0x31b   : > { %v2626_v20 = vrot.slane %v2625_v46, 1  ;;  %v2588_v8 = vmul.f32 %v3969_v13, %v5998_v44  ;;  %v2589_v59 = vmul.f32 %v3969_v13, %v6002_v6  ;;  %v2677_v38 = vsel %vm2374_vm8, %v6073_v0, -inf }
 0x31c   : > { %v2650_v11 = vmul.f32 1.442695, %v2646_v15  ;;  %v2652_v63 = vmul.f32 1.442695, %v2647_v37  ;;  %v2362_v36 = vpop.f32.mrf.mxu1  ;;  %v2654_v58 = vmul.f32 1.442695, %v2648_v43  ;;  %v2680_v31 = vmax.f32 %v2676_v7, %v2677_v38 }
 0x31d   : > { %v2627_v61 = vadd.f32 %v2626_v20, %v2625_v46  ;;  %v2656_v2 = vmul.f32 1.442695, %v2649_v21  ;;  %3546 = vmatmul.mubr.msk.f32.gmra.mxu0 %vm2374_vm8, %v2587_v28 }
 0x31e   : > { %3970 = vpow2.f32 %v2650_v11  ;;  %3548 = vmatprep.mubr.msk.f32.mxu0 %vm2374_vm8, %v2588_v8 }
 0x31f   : > { %3972 = vrcp.f32 %v2627_v61 }
 0x320   : > { %3974 = vpow2.f32 %v2652_v63  ;;  %v2365_v56 = vpop.f32.mrf.mxu1 }
 0x321   : > { %3976 = vpow2.f32 %v2654_v58  ;;  %3549 = vmatmul.mubr.msk.f32.gmra.mxu0 %vm2374_vm8, %v2589_v59  ;;  %v2678_v5 = vsel %vm2374_vm8, %v2365_v56, -inf }
 0x322   : > { %3978 = vpow2.f32 %v2656_v2  ;;  %v2367_v4 = vpop.f32.mrf.mxu1 }
 0x325   : > { %v2370_v44 = vpop.f32.mrf.mxu1 }
 0x326   : > { %v2679_v51 = vsel %vm2374_vm8, %v2370_v44, -inf }
 0x327   : > { %v2681_v53 = vmax.f32 %v2678_v5, %v2679_v51  ;;  %v2372_v52 = vpop.f32.mrf.mxu1 }
 0x329   : > { %v2682_v6 = vmax.f32 %v2680_v31, %v2681_v53 }
 0x32b   : > { %v3971_v16 = vpop.eup %3970  ;;  %v2683_v40 = vrot.slane %v2682_v6, 4 }
 0x32c   : > { %v3973_v3 = vpop.eup %3972  ;;  %v2658_v14 = vsel %vm2374_vm8, %v3971_v16, 0.0 }
 0x32d   : > { %v3975_v34 = vpop.eup %3974  ;;  %v2684_v39 = vmax.f32 %v2682_v6, %v2683_v40  ;;  %v2629_v13 = vmul.f32 %v3973_v3, %v6030_v9  ;;  %v2630_v27 = vmul.f32 %v3973_v3, %v6040_v23  ;;  %v2631_v15 = vmul.f32 %v3973_v3, %v6044_v32 }
 0x32e   : > { %v3977_v45 = vpop.eup %3976  ;;  %v2659_v30 = vsel %vm2374_vm8, %v3975_v34, 0.0  ;;  %v2632_v23 = vmul.f32 %v3973_v3, %v6048_v26 }
 0x32f   : > { %v3979_v57 = vpop.eup %3978  ;;  %v2660_v46 = vadd.f32 %v2659_v30, %v2658_v14  ;;  %v2685_v47 = vrot.slane %v2684_v39, 2  ;;  %3551 = vmatprep.mubr.msk.f32.mxu0 %vm2374_vm8, %v2629_v13  ;;  %v2661_v37 = vsel %vm2374_vm8, %v3977_v45, 0.0 }
 0x330   : > { %3552 = vmatmul.mubr.msk.f32.gmra.mxu0 %vm2374_vm8, %v2630_v27  ;;  %v2663_v9 = vsel %vm2374_vm8, %v3979_v57, 0.0 }
 0x331   : > { %v2662_v43 = vadd.f32 %v2661_v37, %v2660_v46  ;;  %v2686_v21 = vmax.f32 %v2684_v39, %v2685_v47  ;;  %3554 = vmatprep.mubr.msk.f32.mxu0 %vm2374_vm8, %v2631_v15 }
 0x333   : > { %v2664_v20 = vadd.f32 %v2663_v9, %v2662_v43  ;;  %v2687_v11 = vrot.slane %v2686_v21, 1 }
 0x334   : > { %3555 = vmatmul.mubr.msk.f32.gmra.mxu0 %vm2374_vm8, %v2632_v23 }
 0x335   : > { %v2665_v63 = vrot.slane %v2664_v20, 4  ;;  %v2688_v36 = vmax.f32 %v2686_v21, %v2687_v11 }
 0x337   : > { %v2666_v28 = vadd.f32 %v2665_v63, %v2664_v20  ;;  %v2689_v32 = vsub.f32 %v6064_v12, %v2688_v36  ;;  %v2690_v61 = vsub.f32 %v6073_v0, %v2688_v36  ;;  %v2691_v58 = vsub.f32 %v2365_v56, %v2688_v36 }
 0x338   : > { %v2692_v8 = vsub.f32 %v2370_v44, %v2688_v36 }
 0x339   : > { %v2667_v2 = vrot.slane %v2666_v28, 2  ;;  %v2693_v59 = vmul.f32 1.442695, %v2689_v32  ;;  %v2695_v4 = vmul.f32 1.442695, %v2690_v61 }
 0x33a   : > { %v2697_v38 = vmul.f32 1.442695, %v2691_v58  ;;  %v2699_v7 = vmul.f32 1.442695, %v2692_v8 }
 0x33b   : > { %v2668_v5 = vadd.f32 %v2667_v2, %v2666_v28  ;;  %3980 = vpow2.f32 %v2693_v59 }
 0x33c   : > { %3982 = vpow2.f32 %v2695_v4 }
 0x33d   : > { %v2669_v26 = vrot.slane %v2668_v5, 1  ;;  %3984 = vpow2.f32 %v2697_v38 }
 0x33e   : > { %3986 = vpow2.f32 %v2699_v7 }
 0x33f   : > { %v2670_v51 = vadd.f32 %v2669_v26, %v2668_v5 }
 0x341   : > { %3988 = vrcp.f32 %v2670_v51 }
 0x348   : > { %v3981_v31 = vpop.eup %3980 }
 0x349   : > { %v3983_v53 = vpop.eup %3982  ;;  %v2701_v12 = vsel %vm2374_vm8, %v3981_v31, 0.0 }
 0x34a   : > { %v3985_v0 = vpop.eup %3984  ;;  %v2702_v56 = vsel %vm2374_vm8, %v3983_v53, 0.0 }
 0x34b   : > { %v3987_v44 = vpop.eup %3986  ;;  %v2703_v52 = vadd.f32 %v2702_v56, %v2701_v12  ;;  %v2704_v6 = vsel %vm2374_vm8, %v3985_v0, 0.0  ;;  %v6507_v56 = vld [vmem:[#allocation30_spill] sm:$0xff] }
 0x34c   : > { %v2706_v14 = vsel %vm2374_vm8, %v3987_v44, 0.0 }
 0x34d   : > { %v2705_v40 = vadd.f32 %v2704_v6, %v2703_v52 }
 0x34e   : > { %v3989_v3 = vpop.eup %3988 }
 0x34f   : > { %v2707_v39 = vadd.f32 %v2706_v14, %v2705_v40  ;;  %v2672_v13 = vmul.f32 %v3989_v3, %v3971_v16  ;;  %v2673_v27 = vmul.f32 %v3989_v3, %v3975_v34  ;;  %v2674_v46 = vmul.f32 %v3989_v3, %v3977_v45  ;;  %v6508_v14 = vld [vmem:[#allocation31_spill] sm:$0xff] }
 0x350   : > { %v2675_v15 = vmul.f32 %v3989_v3, %v3979_v57 }
 0x351   : > { %v2708_v30 = vrot.slane %v2707_v39, 4  ;;  %3557 = vmatprep.mubr.msk.f32.mxu0 %vm2374_vm8, %v2672_v13  ;;  %v6509_v13 = vld [vmem:[#allocation32_spill] sm:$0xff] }
 0x352   : > { %3558 = vmatmul.mubr.msk.f32.gmra.mxu0 %vm2374_vm8, %v2673_v27 }
 0x353   : > { %v2709_v47 = vadd.f32 %v2708_v30, %v2707_v39  ;;  %3560 = vmatprep.mubr.msk.f32.mxu0 %vm2374_vm8, %v2674_v46 }
 0x355   : > { %v2710_v37 = vrot.slane %v2709_v47, 2 }
 0x356   : > { %3561 = vmatmul.mubr.msk.f32.gmra.mxu0 %vm2374_vm8, %v2675_v15 }
 0x357   : > { %v2711_v43 = vadd.f32 %v2710_v37, %v2709_v47 }
 0x359   : > { %v2712_v21 = vrot.slane %v2711_v43, 1 }
 0x35b   : > { %v2713_v9 = vadd.f32 %v2712_v21, %v2711_v43  ;;  %v6510_v21 = vld [vmem:[#allocation35_spill] sm:$0xff] }
 0x35d   : > { %3990 = vrcp.f32 %v2713_v9 }
 0x36a   : > { %v3991_v23 = vpop.eup %3990 }
 0x36b   : > { %v2715_v16 = vmul.f32 %v3991_v23, %v3981_v31  ;;  %v2716_v34 = vmul.f32 %v3991_v23, %v3983_v53  ;;  %v2717_v20 = vmul.f32 %v3991_v23, %v3985_v0  ;;  %v2718_v45 = vmul.f32 %v3991_v23, %v3987_v44  ;;  %v6511_v23 = vld [vmem:[#allocation36_spill] sm:$0xff] }
 0x36d   : > { %3563 = vmatprep.mubr.msk.f32.mxu0 %vm2374_vm8, %v2715_v16 }
 0x36e   : > { %3564 = vmatmul.mubr.msk.f32.gmra.mxu0 %vm2374_vm8, %v2716_v34 }
 0x36f   : > { %3566 = vmatprep.mubr.msk.f32.mxu0 %vm2374_vm8, %v2717_v20 }
 0x372   : > { %3567 = vmatmul.mubr.msk.f32.gmra.mxu0 %vm2374_vm8, %v2718_v45 }
 0x3bd   : > { %v3523_v57 = vpop.f32.mrf.mxu0 }
 0x3be   : > { %v3047_v11 = vmul.f32 %v3523_v57, %v6475_v22 }
 0x3bf   : > { %v2887_v63 = vpop.f32.mrf.mxu0 }
 0x3c0   : > { %v3046_v36 = vmul.f32 %v2887_v63, %v6472_v42  ;;  %v3079_v32 = vsel %vm1934_vm2, %v3047_v11, 0.0 }
 0x3c1   : > { %v3526_v28 = vpop.f32.mrf.mxu0 }
 0x3c2   : > { %v3078_v61 = vsel %vm1934_vm2, %v3046_v36, 0.0  ;;  %v3049_v2 = vmul.f32 %v3526_v28, %v4447_v50 }
 0x3c3   : > { %v3080_v58 = vadd.f32 %v3079_v32, %v3078_v61  ;;  %v2897_v8 = vpop.f32.mrf.mxu0  ;;  %v6512_v32 = vld [vmem:[#allocation38_spill] sm:$0xff] }
 0x3c4   : > { %v3048_v59 = vmul.f32 %v2897_v8, %v6457_v54  ;;  %v3083_v22 = vsel %vm1934_vm2, %v3049_v2, 0.0  ;;  %v6506_v54 = vld [vmem:[#allocation27_spill] sm:$0xff] }
 0x3c5   : > { %v3529_v4 = vpop.f32.mrf.mxu0 }
 0x3c6   : > { %v3081_v38 = vsel %vm1934_vm2, %v3048_v59, 0.0  ;;  %v3051_v42 = vmul.f32 %v3529_v4, %v6421_v41 }
 0x3c7   : > { %v3082_v7 = vadd.f32 %v3081_v38, %v3080_v58  ;;  %v2907_v5 = vpop.f32.mrf.mxu0  ;;  %v6513_v58 = vld [vmem:[#allocation40_spill] sm:$0xff] }
 0x3c8   : > { %v3050_v26 = vmul.f32 %v2907_v5, %v6498_v18  ;;  %v3092_v50 = vsel %vm1934_vm2, %v3051_v42, 0.0 }
 0x3c9   : > { %v6124_v51 = vadd.f32 %v3083_v22, %v3082_v7  ;;  %v3532_v31 = vpop.f32.mrf.mxu0 }
 0x3ca   : > { %v3091_v53 = vsel %vm1934_vm2, %v3050_v26, 0.0  ;;  %v3053_v0 = vmul.f32 %v3532_v31, %v6506_v54  ;;  %v6514_v31 = vld [vmem:[#allocation42_spill] sm:$0xff] }
 0x3cb   : > { %v2917_v12 = vpop.f32.mrf.mxu0  ;;  %v3093_v52 = vadd.f32 %v3092_v50, %v3091_v53 }
 0x3cc   : > { %v3052_v44 = vmul.f32 %v2917_v12, %v6507_v56  ;;  %v3096_v18 = vsel %vm1934_vm2, %v3053_v0, 0.0 }
 0x3cd   : > { %v3535_v6 = vpop.f32.mrf.mxu0 }
 0x3ce   : > { %v3094_v40 = vsel %vm1934_vm2, %v3052_v44, 0.0  ;;  %v3055_v39 = vmul.f32 %v3535_v6, %v6508_v14 }
 0x3cf   : > { %v3095_v3 = vadd.f32 %v3094_v40, %v3093_v52  ;;  %v2927_v41 = vpop.f32.mrf.mxu0 }
 0x3d0   : > { %v3054_v27 = vmul.f32 %v2927_v41, %v6509_v13  ;;  %v3105_v43 = vsel %vm1934_vm2, %v3055_v39, 0.0 }
 0x3d1   : > { %v3097_v30 = vadd.f32 %v3096_v18, %v3095_v3  ;;  %v3538_v46 = vpop.f32.mrf.mxu0 }
 0x3d2   : > { %v3104_v47 = vsel %vm1934_vm2, %v3054_v27, 0.0  ;;  %v3057_v9 = vmul.f32 %v3538_v46, %v6510_v21 }
 0x3d3   : > { %v3098_v15 = vrot.slane %v3097_v30, 4  ;;  %v2937_v37 = vpop.f32.mrf.mxu0  ;;  %v3106_v20 = vadd.f32 %v3105_v43, %v3104_v47 }
 0x3d4   : > { %v3056_v16 = vmul.f32 %v2937_v37, %v6511_v23  ;;  %v3109_v28 = vsel %vm1934_vm2, %v3057_v9, 0.0 }
 0x3d5   : > { %v3099_v34 = vadd.f32 %v3098_v15, %v3097_v30  ;;  %v3541_v45 = vpop.f32.mrf.mxu0 }
 0x3d6   : > { %v3107_v57 = vsel %vm1934_vm2, %v3056_v16, 0.0  ;;  %v3059_v61 = vmul.f32 %v3541_v45, %v6512_v32 }
 0x3d7   : > { %v3100_v11 = vrot.slane %v3099_v34, 2  ;;  %v3108_v63 = vadd.f32 %v3107_v57, %v3106_v20  ;;  %v2947_v36 = vpop.f32.mrf.mxu0 }
 0x3d8   : > { %v3058_v8 = vmul.f32 %v2947_v36, %v6513_v58  ;;  %v3118_v42 = vsel %vm1934_vm2, %v3059_v61, 0.0 }
 0x3d9   : > { %v3110_v2 = vadd.f32 %v3109_v28, %v3108_v63  ;;  %v3544_v59 = vpop.f32.mrf.mxu0  ;;  %v3101_v4 = vadd.f32 %v3100_v11, %v3099_v34 }
 0x3da   : > { %v3117_v38 = vsel %vm1934_vm2, %v3058_v8, 0.0  ;;  %v3061_v26 = vmul.f32 %v3544_v59, %v4582_v55 }
 0x3db   : > { %v3111_v7 = vrot.slane %v3110_v2, 4  ;;  %v2957_v5 = vpop.f32.mrf.mxu0  ;;  %v3102_v22 = vrot.slane %v3101_v4, 1  ;;  %v3119_v50 = vadd.f32 %v3118_v42, %v3117_v38 }
 0x3dc   : > { %v3060_v53 = vmul.f32 %v2957_v5, %v6514_v31  ;;  %v3122_v3 = vsel %vm1934_vm2, %v3061_v26, 0.0 }
 0x3dd   : > { %v3112_v12 = vadd.f32 %v3111_v7, %v3110_v2  ;;  %v3547_v54 = vpop.f32.mrf.mxu0  ;;  %v3103_v0 = vadd.f32 %v3102_v22, %v3101_v4 }
 0x3de   : > { %v3120_v56 = vsel %vm1934_vm2, %v3060_v53, 0.0  ;;  %v3063_v44 = vmul.f32 %v3547_v54, %v6490_v60 }
 0x3df   : > { %v3113_v52 = vrot.slane %v3112_v12, 2  ;;  %v3121_v6 = vadd.f32 %v3120_v56, %v3119_v50  ;;  %v2967_v40 = vpop.f32.mrf.mxu0  ;;  %3183 = vrot.lane.b32.xlu1 %v3103_v0, %s4021_s10 }
 0x3e0   : > { %v3062_v41 = vmul.f32 %v2967_v40, %v6469_v19  ;;  %v3131_v39 = vsel %vm1934_vm2, %v3063_v44, 0.0 }
 0x3e1   : > { %v3123_v55 = vadd.f32 %v3122_v3, %v3121_v6  ;;  %v3550_v18 = vpop.f32.mrf.mxu0  ;;  %v3114_v14 = vadd.f32 %v3113_v52, %v3112_v12 }
 0x3e2   : > { %v3130_v13 = vsel %vm1934_vm2, %v3062_v41, 0.0  ;;  %v3065_v47 = vmul.f32 %v3550_v18, %v6471_v48 }
 0x3e3   : > { %v3124_v27 = vrot.slane %v3123_v55, 4  ;;  %v3132_v30 = vadd.f32 %v3131_v39, %v3130_v13  ;;  %v2977_v46 = vpop.f32.mrf.mxu0  ;;  %v3115_v60 = vrot.slane %v3114_v14, 1 }
 0x3e4   : > { %v3064_v15 = vmul.f32 %v2977_v46, %v6497_v35  ;;  %v3135_v23 = vsel %vm1934_vm2, %v3065_v47, 0.0 }
 0x3e5   : > { %v3125_v37 = vadd.f32 %v3124_v27, %v3123_v55  ;;  %v3116_v43 = vadd.f32 %v3115_v60, %v3114_v14 }
 0x3e6   : > { %v3133_v21 = vsel %vm1934_vm2, %v3064_v15, 0.0  ;;  %v6516_v15 = vld [vmem:[#allocation60_spill] sm:$0xff] }
 0x3e7   : > { %v3126_v19 = vrot.slane %v3125_v37, 2  ;;  %v3134_v9 = vadd.f32 %v3133_v21, %v3132_v30  ;;  %3187 = vrot.lane.b32.xlu1 %v3116_v43, %s4020_s13  ;;  %v6517_v43 = vld [vmem:[#allocation4_spill] sm:$0xff] }
 0x3e9   : > { %v6158_v16 = vadd.f32 %v3135_v23, %v3134_v9  ;;  %v3127_v34 = vadd.f32 %v3126_v19, %v3125_v37 }
 0x3eb   : > { %v3128_v20 = vrot.slane %v3127_v34, 1 }
 0x3ed   : > { %v3129_v45 = vadd.f32 %v3128_v20, %v3127_v34 }
 0x3ef   : > { %3191 = vrot.lane.b32.xlu1 %v3129_v45, %s4019_s30 }
 0x3f0   : > { %v3553_v57 = vpop.f32.mrf.mxu0 }
 0x3f1   : > { %v3067_v35 = vmul.f32 %v3553_v57, %v4680_v1 }
 0x3f2   : > { %v2987_v48 = vpop.f32.mrf.mxu0 }
 0x3f3   : > { %v3066_v11 = vmul.f32 %v2987_v48, %v4697_v17  ;;  %v3144_v32 = vsel %vm1934_vm2, %v3067_v35, 0.0 }
 0x3f4   : > { %v3556_v63 = vpop.f32.mrf.mxu0 }
 0x3f5   : > { %v3143_v36 = vsel %vm1934_vm2, %v3066_v11, 0.0  ;;  %v3069_v61 = vmul.f32 %v3556_v63, %v4711_v10  ;;  %v3085_v63 = vrot.slane %v6124_v51, 4 }
 0x3f6   : > { %v2997_v28 = vpop.f32.mrf.mxu0  ;;  %v3145_v8 = vadd.f32 %v3144_v32, %v3143_v36  ;;  %v3137_v36 = vrot.slane %v6158_v16, 4 }
 0x3f7   : > { %v3068_v58 = vmul.f32 %v2997_v28, %v4718_v49  ;;  %v3148_v4 = vsel %vm1934_vm2, %v3069_v61, 0.0  ;;  %v3086_v28 = vadd.f32 %v3085_v63, %v6124_v51 }
 0x3f8   : > { %v3138_v32 = vadd.f32 %v3137_v36, %v6158_v16 }
 0x3f9   : > { %v3146_v2 = vsel %vm1934_vm2, %v3068_v58, 0.0  ;;  %v3087_v61 = vrot.slane %v3086_v28, 2 }
 0x3fa   : > { %v3147_v59 = vadd.f32 %v3146_v2, %v3145_v8  ;;  %v3139_v58 = vrot.slane %v3138_v32, 2 }
 0x3fb   : > { %v3088_v8 = vadd.f32 %v3087_v61, %v3086_v28 }
 0x3fc   : > { %v3149_v38 = vadd.f32 %v3148_v4, %v3147_v59  ;;  %v3140_v2 = vadd.f32 %v3139_v58, %v3138_v32 }
 0x3fe   : > { %v3150_v1 = vrot.slane %v3149_v38, 4 }
 0x400   : > { %v3151_v7 = vadd.f32 %v3150_v1, %v3149_v38  ;;  %v4022_v38 = vmov 1966171168  }
 0x401   : > { %v3216_v1 = vunpack.c.l.s4 %v4022_v38 }
 0x402   : > { %v3152_v17 = vrot.slane %v3151_v7, 2 }
 0x404   : > { %v3153_v5 = vadd.f32 %v3152_v17, %v3151_v7  ;;  %v3089_v7 = vrot.slane %v3088_v8, 1  ;;  %v3141_v17 = vrot.slane %v3140_v2, 1 }
 0x406   : > { %v3154_v22 = vrot.slane %v3153_v5, 1 }
 0x408   : > { %v3155_v42 = vadd.f32 %v3154_v22, %v3153_v5 }
 0x40a   : > { %3195 = vrot.lane.b32.xlu0 %v3155_v42, %s4021_s10  ;;  %v3217_v42 = vunpack.c.0.s8 %v3216_v1 }
 0x412   : > { %v3559_v26 = vpop.f32.mrf.mxu0 }
 0x413   : > { %v3071_v10 = vmul.f32 %v3559_v26, %v6461_v29  ;;  %v3090_v26 = vadd.f32 %v3089_v7, %v3088_v8 }
 0x414   : > { %v3007_v31 = vpop.f32.mrf.mxu0 }
 0x415   : > { %v3070_v49 = vmul.f32 %v3007_v31, %v4752_v33  ;;  %v3157_v54 = vsel %vm1934_vm2, %v3071_v10, 0.0  ;;  %v3142_v31 = vadd.f32 %v3141_v17, %v3140_v2 }
 0x416   : > { %v3562_v53 = vpop.f32.mrf.mxu0 }
 0x417   : > { %v3156_v12 = vsel %vm1934_vm2, %v3070_v49, 0.0  ;;  %v3073_v0 = vmul.f32 %v3562_v53, %v6465_v25 }
 0x418   : > { %v3017_v50 = vpop.f32.mrf.mxu0  ;;  %v3158_v44 = vadd.f32 %v3157_v54, %v3156_v12  ;;  %v6518_v12 = vld [vmem:[#allocation24_spill] sm:$0xff] }
 0x419   : > { %v3072_v56 = vmul.f32 %v3017_v50, %v6460_v24  ;;  %v3161_v40 = vsel %vm1934_vm2, %v3073_v0, 0.0  ;;  %v6515_v24 = vld [vmem:[#allocation59_spill] sm:$0xff]  ;;  %v3220_v50 = vsub.s32 %v3217_v42, %v6518_v12 }
 0x41b   : > { %v3159_v52 = vsel %vm1934_vm2, %v3072_v56, 0.0 }
 0x41c   : > { %v3160_v6 = vadd.f32 %v3159_v52, %v3158_v44 }
 0x41e   : > { %v3162_v3 = vadd.f32 %v3161_v40, %v3160_v6  ;;  %v6519_v6 = vlaneseq }
 0x420   : > { %v3163_v29 = vrot.slane %v3162_v3, 4  ;;  %vm3232_vm10 = vcmp.lt.s32.totalorder %v6519_v6, 256 }
 0x422   : > { %v3164_v41 = vadd.f32 %v3163_v29, %v3162_v3 }
 0x424   : > { %v3165_v33 = vrot.slane %v3164_v41, 2 }
 0x426   : > { %v3166_v55 = vadd.f32 %v3165_v33, %v3164_v41 }
 0x428   : > { %v3167_v18 = vrot.slane %v3166_v55, 1 }
 0x42a   : > { %v3168_v14 = vadd.f32 %v3167_v18, %v3166_v55 }
 0x42c   : > { %3199 = vrot.lane.b32.xlu0 %v3168_v14, %s4020_s13 }
 0x42e   : > { %v3565_v39 = vpop.f32.mrf.mxu0 }
 0x42f   : > { %v3075_v25 = vmul.f32 %v3565_v39, %v6422_v62 }
 0x430   : > { %v3027_v13 = vpop.f32.mrf.mxu0 }
 0x431   : > { %v3074_v27 = vmul.f32 %v3027_v13, %v6515_v24  ;;  %v3170_v47 = vsel %vm1934_vm2, %v3075_v25, 0.0 }
 0x432   : > { %v3568_v30 = vpop.f32.mrf.mxu0 }
 0x433   : > { %v3169_v46 = vsel %vm1934_vm2, %v3074_v27, 0.0  ;;  %v3077_v37 = vmul.f32 %v3568_v30, %v6516_v15 }
 0x434   : > { %v3037_v60 = vpop.f32.mrf.mxu0  ;;  %v3171_v19 = vadd.f32 %v3170_v47, %v3169_v46 }
 0x435   : > { %v3076_v21 = vmul.f32 %v3037_v60, %v6517_v43  ;;  %v3174_v34 = vsel %vm1934_vm2, %v3077_v37, 0.0 }
 0x437   : > { %v3172_v9 = vsel %vm1934_vm2, %v3076_v21, 0.0 }
 0x438   : > { %v3173_v23 = vadd.f32 %v3172_v9, %v3171_v19 }
 0x43a   : > { %v3175_v20 = vadd.f32 %v3174_v34, %v3173_v23 }
 0x43c   : > { %v3176_v62 = vrot.slane %v3175_v20, 4 }
 0x43e   : > { %v3177_v45 = vadd.f32 %v3176_v62, %v3175_v20 }
 0x440   : > { %v3178_v57 = vrot.slane %v3177_v45, 2 }
 0x442   : > { %v3179_v48 = vadd.f32 %v3178_v57, %v3177_v45 }
 0x444   : > { %v3180_v35 = vrot.slane %v3179_v48, 1 }
 0x446   : > { %v3181_v11 = vadd.f32 %v3180_v35, %v3179_v48 }
 0x448   : > { %3203 = vrot.lane.b32.xlu0 %v3181_v11, %s4019_s30  ;;  %s3296_s30 = sshll.u32 %s6523_s19, 1 }
 0x449   : > { %s227_s14 = scalar_lea.vmem %s6213_s5, %s3296_s30 }
 0x451   : > { %v3184_v59 = vpop.permute.xlu1 %3183 }
 0x452   : > { %v3206_v16 = vsel %vm1934_vm2, %v3090_v26, %v3184_v59 }
 0x459   : > { %v3188_v5 = vpop.permute.xlu1 %3187 }
 0x45a   : > { %v3207_v49 = vsel %vm1967_vm6, %v3206_v16, %v3188_v5 }
 0x461   : > { %v3192_v51 = vpop.permute.xlu1 %3191 }
 0x462   : > { %v3208_v0 = vsel %vm2000_vm7, %v3207_v49, %v3192_v51 }
 0x47c   : > { %v3196_v4 = vpop.permute.xlu0 %3195 }
 0x47d   : > { %v3209_v10 = vsel %vm1934_vm2, %v3142_v31, %v3196_v4 }
 0x49e   : > { %v3200_v22 = vpop.permute.xlu0 %3199 }
 0x49f   : > { %v3210_v53 = vsel %vm1967_vm6, %v3209_v10, %v3200_v22 }
 0x4ba   : > { %v3204_v54 = vpop.permute.xlu0 %3203 }
 0x4bb   : > { %v3211_v56 = vsel %vm2000_vm7, %v3210_v53, %v3204_v54 }
 0x4bc   : > { %v3214_v44 = vcombine.low %v3208_v0, %v3211_v56 }
 0x4be   : > { %v3221_v52 = vrot.slane %v3214_v44, %v3220_v50 }
 0x4c0   : > { %v3228_v40 = vrot.slane %v3221_v52, %v3220_v50 }
 0x4c2   : > { %3234 = vst.msk [vmem:[%s227_s14] sm:$0x3] %vm3232_vm10, %v3228_v40 }
 0x4c3 PF: > { %s15_s18 = sadd.s32 1, %s4012_s18  }
 0x4c4   : > { %p12_p5 = scmp.ge.s32.totalorder %s15_s18, 4  }
 0x4c6   :  { %14 = sbr.rel (!%p12_p5) target bundleno = 1 (0x1), region = 70 }

</bundles_post_ra>
